<compile_context>
chip_gen: v7x
topology: tpu7x:2x2x1
jax: 0.10.0
libtpu: 0.0.40
codegen_flags: <defaults>
</compile_context>

<pallas_src>
import functools

import jax
import jax.numpy as jnp
from jax.experimental import pallas as pl
from jax.experimental.pallas import tpu as pltpu

_BN_EPS = 1e-5


def _round_up(x, m):
    return (x + m - 1) // m * m


def _cdiv(a, b):
    return -(-a // b)


def _pick_tn(np_, prefer_multi=False):
    """Largest 128-multiple divisor of np_ (<=512); optionally prefer >=2 tiles."""
    cands = [c for c in (512, 384, 256, 128) if c <= np_ and np_ % c == 0]
    if prefer_multi:
        multi = [c for c in cands if np_ // c >= 2]
        if multi:
            return multi[0]
    return cands[0] if cands else 128


# --------------------------------------------------------------------------
# Fused stride-1 3x3 conv kernels (no im2col materialization).
# x_ref is a (L, C) bf16 flat row-padded image, L = H*W + 2*W + 2, with the
# image pixels at flat offsets [W+1, W+1+H*W).  Tap (ky, kx) is the
# contiguous slice starting at (W+1) + (ky-1)*W + (kx-1); the only wrong
# (wrapped) reads happen at x==0 for kx==0 and x==W-1 for kx==2, which are
# masked with an iota-based row mask.
# --------------------------------------------------------------------------
def _accumulate_3x3(x_ref, w_ref, H, W, C):
    HW = H * W
    off = W + 1
    col = jax.lax.broadcasted_iota(jnp.int32, (HW, 1), 0) % W
    not_left = col != 0
    not_right = col != (W - 1)
    acc = None
    for ky in range(3):
        for kx in range(3):
            s = off + (ky - 1) * W + (kx - 1)
            xs = x_ref[s:s + HW, :]                           # (HW, C) bf16
            if kx == 0:
                xs = jnp.where(not_left, xs, jnp.zeros_like(xs))
            elif kx == 2:
                xs = jnp.where(not_right, xs, jnp.zeros_like(xs))
            t = ky * 3 + kx
            wt = w_ref[t * C:(t + 1) * C, :]                  # (C, tn) bf16
            contrib = jnp.dot(xs, wt, preferred_element_type=jnp.float32)
            acc = contrib if acc is None else acc + contrib
    return acc                                                # (HW, tn) f32


def _conv3x3_bn_kernel(x_ref, w_ref, b_ref, o_ref, *, H, W, C, relu):
    acc = _accumulate_3x3(x_ref, w_ref, H, W, C) + b_ref[...]
    if relu:
        acc = jnp.maximum(acc, 0.0)
    o_ref[...] = acc.astype(o_ref.dtype)


def _conv3x3_bn_add_relu_kernel(x_ref, w_ref, b_ref, sh_ref, o_ref, *, H, W, C):
    # conv2 + bn2 + identity residual + relu
    acc = _accumulate_3x3(x_ref, w_ref, H, W, C) + b_ref[...]
    acc = acc + sh_ref[...].astype(jnp.float32)
    o_ref[...] = jnp.maximum(acc, 0.0).astype(o_ref.dtype)


def _conv3x3_bn_proj_add_relu_kernel(x_ref, w_ref, b_ref, sp_ref, sw_ref, sb_ref,
                                     o_ref, *, H, W, C):
    # conv2 + bn2 + fused projection shortcut (1x1 conv + bn) + relu
    acc = _accumulate_3x3(x_ref, w_ref, H, W, C) + b_ref[...]
    acc = acc + jnp.dot(sp_ref[...], sw_ref[...],
                        preferred_element_type=jnp.float32) + sb_ref[...]
    o_ref[...] = jnp.maximum(acc, 0.0).astype(o_ref.dtype)


def _fused_conv3x3(x_flat, wfold, bias, *, H, W, relu=True,
                   shortcut=None, proj=None, out_dtype=jnp.bfloat16):
    """x_flat: (N, L, C) bf16 flat row-padded activation, L = H*W + 2*W + 2.
    wfold: (9*C, Np) bf16 (BN scale folded), bias: (1, Np) f32 (Np % 128 == 0).
    shortcut: optional (N, H*W, Np) bf16 identity residual (adds + relu).
    proj: optional (sp (N, H*W, Cin) bf16, sw (Cin, Np) bf16, sb (1, Np) f32)."""
    N, L, C = x_flat.shape
    HW = H * W
    assert L == HW + 2 * W + 2
    assert wfold.shape[0] == 9 * C
    Np = wfold.shape[1]
    tn = _pick_tn(Np, prefer_multi=(N == 1))   # keep >=2 parallel tiles on v7x
    grid = (N, Np // tn)

    args = [x_flat, wfold, bias]
    in_specs = [
        pl.BlockSpec((None, L, C), lambda n, j: (n, 0, 0)),     # whole image
        pl.BlockSpec((9 * C, tn), lambda n, j: (0, j)),         # weight-resident
        pl.BlockSpec((1, tn), lambda n, j: (0, j)),
    ]
    flops = 2 * N * HW * (9 * C) * Np
    bytes_accessed = (x_flat.size * 2 + wfold.size * 2 + bias.size * 4
                      + N * HW * Np * jnp.dtype(out_dtype).itemsize)

    if proj is not None:
        sp, sw, sb = proj
        cin = sp.shape[-1]
        args += [sp, sw, sb]
        in_specs += [
            pl.BlockSpec((None, HW, cin), lambda n, j: (n, 0, 0)),
            pl.BlockSpec((cin, tn), lambda n, j: (0, j)),
            pl.BlockSpec((1, tn), lambda n, j: (0, j)),
        ]
        kernel = functools.partial(_conv3x3_bn_proj_add_relu_kernel, H=H, W=W, C=C)
        flops += 2 * N * HW * cin * Np
        bytes_accessed += sp.size * 2 + sw.size * 2 + sb.size * 4
    elif shortcut is not None:
        args.append(shortcut)
        in_specs.append(pl.BlockSpec((None, HW, tn), lambda n, j: (n, 0, j)))
        kernel = functools.partial(_conv3x3_bn_add_relu_kernel, H=H, W=W, C=C)
        bytes_accessed += shortcut.size * 2
    else:
        kernel = functools.partial(_conv3x3_bn_kernel, H=H, W=W, C=C, relu=relu)

    return pl.pallas_call(
        kernel,
        out_shape=jax.ShapeDtypeStruct((N, HW, Np), out_dtype),
        grid=grid,
        in_specs=in_specs,
        out_specs=pl.BlockSpec((None, HW, tn), lambda n, j: (n, 0, j)),
        compiler_params=pltpu.CompilerParams(
            dimension_semantics=("parallel", "parallel"),
            vmem_limit_bytes=32 * 1024 * 1024,      # v7x-safe (64 MiB physical)
        ),
        cost_estimate=pl.CostEstimate(
            flops=flops, transcendentals=0, bytes_accessed=bytes_accessed),
    )(*args)


# --------------------------------------------------------------------------
# GEMM fallback for the strided conv1 (bf16 MXU, f32 accumulate, bias + relu)
# --------------------------------------------------------------------------
def _matmul_bias_kernel(p_ref, w_ref, b_ref, o_ref, *, relu):
    acc = jnp.dot(p_ref[...], w_ref[...], preferred_element_type=jnp.float32)
    acc = acc + b_ref[...]
    if relu:
        acc = jnp.maximum(acc, 0.0)
    o_ref[...] = acc.astype(o_ref.dtype)


def _gemm_bias_relu(patches, wfold, bias, *, relu=True, out_dtype=jnp.bfloat16,
                    tm_max=512):
    """patches: (M, K) bf16; wfold: (K, Np) bf16; bias: (1, Np) f32."""
    M, K = patches.shape
    Np = wfold.shape[1]
    tn = _pick_tn(Np)
    tm = min(tm_max, _round_up(M, 8))
    # v7x megacore: make sure the parallel grid has >=2 tiles when possible.
    if _cdiv(M, tm) * (Np // tn) < 2 and M > 8:
        tm = _round_up(_cdiv(M, 2), 8)
    grid = (_cdiv(M, tm), Np // tn)   # ragged last M tile is masked by Pallas

    return pl.pallas_call(
        functools.partial(_matmul_bias_kernel, relu=relu),
        out_shape=jax.ShapeDtypeStruct((M, Np), out_dtype),
        grid=grid,
        in_specs=[
            pl.BlockSpec((tm, K), lambda i, j: (i, 0)),
            pl.BlockSpec((K, tn), lambda i, j: (0, j)),
            pl.BlockSpec((1, tn), lambda i, j: (0, j)),
        ],
        out_specs=pl.BlockSpec((tm, tn), lambda i, j: (i, j)),
        compiler_params=pltpu.CompilerParams(
            dimension_semantics=("parallel", "parallel"),
            vmem_limit_bytes=32 * 1024 * 1024,
        ),
        cost_estimate=pl.CostEstimate(
            flops=2 * M * K * Np, transcendentals=0,
            bytes_accessed=(patches.size * 2 + wfold.size * 2 + bias.size * 4
                            + M * Np * jnp.dtype(out_dtype).itemsize)),
    )(patches, wfold, bias)


# --------------------------------------------------------------------------
# Plain-JAX glue: BN folding, flat row padding, small im2col (strided only)
# --------------------------------------------------------------------------
def _fold_bn_into_w(w_oihw, bn, cout_pad, cin_pad=None):
    """Fold BN scale into weight columns; returns bf16 (kh*kw*Cin[, padded], Np)
    weights (K ordered as (ky, kx, c)) and f32 (1, Np) bias."""
    gamma, beta, mean, var = bn
    scale = gamma / jnp.sqrt(var + _BN_EPS)
    bias = beta - mean * scale
    cout, cin, kh, kw = w_oihw.shape
    w = jnp.transpose(w_oihw, (2, 3, 1, 0)) * scale          # (kh, kw, Cin, Cout)
    if cin_pad is not None and cin_pad > cin:
        w = jnp.pad(w, ((0, 0), (0, 0), (0, cin_pad - cin), (0, 0)))
        cin = cin_pad
    wmat = w.reshape(kh * kw * cin, cout)
    if cout_pad > cout:
        wmat = jnp.pad(wmat, ((0, 0), (0, cout_pad - cout)))
        bias = jnp.pad(bias, (0, cout_pad - cout))
    return wmat.astype(jnp.bfloat16), bias.reshape(1, -1).astype(jnp.float32)


def _pad_flat(flat_nhwc, W):
    """(N, H*W, C) row-major pixels -> (N, H*W + 2*W + 2, C) with W+1 zeros
    on each side (flat padded layout consumed by the fused 3x3 kernel)."""
    return jnp.pad(flat_nhwc, ((0, 0), (W + 1, W + 1), (0, 0)))


def _im2col(x_nhwc, ksize, stride, pad):
    N, H, W, C = x_nhwc.shape
    xp = jnp.pad(x_nhwc, ((0, 0), (pad, pad), (pad, pad), (0, 0)))
    Ho = (H + 2 * pad - ksize) // stride + 1
    Wo = (W + 2 * pad - ksize) // stride + 1
    cols = []
    for ky in range(ksize):
        for kx in range(ksize):
            cols.append(xp[:, ky:ky + stride * Ho:stride, kx:kx + stride * Wo:stride, :])
    patches = jnp.stack(cols, axis=3)                        # (N, Ho, Wo, k*k, C)
    return patches.reshape(N * Ho * Wo, ksize * ksize * C), Ho, Wo


# --------------------------------------------------------------------------
# BasicBlock forward (NCHW in / NCHW out)
# --------------------------------------------------------------------------
def basic_block_forward(x_nchw, params, stride=1):
    x = jnp.transpose(x_nchw, (0, 2, 3, 1)).astype(jnp.float32)   # NHWC f32
    N, H, W, Cin = x.shape
    planes = params["w1"].shape[0]
    Np = _round_up(planes, 128)              # lane-dense padded channel count
    x_bf = x.astype(jnp.bfloat16)

    # conv1 -> bn1 -> relu   (dropout = identity in eval mode)
    w1, b1 = _fold_bn_into_w(params["w1"], params["bn1"], cout_pad=Np)
    if stride == 1:
        x_flat = _pad_flat(x_bf.reshape(N, H * W, Cin), W)
        out1 = _fused_conv3x3(x_flat, w1, b1, H=H, W=W, relu=True,
                              out_dtype=jnp.bfloat16)        # (N, H*W, Np)
        Ho, Wo = H, W
    else:
        patches1, Ho, Wo = _im2col(x_bf, 3, stride, 1)       # small: 9*Cin cols
        out1 = _gemm_bias_relu(patches1, w1, b1, relu=True,
                               out_dtype=jnp.bfloat16).reshape(N, Ho * Wo, Np)

    # conv2 -> bn2 -> (+ shortcut) -> relu, one fused pallas_call.
    # conv2 consumes the Np-padded channels directly (padded channels of out1
    # are exact zeros; the matching weight rows are zero-padded too).
    w2, b2 = _fold_bn_into_w(params["w2"], params["bn2"], cout_pad=Np, cin_pad=Np)
    out1_flat = _pad_flat(out1, Wo)

    if stride != 1 or Cin != planes:
        ws, bs = _fold_bn_into_w(params["ws"], params["bns"], cout_pad=Np)
        sp, _, _ = _im2col(x_bf, 1, stride, 0)               # (N*Ho*Wo, Cin)
        sp = sp.reshape(N, Ho * Wo, Cin)
        out = _fused_conv3x3(out1_flat, w2, b2, H=Ho, W=Wo,
                             proj=(sp, ws, bs), out_dtype=jnp.float32)
    else:
        shortcut = jnp.pad(x_bf.reshape(N, H * W, Cin),
                           ((0, 0), (0, 0), (0, Np - Cin)))  # bf16 residual
        out = _fused_conv3x3(out1_flat, w2, b2, H=Ho, W=Wo,
                             shortcut=shortcut, out_dtype=jnp.float32)

    out = out[:, :, :planes].reshape(N, Ho, Wo, planes)
    return jnp.transpose(out, (0, 3, 1, 2))                  # back to NCHW


# --------------------------------------------------------------------------
# Pure-JAX f32 reference (for correctness check)
# --------------------------------------------------------------------------
def _ref_block(x_nchw, params, stride=1):
    x = jnp.transpose(x_nchw, (0, 2, 3, 1)).astype(jnp.float32)

    def conv(inp, w, st, pad):
        wh = jnp.transpose(w, (2, 3, 1, 0))  # OIHW -> HWIO
        return jax.lax.conv_general_dilated(
            inp, wh, (st, st), [(pad, pad), (pad, pad)],
            dimension_numbers=("NHWC", "HWIO", "NHWC"))

    def bn(inp, p):
        g, b, m, v = p
        return (inp - m) / jnp.sqrt(v + _BN_EPS) * g + b

    out = jax.nn.relu(bn(conv(x, params["w1"], stride, 1), params["bn1"]))
    out = bn(conv(out, params["w2"], 1, 1), params["bn2"])
    if stride != 1 or x.shape[-1] != params["w1"].shape[0]:
        sc = bn(conv(x, params["ws"], stride, 0), params["bns"])
    else:
        sc = x
    out = jax.nn.relu(out + sc)
    return jnp.transpose(out, (0, 3, 1, 2))


# --------------------------------------------------------------------------
# Deterministic parameter init
# --------------------------------------------------------------------------
def _make_bn(key, c):
    k1, k2, k3, k4 = jax.random.split(key, 4)
    gamma = 1.0 + 0.1 * jax.random.normal(k1, (c,), jnp.float32)
    beta = 0.05 * jax.random.normal(k2, (c,), jnp.float32)
    mean = 0.01 * jax.random.normal(k3, (c,), jnp.float32)
    var = 1.0 + 0.1 * jax.random.uniform(k4, (c,), jnp.float32)
    return (gamma, beta, mean, var)


def make_params(key, in_planes, planes, stride):
    keys = jax.random.split(key, 6)
    params = {
        "w1": 0.1 * jax.random.normal(keys[0], (planes, in_planes, 3, 3), jnp.float32),
        "bn1": _make_bn(keys[1], planes),
        "w2": 0.1 * jax.random.normal(keys[2], (planes, planes, 3, 3), jnp.float32),
        "bn2": _make_bn(keys[3], planes),
    }
    if stride != 1 or in_planes != planes:
        params["ws"] = 0.1 * jax.random.normal(keys[4], (planes, in_planes, 1, 1), jnp.float32)
        params["bns"] = _make_bn(keys[5], planes)
    return params


if __name__ == "__main__":
    key = jax.random.PRNGKey(0)
    kx, kp1, kp2 = jax.random.split(key, 3)

    # Tolerances are bf16-MXU level: kernel convolves in bf16 (f32 accumulate),
    # reference convolves in f32.
    ATOL = RTOL = 3e-2

    # Case 1: identity shortcut (in_planes == planes, stride = 1)
    x = jax.random.normal(kx, (2, 4, 16, 16), jnp.float32)  # NCHW
    params1 = make_params(kp1, in_planes=4, planes=4, stride=1)
    out1 = jax.block_until_ready(basic_block_forward(x, params1, stride=1))
    ref1 = jax.block_until_ready(_ref_block(x, params1, stride=1))
    assert out1.shape == (2, 4, 16, 16)
    assert jnp.allclose(out1, ref1, atol=ATOL, rtol=RTOL), "mismatch (identity shortcut)"

    # Case 2: projection shortcut (in_planes != planes, stride = 2)
    params2 = make_params(kp2, in_planes=4, planes=8, stride=2)
    out2 = jax.block_until_ready(basic_block_forward(x, params2, stride=2))
    ref2 = jax.block_until_ready(_ref_block(x, params2, stride=2))
    assert out2.shape == (2, 8, 8, 8)
    assert jnp.allclose(out2, ref2, atol=ATOL, rtol=RTOL), "mismatch (projection shortcut)"

    print("KERNEL_OK")
</pallas_src>

<mosaic_0001>
module attributes {stable_mosaic.version = 11 : i64} {
  func.func @_conv3x3_bn_kernel(%arg0: i32, %arg1: i32, %arg2: memref<1x290x4xbf16, #tpu.memory_space<vmem>>, %arg3: memref<36x128xbf16, #tpu.memory_space<vmem>>, %arg4: memref<1x128xf32, #tpu.memory_space<vmem>>, %arg5: memref<1x256x128xbf16, #tpu.memory_space<vmem>>) attributes {dimension_semantics = [#tpu.dimension_semantics<parallel>, #tpu.dimension_semantics<parallel>], iteration_bounds = array<i64: 2, 1>, scalar_prefetch = 0 : i64, scratch_operands = 0 : i64, tpu.core_type = #tpu.core_type<tc>, window_params = [{transform_indices = @transform_0, window_bounds = array<i64: 1, 290, 4>}, {transform_indices = @transform_1, window_bounds = array<i64: 36, 128>}, {transform_indices = @transform_2, window_bounds = array<i64: 1, 128>}, {transform_indices = @transform_3, window_bounds = array<i64: 1, 256, 128>}]} {
    %0 = tpu.iota {dimensions = array<i32: 0>} : vector<256x1xi32>
    %c16_i32 = arith.constant 16 : i32
    %c0_i32 = arith.constant 0 : i32
    %1 = arith.cmpi eq, %c16_i32, %c0_i32 : i32
    %c1_i32 = arith.constant 1 : i32
    %2 = arith.select %1, %c1_i32, %c16_i32 : i32
    %3 = vector.broadcast %2 : i32 to vector<256x1xi32>
    %4 = arith.remsi %0, %3 : vector<256x1xi32>
    %c0_i32_0 = arith.constant 0 : i32
    %5 = vector.broadcast %c0_i32_0 : i32 to vector<256x1xi32>
    %6 = arith.cmpi ne, %4, %5 : vector<256x1xi32>
    %c0_i32_1 = arith.constant 0 : i32
    %7 = vector.broadcast %c0_i32_1 : i32 to vector<256x1xi32>
    %8 = arith.cmpi slt, %4, %7 : vector<256x1xi32>
    %c0_i32_2 = arith.constant 0 : i32
    %9 = arith.cmpi slt, %2, %c0_i32_2 : i32
    %10 = vector.broadcast %9 : i1 to vector<256x1xi1>
    %11 = vector.broadcast %10 : vector<256x1xi1> to vector<256x1xi1>
    %12 = arith.xori %8, %11 : vector<256x1xi1>
    %13 = arith.andi %12, %6 : vector<256x1xi1>
    %14 = vector.broadcast %2 : i32 to vector<256x1xi32>
    %15 = arith.addi %4, %14 : vector<256x1xi32>
    %16 = arith.select %13, %15, %4 : vector<256x1xi1>, vector<256x1xi32>
    %c0_i32_3 = arith.constant 0 : i32
    %17 = vector.broadcast %c0_i32_3 : i32 to vector<256x1xi32>
    %18 = arith.cmpi ne, %16, %17 : vector<256x1xi32>
    %c15_i32 = arith.constant 15 : i32
    %19 = vector.broadcast %c15_i32 : i32 to vector<256x1xi32>
    %20 = arith.cmpi ne, %16, %19 : vector<256x1xi32>
    %c0 = arith.constant 0 : index
    %c0_4 = arith.constant 0 : index
    %c0_5 = arith.constant 0 : index
    %21 = vector.load %arg2[%c0, %c0_4, %c0_5] : memref<1x290x4xbf16, #tpu.memory_space<vmem>>, vector<1x256x4xbf16>
    %22 = vector.shape_cast %21 : vector<1x256x4xbf16> to vector<256x4xbf16>
    %cst = arith.constant 0.000000e+00 : bf16
    %23 = vector.broadcast %cst : bf16 to vector<256x4xbf16>
    %24 = vector.shape_cast %18 : vector<256x1xi1> to vector<256x1xi1>
    %25 = vector.broadcast %24 : vector<256x1xi1> to vector<256x4xi1>
    %26 = arith.select %25, %22, %23 : vector<256x4xi1>, vector<256x4xbf16>
    %c0_6 = arith.constant 0 : index
    %c0_7 = arith.constant 0 : index
    %27 = vector.load %arg3[%c0_6, %c0_7] : memref<36x128xbf16, #tpu.memory_space<vmem>>, vector<4x128xbf16>
    %cst_8 = arith.constant dense<0.000000e+00> : vector<256x128xf32>
    %28 = tpu.matmul %26, %27, %cst_8 {dimension_numbers = #tpu.dot_dimension_numbers<[1], [0], [0], [1], [0, 0, 1, 1], [], []>} : vector<256x4xbf16>, vector<4x128xbf16>, vector<256x128xf32> -> vector<256x128xf32>
    %c0_9 = arith.constant 0 : index
    %c1 = arith.constant 1 : index
    %c0_10 = arith.constant 0 : index
    %29 = vector.load %arg2[%c0_9, %c1, %c0_10] : memref<1x290x4xbf16, #tpu.memory_space<vmem>>, vector<1x256x4xbf16>
    %30 = vector.shape_cast %29 : vector<1x256x4xbf16> to vector<256x4xbf16>
    %c4 = arith.constant 4 : index
    %c0_11 = arith.constant 0 : index
    %31 = vector.load %arg3[%c4, %c0_11] : memref<36x128xbf16, #tpu.memory_space<vmem>>, vector<4x128xbf16>
    %cst_12 = arith.constant dense<0.000000e+00> : vector<256x128xf32>
    %32 = tpu.matmul %30, %31, %cst_12 {dimension_numbers = #tpu.dot_dimension_numbers<[1], [0], [0], [1], [0, 0, 1, 1], [], []>} : vector<256x4xbf16>, vector<4x128xbf16>, vector<256x128xf32> -> vector<256x128xf32>
    %33 = arith.addf %28, %32 : vector<256x128xf32>
    %c0_13 = arith.constant 0 : index
    %c2 = arith.constant 2 : index
    %c0_14 = arith.constant 0 : index
    %34 = vector.load %arg2[%c0_13, %c2, %c0_14] : memref<1x290x4xbf16, #tpu.memory_space<vmem>>, vector<1x256x4xbf16>
    %35 = vector.shape_cast %34 : vector<1x256x4xbf16> to vector<256x4xbf16>
    %cst_15 = arith.constant 0.000000e+00 : bf16
    %36 = vector.broadcast %cst_15 : bf16 to vector<256x4xbf16>
    %37 = vector.shape_cast %20 : vector<256x1xi1> to vector<256x1xi1>
    %38 = vector.broadcast %37 : vector<256x1xi1> to vector<256x4xi1>
    %39 = arith.select %38, %35, %36 : vector<256x4xi1>, vector<256x4xbf16>
    %c8 = arith.constant 8 : index
    %c0_16 = arith.constant 0 : index
    %40 = vector.load %arg3[%c8, %c0_16] : memref<36x128xbf16, #tpu.memory_space<vmem>>, vector<4x128xbf16>
    %cst_17 = arith.constant dense<0.000000e+00> : vector<256x128xf32>
    %41 = tpu.matmul %39, %40, %cst_17 {dimension_numbers = #tpu.dot_dimension_numbers<[1], [0], [0], [1], [0, 0, 1, 1], [], []>} : vector<256x4xbf16>, vector<4x128xbf16>, vector<256x128xf32> -> vector<256x128xf32>
    %42 = arith.addf %33, %41 : vector<256x128xf32>
    %c0_18 = arith.constant 0 : index
    %c16 = arith.constant 16 : index
    %c0_19 = arith.constant 0 : index
    %43 = vector.load %arg2[%c0_18, %c16, %c0_19] : memref<1x290x4xbf16, #tpu.memory_space<vmem>>, vector<1x256x4xbf16>
    %44 = vector.shape_cast %43 : vector<1x256x4xbf16> to vector<256x4xbf16>
    %cst_20 = arith.constant 0.000000e+00 : bf16
    %45 = vector.broadcast %cst_20 : bf16 to vector<256x4xbf16>
    %46 = vector.shape_cast %18 : vector<256x1xi1> to vector<256x1xi1>
    %47 = vector.broadcast %46 : vector<256x1xi1> to vector<256x4xi1>
    %48 = arith.select %47, %44, %45 : vector<256x4xi1>, vector<256x4xbf16>
    %c12 = arith.constant 12 : index
    %c0_21 = arith.constant 0 : index
    %49 = vector.load %arg3[%c12, %c0_21] : memref<36x128xbf16, #tpu.memory_space<vmem>>, vector<4x128xbf16>
    %cst_22 = arith.constant dense<0.000000e+00> : vector<256x128xf32>
    %50 = tpu.matmul %48, %49, %cst_22 {dimension_numbers = #tpu.dot_dimension_numbers<[1], [0], [0], [1], [0, 0, 1, 1], [], []>} : vector<256x4xbf16>, vector<4x128xbf16>, vector<256x128xf32> -> vector<256x128xf32>
    %51 = arith.addf %42, %50 : vector<256x128xf32>
    %c0_23 = arith.constant 0 : index
    %c17 = arith.constant 17 : index
    %c0_24 = arith.constant 0 : index
    %52 = vector.load %arg2[%c0_23, %c17, %c0_24] : memref<1x290x4xbf16, #tpu.memory_space<vmem>>, vector<1x256x4xbf16>
    %53 = vector.shape_cast %52 : vector<1x256x4xbf16> to vector<256x4xbf16>
    %c16_25 = arith.constant 16 : index
    %c0_26 = arith.constant 0 : index
    %54 = vector.load %arg3[%c16_25, %c0_26] : memref<36x128xbf16, #tpu.memory_space<vmem>>, vector<4x128xbf16>
    %cst_27 = arith.constant dense<0.000000e+00> : vector<256x128xf32>
    %55 = tpu.matmul %53, %54, %cst_27 {dimension_numbers = #tpu.dot_dimension_numbers<[1], [0], [0], [1], [0, 0, 1, 1], [], []>} : vector<256x4xbf16>, vector<4x128xbf16>, vector<256x128xf32> -> vector<256x128xf32>
    %56 = arith.addf %51, %55 : vector<256x128xf32>
    %c0_28 = arith.constant 0 : index
    %c18 = arith.constant 18 : index
    %c0_29 = arith.constant 0 : index
    %57 = vector.load %arg2[%c0_28, %c18, %c0_29] : memref<1x290x4xbf16, #tpu.memory_space<vmem>>, vector<1x256x4xbf16>
    %58 = vector.shape_cast %57 : vector<1x256x4xbf16> to vector<256x4xbf16>
    %cst_30 = arith.constant 0.000000e+00 : bf16
    %59 = vector.broadcast %cst_30 : bf16 to vector<256x4xbf16>
    %60 = vector.shape_cast %20 : vector<256x1xi1> to vector<256x1xi1>
    %61 = vector.broadcast %60 : vector<256x1xi1> to vector<256x4xi1>
    %62 = arith.select %61, %58, %59 : vector<256x4xi1>, vector<256x4xbf16>
    %c20 = arith.constant 20 : index
    %c0_31 = arith.constant 0 : index
    %63 = vector.load %arg3[%c20, %c0_31] : memref<36x128xbf16, #tpu.memory_space<vmem>>, vector<4x128xbf16>
    %cst_32 = arith.constant dense<0.000000e+00> : vector<256x128xf32>
    %64 = tpu.matmul %62, %63, %cst_32 {dimension_numbers = #tpu.dot_dimension_numbers<[1], [0], [0], [1], [0, 0, 1, 1], [], []>} : vector<256x4xbf16>, vector<4x128xbf16>, vector<256x128xf32> -> vector<256x128xf32>
    %65 = arith.addf %56, %64 : vector<256x128xf32>
    %c0_33 = arith.constant 0 : index
    %c32 = arith.constant 32 : index
    %c0_34 = arith.constant 0 : index
    %66 = vector.load %arg2[%c0_33, %c32, %c0_34] : memref<1x290x4xbf16, #tpu.memory_space<vmem>>, vector<1x256x4xbf16>
    %67 = vector.shape_cast %66 : vector<1x256x4xbf16> to vector<256x4xbf16>
    %cst_35 = arith.constant 0.000000e+00 : bf16
    %68 = vector.broadcast %cst_35 : bf16 to vector<256x4xbf16>
    %69 = vector.shape_cast %18 : vector<256x1xi1> to vector<256x1xi1>
    %70 = vector.broadcast %69 : vector<256x1xi1> to vector<256x4xi1>
    %71 = arith.select %70, %67, %68 : vector<256x4xi1>, vector<256x4xbf16>
    %c24 = arith.constant 24 : index
    %c0_36 = arith.constant 0 : index
    %72 = vector.load %arg3[%c24, %c0_36] : memref<36x128xbf16, #tpu.memory_space<vmem>>, vector<4x128xbf16>
    %cst_37 = arith.constant dense<0.000000e+00> : vector<256x128xf32>
    %73 = tpu.matmul %71, %72, %cst_37 {dimension_numbers = #tpu.dot_dimension_numbers<[1], [0], [0], [1], [0, 0, 1, 1], [], []>} : vector<256x4xbf16>, vector<4x128xbf16>, vector<256x128xf32> -> vector<256x128xf32>
    %74 = arith.addf %65, %73 : vector<256x128xf32>
    %c0_38 = arith.constant 0 : index
    %c33 = arith.constant 33 : index
    %c0_39 = arith.constant 0 : index
    %75 = vector.load %arg2[%c0_38, %c33, %c0_39] : memref<1x290x4xbf16, #tpu.memory_space<vmem>>, vector<1x256x4xbf16>
    %76 = vector.shape_cast %75 : vector<1x256x4xbf16> to vector<256x4xbf16>
    %c28 = arith.constant 28 : index
    %c0_40 = arith.constant 0 : index
    %77 = vector.load %arg3[%c28, %c0_40] : memref<36x128xbf16, #tpu.memory_space<vmem>>, vector<4x128xbf16>
    %cst_41 = arith.constant dense<0.000000e+00> : vector<256x128xf32>
    %78 = tpu.matmul %76, %77, %cst_41 {dimension_numbers = #tpu.dot_dimension_numbers<[1], [0], [0], [1], [0, 0, 1, 1], [], []>} : vector<256x4xbf16>, vector<4x128xbf16>, vector<256x128xf32> -> vector<256x128xf32>
    %79 = arith.addf %74, %78 : vector<256x128xf32>
    %c0_42 = arith.constant 0 : index
    %c34 = arith.constant 34 : index
    %c0_43 = arith.constant 0 : index
    %80 = vector.load %arg2[%c0_42, %c34, %c0_43] : memref<1x290x4xbf16, #tpu.memory_space<vmem>>, vector<1x256x4xbf16>
    %81 = vector.shape_cast %80 : vector<1x256x4xbf16> to vector<256x4xbf16>
    %cst_44 = arith.constant 0.000000e+00 : bf16
    %82 = vector.broadcast %cst_44 : bf16 to vector<256x4xbf16>
    %83 = vector.shape_cast %20 : vector<256x1xi1> to vector<256x1xi1>
    %84 = vector.broadcast %83 : vector<256x1xi1> to vector<256x4xi1>
    %85 = arith.select %84, %81, %82 : vector<256x4xi1>, vector<256x4xbf16>
    %c32_45 = arith.constant 32 : index
    %c0_46 = arith.constant 0 : index
    %86 = vector.load %arg3[%c32_45, %c0_46] : memref<36x128xbf16, #tpu.memory_space<vmem>>, vector<4x128xbf16>
    %cst_47 = arith.constant dense<0.000000e+00> : vector<256x128xf32>
    %87 = tpu.matmul %85, %86, %cst_47 {dimension_numbers = #tpu.dot_dimension_numbers<[1], [0], [0], [1], [0, 0, 1, 1], [], []>} : vector<256x4xbf16>, vector<4x128xbf16>, vector<256x128xf32> -> vector<256x128xf32>
    %88 = arith.addf %79, %87 : vector<256x128xf32>
    %c0_48 = arith.constant 0 : index
    %c0_49 = arith.constant 0 : index
    %89 = vector.load %arg4[%c0_48, %c0_49] : memref<1x128xf32, #tpu.memory_space<vmem>>, vector<1x128xf32>
    %90 = vector.broadcast %89 : vector<1x128xf32> to vector<256x128xf32>
    %91 = arith.addf %88, %90 : vector<256x128xf32>
    %cst_50 = arith.constant 0.000000e+00 : f32
    %92 = vector.broadcast %cst_50 : f32 to vector<256x128xf32>
    %93 = arith.maximumf %91, %92 : vector<256x128xf32>
    %94 = arith.truncf %93 : vector<256x128xf32> to vector<256x128xbf16>
    %c0_51 = arith.constant 0 : index
    %c0_52 = arith.constant 0 : index
    %c0_53 = arith.constant 0 : index
    %95 = vector.load %arg5[%c0_51, %c0_52, %c0_53] : memref<1x256x128xbf16, #tpu.memory_space<vmem>>, vector<1x256x128xbf16>
    %96 = vector.shape_cast %95 : vector<1x256x128xbf16> to vector<256x128xbf16>
    %97 = vector.shape_cast %94 : vector<256x128xbf16> to vector<1x256x128xbf16>
    tpu.vector_store %arg5[%c0_51, %c0_52, %c0_53], %97 {strides = array<i32>} : memref<1x256x128xbf16, #tpu.memory_space<vmem>>, vector<1x256x128xbf16>,
    return
  }
  func.func @transform_0(%arg0: i32, %arg1: i32) -> (i32, i32, i32) {
    %c0_i32 = arith.constant 0 : i32
    %c0_i32_0 = arith.constant 0 : i32
    %c0_i32_1 = arith.constant 0 : i32
    return %arg0, %c0_i32, %c0_i32_0 : i32, i32, i32
  }
  func.func @transform_1(%arg0: i32, %arg1: i32) -> (i32, i32) {
    %c0_i32 = arith.constant 0 : i32
    %c0_i32_0 = arith.constant 0 : i32
    return %c0_i32, %arg1 : i32, i32
  }
  func.func @transform_2(%arg0: i32, %arg1: i32) -> (i32, i32) {
    %c0_i32 = arith.constant 0 : i32
    %c0_i32_0 = arith.constant 0 : i32
    return %c0_i32, %arg1 : i32, i32
  }
  func.func @transform_3(%arg0: i32, %arg1: i32) -> (i32, i32, i32) {
    %c0_i32 = arith.constant 0 : i32
    %c0_i32_0 = arith.constant 0 : i32
    return %arg0, %c0_i32, %arg1 : i32, i32, i32
  }
}

</mosaic_0001>

<bundles_post_ra>
// kernel: tpu_custom_call.1
= control target key start
LH: loop header
LB: loop body
LE: loop exit
PB: predicated region body
PF: predicated region fallthrough
CT: control target
= control target key end

     0   :  { %8 = vsyncpa [#allocation3], 0  ;;  %s8536_s0 = inlined_call_operand.vmem [shape: bf16[2,290,4], index: 0, kind: input, shape index: {}]   ;;  %s8537_s1 = inlined_call_operand.vmem [shape: bf16[36,128], index: 1, kind: input, shape index: {}]   ;;  %s8538_s2 = inlined_call_operand.vmem [shape: f32[1,128], index: 2, kind: input, shape index: {}]   ;;  %s8539_s3 = inlined_call_operand.hbm [shape: bf16[2,256,128], index: 3, kind: output, shape index: {}]  }
   0x1   :  { %10 = vsyncpa [#allocation3 + $0x1], 0  ;;  %s6619_s12 = smov 0   ;;  %s6621_s13 = smov 0  }
   0x2   :  { %s6623_s14 = smov 0   ;;  %s6625_s15 = smov 0  }
   0x3   :  { %s6627_s16 = smov 0   ;;  %s6629_s17 = smov 0  }
   0x4 LB: > { %s5153_s18 = sadd.s32 4294967295, %s6592_s17   ;;  %s5154_s19 = sadd.s32 4294967294, %s6592_s17   ;;  %s6592_s17 = sphi %s6629_s17, %s16_s17   ;;  %s6588_s16 = sphi %s6627_s16, %s9112_s16   ;;  %s6584_s15 = sphi %s6625_s15, %s9111_s15   ;;  %s6580_s14 = sphi %s6623_s14, %s9110_s14   ;;  %s6576_s13 = sphi %s6621_s13, %s9109_s13   ;;  %s6572_s12 = sphi %s6619_s12, %s9108_s12  }
   0x5   : > { %s28_s20 = sadd.s32 1, %s6588_s16  ;;  %s115_s21 = sadd.s32 1, %s6580_s14 }
   0x6   : > { %p30_p0 = scmp.ge.s32.totalorder %s28_s20, 2  ;;  %p125_p1 = scmp.ne.s32.totalorder %s6580_s14, %s6576_s13 }
   0x7   : > { %p126_p2 = scmp.eq.s32.totalorder %s5153_s18, 1  ;;  %p131_p3 = scmp.ne.s32.totalorder %s6576_s13, %s6572_s12 }
   0x8   : > { %s9114_s20 = smov (%p30_p0, %s28_s20), 0  ;;  %p132_p5 = scmp.eq.s32.totalorder %s5154_s19, 1 }
   0x9   : > { %p6659_p4 = por %p126_p2, %p125_p1  ;;  %s110_s23 = ssub.s32 %s6588_s16, %s9114_s20 }
   0xa   : > { %p5159_p6 = scmp.ge.s32.totalorder %s6592_s17, 1  ;;  %p113_p7 = scmp.eq.s32.totalorder %s110_s23, 0 }
   0xb   : > { %p6666_p8 = por %p132_p5, %p131_p3  ;;  %p171_p9 = scmp.lt.s32.totalorder %s6592_s17, 3 }
   0xc   : > { %s6672_s25 = scalar_select %p113_p7, %s6580_s14, %s115_s21  }
   0xd   : > { %p172_p10 = pnand %p5159_p6, %p171_p9 }
   0xf   : > { %175 = sbr.rel (%p172_p10) target bundleno = 601 (0x259), region = 32 }
  0x16   : > { %v6413_v0 = vld [vmem:[%s8537_s1] ss:$0 sps:$4 sm:$0xcc]   ;;  %vm8573_vm0 = vcmask 1041408   ;;  %v217_v1 = vlaneseq  ;;  %v2668_v2 = vld [vmem:[%s8537_s1 + $0x8] sm:$0x3] }
  0x17   : > { %p202_p11 = scmp.lt.s32.totalorder %s6584_s15, 1  ;;  %v1080_v3 = vrot.slane %v6413_v0, 2  ;;  %6347 = vmatprep.subr.msk.bf16.mxu0 %vm8573_vm0, %v2668_v2  ;;  %v6683_v4 = vsel %vm8573_vm0, %v2668_v2, 0  ;;  %v858_v6 = vld [vmem:[%s8537_s1] sm:$0x3]  ;;  %vm6594_vm1 = vmmov 1  }
  0x18   : > { %8674 = vst [vmem:[#allocation5_spill] sm:$0xff] %v6683_v4  ;;  %v6685_v5 = vshrl.u32 %v217_v1, 7  ;;  %5916 = vmatpush3.bf16.msra.mxu0 %v6683_v4  ;;  %vm6692_vm2 = vmpackc.low %vm6594_vm1, %vm6594_vm1  ;;  %v8675_v7 = vmov 0  ;;  %v6418_v8 = vld [vmem:[%s8537_s1 + $0x8] ss:$0 sps:$4 sm:$0xcc]  }
  0x19   : > { %s203_s5 = scalar_select %p202_p11, %s6584_s15, 1  ;;  %v8676_v7 = vsel %vm6692_vm2, 4294967295, %v8675_v7  ;;  %6343 = vmatprep.subr.msk.bf16.mxu1 %vm8573_vm0, %v1080_v3  ;;  %v1132_v9 = vsel %vm8573_vm0, %v1080_v3, 0  ;;  %v3282_v12 = vrot.slane %v6418_v8, 2  ;;  %vm8575_vm3 = vsmask.f32 7424 }
  0x1a   : > { %8677 = vst [vmem:[#allocation6_spill] sm:$0xff] %v8676_v7  ;;  %v220_v10 = vadd.s32 16, %v6685_v5  ;;  %v221_v11 = vadd.s32 24, %v6685_v5  ;;  %5780 = vmatpush3.bf16.msra.mxu1 %v1132_v9  ;;  %v223_v13 = vadd.s32 40, %v6685_v5  ;;  %v8541_v16 = vmov 0   ;;  %s199_s9 = sand.u32 1, %s6576_s13  }
  0x1b   : > { %s6353_s8 = smul.u32 148, %s203_s5  ;;  %6344 = vmatprep.subr.msk.bf16.mxu1 %vm8573_vm0, %v858_v6  ;;  %v1684_v17 = vsel %vm6692_vm2, 65537, %v8541_v16  ;;  %vm8579_vm4 = vcmask 31744   ;;  %6349 = vmatprep.subr.msk.bf16.mxu0 %vm8573_vm0, %v3282_v12  ;;  %v6715_v18 = vsel %vm8573_vm0, %v858_v6, 0  ;;  %v8680_v26 = vmov 0  ;;  %s5160_s10 = sshll.u32 %s199_s9, 7 }
  0x1c   : > { %v268_v14 = vand.u32 15, %v220_v10  ;;  %v275_v15 = vand.u32 15, %v221_v11  ;;  %v289_v19 = vand.u32 15, %v223_v13  ;;  %v6717_v20 = vrot.slane %v1684_v17, 7  ;;  %v6849_v28 = vld [vmem:[%s8537_s1 + $0x4] sm:$0x3] }
  0x1d   : > { %s6711_s11 = scalar_lea.vmem %s8536_s0, %s6353_s8  ;;  %vm1716_vm9 = vcmask 1040384   ;;  %vm1717_vm11 = vcmask 1044484   ;;  %v6751_v30 = vsel %vm8573_vm0, %v3282_v12, 0  ;;  %v6754_v31 = vadd.s32 8, %v6685_v5  ;;  %s5530_s18 = sshll.u32 %s6584_s15, 11 }
  0x1e   : > { %vm636_vm5 = vcmp.ne.s32.totalorder %v268_v14, 0  ;;  %v6720_v21 = vld [vmem:[%s6711_s11] sm:$0xf]  ;;  %v6723_v22 = vld [vmem:[%s6711_s11 + $0x4] sm:$0xf]  ;;  %vm6725_vm6 = vcmp.ne.s32.totalorder %v275_v15, 15  ;;  %vm6798_vm13 = vmor %vm1716_vm9, %vm1717_vm11  ;;  %s8482_s26 = scalar_lea.hbm %s8539_s3, %s5530_s18 }
  0x1f   : > { %v6730_v24 = vld [vmem:[%s6711_s11 + $0x8] sm:$0xf]  ;;  %v6733_v25 = vld [vmem:[%s6711_s11 + $0xc] sm:$0xf]  ;;  %vm6735_vm7 = vmpackc.low %vm636_vm5, %vm636_vm5  ;;  %v5162_v27 = vcombine.low %v6720_v21, %v6723_v22  ;;  %vm6741_vm8 = vcmp.ne.s32.totalorder %v289_v19, 15  ;;  %v6764_v36 = vrot.slane %v6717_v20, 4 }
  0x20   : > { %v8681_v26 = vsel %vm6735_vm7, 4294967295, %v8680_v26  ;;  %v5163_v29 = vcombine.low %v6730_v24, %v6733_v25  ;;  %vm1655_vm10 = vmpackc.low %vm6725_vm6, %vm6725_vm6  ;;  %v2635_v35 = vld [vmem:[%s6711_s11 + $0x8] sm:$0xf]  ;;  %v6770_v40 = vld [vmem:[%s6711_s11 + $0xc] sm:$0xf]  ;;  %v8687_v19 = vmov 0 }
  0x21   : > { %v946_v33 = vshrl.u32 %v5162_v27, 16  ;;  %v948_v34 = vshll.u32 %v5162_v27, 16  ;;  %vm1657_vm12 = vmpackc.low %vm6741_vm8, %vm6741_vm8  ;;  %v6773_v41 = vsel %vm1655_vm10, 65537, %v8541_v16  ;;  %v6776_v43 = vld [vmem:[%s6711_s11 + $0x10] sm:$0xf]  ;;  %v5294_v45 = vcombine.low %v2635_v35, %v6770_v40  ;;  %s8490_s15 = scalar_lea.sflag [#allocation3], %s199_s9 }
  0x22   : > { %v953_v38 = vshll.u32 %v5163_v29, 16  ;;  %v957_v39 = vshrl.u32 %v5163_v29, 16  ;;  %v6779_v44 = vld [vmem:[%s6711_s11 + $0x14] sm:$0xf]  ;;  %v6783_v46 = vsel %vm1657_vm12, 65537, %v8541_v16  ;;  %v8543_v51 = vrot.slane %v6773_v41, 7 }
  0x23   : > { %v950_v42 = vrot.slane %v948_v34, 1  ;;  %v5295_v48 = vcombine.low %v6776_v43, %v6779_v44  ;;  %v6788_v49 = vld [vmem:[%s6711_s11 + $0x10] sm:$0xf]  ;;  %v6791_v50 = vld [vmem:[%s6711_s11 + $0x14] sm:$0xf]  ;;  %v2753_v53 = vshrl.u32 %v5294_v45, 16 }
  0x24   : > { %v955_v47 = vrot.slane %v953_v38, 1  ;;  %v2755_v54 = vshll.u32 %v5294_v45, 16  ;;  %v5164_v55 = vcombine.low %v6788_v49, %v6791_v50  ;;  %v6803_v57 = vld [vmem:[%s6711_s11 + $0x18] sm:$0xf]  ;;  %v2640_v58 = vld [vmem:[%s6711_s11 + $0x1c] sm:$0xf] }
  0x25   : > { %v951_v52 = vor.u32 %v950_v42, %v946_v33  ;;  %v2760_v60 = vshll.u32 %v5295_v48, 16  ;;  %v2764_v61 = vshrl.u32 %v5295_v48, 16  ;;  %v1729_v62 = vrot.slane %v8543_v51, 4  ;;  %v6809_v63 = vld [vmem:[%s6711_s11 + $0x18] sm:$0xf]  ;;  %s6596_s28 = smov [#allocation2]  }
  0x26   : > { %v959_v59 = vor.u32 %v957_v39, %v955_v47  ;;  %v2757_v1 = vrot.slane %v2755_v54, 1  ;;  %v961_v2 = vshll.u32 %v5164_v55, 16  ;;  %v8540_v3 = vrot.slane %v6783_v46, 7  ;;  %v6814_v6 = vld [vmem:[%s6711_s11 + $0x1c] sm:$0xf]  ;;  %s6518_s29 = sshll.u32 %s6596_s28, 4  ;;  %s6519_s29 = int_to_ptr.vmem [resolvable:$false] %s6518_s29 }
  0x27   : > { %v956_v0 = vsel %vm8575_vm3, %v951_v52, %v955_v47  ;;  %v2762_v8 = vrot.slane %v2760_v60, 1  ;;  %v1731_v9 = vsel %vm6798_vm13, %v1729_v62, %v6717_v20  ;;  %v5296_v10 = vcombine.low %v6803_v57, %v2640_v58  ;;  %v6824_v12 = vld [vmem:[%s6711_s11 + $0x20] sm:$0xf]  ;;  %v6827_v13 = vld [vmem:[%s6711_s11 + $0x24] sm:$0xf]  ;;  %s6520_s30 = scalar_lea.vmem %s6519_s29, 4096 }
  0x28   : > { %5781 = vmatprep.mubr.msk.bf16.mxu1 %vm8579_vm4, %v956_v0  ;;  %v5165_v11 = vcombine.low %v6809_v63, %v6814_v6  ;;  %v2758_v14 = vor.u32 %v2757_v1, %v2753_v53  ;;  %v963_v15 = vrot.slane %v961_v2, 1  ;;  %v6834_v17 = vsel %vm6798_vm13, %v6764_v36, %v8540_v3  ;;  %v6841_v23 = vld [vmem:[%s6711_s11 + $0x20] sm:$0xf]  ;;  %v6844_v27 = vld [vmem:[%s6711_s11 + $0x24] sm:$0xf] }
  0x29   : > { %8686 = vst [vmem:[#allocation7_spill] sm:$0xff] %v6834_v17  ;;  %vm6836_vm14 = vcmp.ne.s16.totalorder %v1731_v9, 0  ;;  %v2766_v29 = vor.u32 %v2764_v61, %v2762_v8  ;;  %vm8562_vm15 = vcmp.ne.s16.totalorder %v6834_v17, 0  ;;  %v2768_v33 = vshll.u32 %v5296_v10, 16  ;;  %v6856_v35 = vld [vmem:[%s6711_s11 + $0x28] sm:$0xf] }
  0x2a   : > { %v8688_v19 = vsel %vm6836_vm14, 4294967295, %v8687_v19  ;;  %v2763_v38 = vsel %vm8575_vm3, %v2758_v14, %v2762_v8  ;;  %v964_v39 = vsel %vm8575_vm3, %v959_v59, %v963_v15  ;;  %v6862_v42 = vsel %vm8562_vm15, %v2640_v58, 0  ;;  %v6865_v47 = vld [vmem:[%s6711_s11 + $0x2c] sm:$0xf]  ;;  %v6868_v48 = vld [vmem:[%s6711_s11 + $0x28] sm:$0xf] }
  0x2b   : > { %8689 = vst [vmem:[#allocation8_spill] sm:$0xff] %v8688_v19  ;;  %v965_v45 = vshrl.u32 %v5164_v55, 16  ;;  %8690 = vst [vmem:[#allocation9_spill] sm:$0xff] %v6868_v48  ;;  %5917 = vmatprep.mubr.msk.bf16.mxu0 %vm8579_vm4, %v2763_v38  ;;  %5782 = vmatmul.mubr.msk.bf16.vlgmr.msra.gmra.mrb[0].mxu1 %vm8579_vm4, %v964_v39  ;;  %v2770_v52 = vrot.slane %v2768_v33, 1  ;;  %v969_v53 = vshll.u32 %v5165_v11, 16  ;;  %v5297_v54 = vcombine.low %v6824_v12, %v6827_v13 }
  0x2c   : > { %v2772_v59 = vshrl.u32 %v5296_v10, 16  ;;  %v6875_v58 = vld [vmem:[%s6711_s11 + $0x2c] sm:$0xf]  ;;  %5814 = vmatpush3.bf16.msra.mxu1 %v6715_v18  ;;  %v5166_v60 = vcombine.low %v6841_v23, %v6844_v27  ;;  %v973_v61 = vshrl.u32 %v5165_v11, 16  ;;  %v5298_v62 = vcombine.low %v6856_v35, %v6865_v47  ;;  %v6883_v0 = vld [vmem:[%s6711_s11 + $0x30] sm:$0xf] }
  0x2d   : > { %v967_v55 = vor.u32 %v965_v45, %v963_v15  ;;  %v6888_v1 = vld [vmem:[%s8537_s1 + $0xc] sm:$0x3]  ;;  %v2771_v2 = vsel %vm8575_vm3, %v2766_v29, %v2770_v52  ;;  %v971_v8 = vrot.slane %v969_v53, 1  ;;  %v2776_v9 = vshll.u32 %v5297_v54, 16  ;;  %v6892_v10 = vld [vmem:[%s6711_s11 + $0x34] sm:$0xf]  ;;  %6345 = vmatprep.subr.msk.bf16.mxu1 %vm8573_vm0, %v6849_v28 }
  0x2e   : > { %v2774_v18 = vor.u32 %v2772_v59, %v2770_v52  ;;  %v6895_v14 = vld [vmem:[%s6711_s11 + $0x30] sm:$0xf]  ;;  %5918 = vmatmul.mubr.msk.bf16.vlgmr.msra.gmra.mrb[0].mxu0 %vm8579_vm4, %v2771_v2  ;;  %v977_v11 = vshll.u32 %v5166_v60, 16  ;;  %v2780_v15 = vshrl.u32 %v5297_v54, 16  ;;  %v2784_v33 = vshll.u32 %v5298_v62, 16 }
  0x2f   : > { %8691 = vst [vmem:[#allocation10_spill] sm:$0xff] %v6895_v14  ;;  %v5167_v38 = vcombine.low %v6868_v48, %v6875_v58  ;;  %v6903_v39 = vld [vmem:[%s6711_s11 + $0x34] sm:$0xf]  ;;  %5950 = vmatpush3.bf16.msra.mxu0 %v6751_v30  ;;  %v972_v29 = vsel %vm8575_vm3, %v967_v55, %v971_v8  ;;  %v2778_v45 = vrot.slane %v2776_v9, 1  ;;  %v975_v52 = vor.u32 %v973_v61, %v971_v8  ;;  %v6916_v61 = vld [vmem:[%s6711_s11 + $0x38] sm:$0xf] }
  0x30   : > { %8692 = vst [vmem:[#allocation11_spill] sm:$0xff] %v6903_v39  ;;  %v981_v53 = vshrl.u32 %v5166_v60, 16  ;;  %5785 = vmatprep.mubr.msk.bf16.mxu1 %vm8579_vm4, %v972_v29  ;;  %v979_v59 = vrot.slane %v977_v11, 1  ;;  %v2786_v54 = vrot.slane %v2784_v33, 1  ;;  %v5299_v3 = vcombine.low %v6883_v0, %v6892_v10  ;;  %6350 = vmatprep.subr.msk.bf16.mxu0 %vm8573_vm0, %v6888_v1  ;;  %v6919_v8 = vld [vmem:[%s6711_s11 + $0x3c] sm:$0xf] }
  0x31   : > { %v985_v2 = vshll.u32 %v5167_v38, 16  ;;  %v2779_v30 = vsel %vm8575_vm3, %v2774_v18, %v2778_v45  ;;  %v2782_v34 = vor.u32 %v2780_v15, %v2778_v45  ;;  %v2788_v55 = vshrl.u32 %v5298_v62, 16  ;;  %v6924_v15 = vld [vmem:[%s6711_s11 + $0x38] sm:$0xf]  ;;  %v6927_v62 = vld [vmem:[%s6711_s11 + $0x3c] sm:$0xf] }
  0x32   : > { %v5168_v60 = vcombine.low %v6895_v14, %v6903_v39  ;;  %5921 = vmatprep.mubr.msk.bf16.mxu0 %vm8579_vm4, %v2779_v30  ;;  %v980_v9 = vsel %vm8575_vm3, %v975_v52, %v979_v59  ;;  %v983_v11 = vor.u32 %v981_v53, %v979_v59  ;;  %v2792_v18 = vshll.u32 %v5299_v3, 16  ;;  %8693 = vst [vmem:[#allocation12_spill] sm:$0xff] %v6924_v15  ;;  %v6932_v32 = vld [vmem:[%s6711_s11 + $0x40] sm:$0xf]  ;;  %v6935_v52 = vld [vmem:[%s6711_s11 + $0x44] sm:$0xf] }
  0x33   : > { %v987_v33 = vrot.slane %v985_v2, 1  ;;  %8694 = vst [vmem:[#allocation13_spill] sm:$0xff] %v6927_v62  ;;  %5786 = vmatmul.mubr.msk.bf16.gmra.mrb[4].mxu1 %vm8579_vm4, %v980_v9  ;;  %v2787_v29 = vsel %vm8575_vm3, %v2782_v34, %v2786_v54  ;;  %v2790_v45 = vor.u32 %v2788_v55, %v2786_v54  ;;  %v989_v16 = vshrl.u32 %v5167_v38, 16  ;;  %v6941_v9 = vld [vmem:[%s6711_s11 + $0x40] sm:$0xf] }
  0x34   : > { %v993_v30 = vshll.u32 %v5168_v60, 16  ;;  %v2794_v59 = vrot.slane %v2792_v18, 1  ;;  %v5300_v2 = vcombine.low %v6916_v61, %v6919_v8  ;;  %v2796_v37 = vshrl.u32 %v5299_v3, 16  ;;  %8695 = vst [vmem:[#allocation14_spill] sm:$0xff] %v6941_v9  ;;  %v6944_v34 = vld [vmem:[%s6711_s11 + $0x44] sm:$0xf] }
  0x35   : > { %v988_v53 = vsel %vm8575_vm3, %v983_v11, %v987_v33  ;;  %v991_v38 = vor.u32 %v989_v16, %v987_v33  ;;  %v5169_v55 = vcombine.low %v6924_v15, %v6927_v62  ;;  %v997_v51 = vshrl.u32 %v5168_v60, 16  ;;  %v6950_v11 = vld [vmem:[%s6711_s11 + $0x48] sm:$0xf]  ;;  %v6953_v18 = vld [vmem:[%s6711_s11 + $0x4c] sm:$0xf] }
  0x36   : > { %5789 = vmatprep.mubr.msk.bf16.mxu1 %vm8579_vm4, %v988_v53  ;;  %v995_v54 = vrot.slane %v993_v30, 1  ;;  %5922 = vmatmul.mubr.msk.bf16.gmra.mrb[4].mxu0 %vm8579_vm4, %v2787_v29  ;;  %v2795_v3 = vsel %vm8575_vm3, %v2790_v45, %v2794_v59  ;;  %v2798_v4 = vor.u32 %v2796_v37, %v2794_v59  ;;  %v2800_v17 = vshll.u32 %v5300_v2, 16  ;;  %v6960_v53 = vld [vmem:[%s6711_s11 + $0x48] sm:$0xf]  ;;  %v6963_v16 = vld [vmem:[%s6711_s11 + $0x4c] sm:$0xf] }
  0x37   : > { %v5301_v14 = vcombine.low %v6932_v32, %v6935_v52  ;;  %8696 = vst [vmem:[#allocation15_spill] sm:$0xff] %v6960_v53  ;;  %5925 = vmatprep.mubr.msk.bf16.mxu0 %vm8579_vm4, %v2795_v3  ;;  %v1001_v30 = vshll.u32 %v5169_v55, 16  ;;  %v2804_v15 = vshrl.u32 %v5300_v2, 16  ;;  %v5170_v37 = vcombine.low %v6941_v9, %v6944_v34  ;;  %v7075_v19 = vld [vmem:[%s6711_s11 + $0x68] sm:$0xf] }
  0x38   : > { %v996_v60 = vsel %vm8575_vm3, %v991_v38, %v995_v54  ;;  %v999_v33 = vor.u32 %v997_v51, %v995_v54  ;;  %v2802_v62 = vrot.slane %v2800_v17, 1  ;;  %v1005_v45 = vshrl.u32 %v5169_v55, 16  ;;  %v3528_v56 = vld [vmem:[%s6711_s11 + $0x14] sm:$0xf] }
  0x39   : > { %v2808_v29 = vshll.u32 %v5301_v14, 16  ;;  %v1003_v59 = vrot.slane %v1001_v30, 1  ;;  %v6971_v48 = vcombine.low %v6950_v11, %v6953_v18  ;;  %v2812_v39 = vshrl.u32 %v5301_v14, 16 }
  0x3a   : > { %v5171_v3 = vcombine.low %v6960_v53, %v6963_v16  ;;  %v2803_v51 = vsel %vm8575_vm3, %v2798_v4, %v2802_v62  ;;  %v2806_v2 = vor.u32 %v2804_v15, %v2802_v62  ;;  %v1009_v38 = vshll.u32 %v5170_v37, 16  ;;  %v3128_v62 = vld [vmem:[%s6711_s11 + $0x8] sm:$0xe] }
  0x3b   : > { %8697 = vst [vmem:[#allocation16_spill] sm:$0xff] %v6971_v48  ;;  %v2810_v17 = vrot.slane %v2808_v29, 1  ;;  %5790 = vmatmul.mubr.msk.bf16.gmra.mrb[8].mxu1 %vm8579_vm4, %v996_v60  ;;  %v1004_v54 = vsel %vm8575_vm3, %v999_v33, %v1003_v59  ;;  %v1007_v55 = vor.u32 %v1005_v45, %v1003_v59  ;;  %v2816_v30 = vshll.u32 %v6971_v48, 16  ;;  %v6983_v29 = vld [vmem:[%s6711_s11 + $0x50] sm:$0xf] }
  0x3c   : > { %v1013_v9 = vshrl.u32 %v5170_v37, 16  ;;  %5793 = vmatprep.mubr.msk.bf16.mxu1 %vm8579_vm4, %v1004_v54  ;;  %v1011_v53 = vrot.slane %v1009_v38, 1  ;;  %v1017_v15 = vshll.u32 %v5171_v3, 16  ;;  %v261_v33 = vand.u32 15, %v6754_v31  ;;  %v6997_v59 = vld [vmem:[%s6711_s11 + $0x54] sm:$0xf] }
  0x3d   : > { %v2811_v14 = vsel %vm8575_vm3, %v2806_v2, %v2810_v17  ;;  %v2814_v4 = vor.u32 %v2812_v39, %v2810_v17  ;;  %v6985_v60 = vrot.slane %v2816_v30, 1  ;;  %v8699_v45 = vrot.slane %v6773_v41, 7  ;;  %v7012_v38 = vld [vmem:[%s6711_s11 + $0x58] sm:$0xf]  ;;  %v7015_v54 = vld [vmem:[%s6711_s11 + $0x5c] sm:$0xf] }
  0x3e   : > { %vm8571_vm1 = vcmp.ne.s16.totalorder %v6717_v20, 0  ;;  %v8701_v39 = vsel %vm6692_vm2, %v6733_v25, 0  ;;  %v8702_v2 = vsel %vm6735_vm7, %v6730_v24, 0  ;;  %5926 = vmatmul.mubr.msk.bf16.gmra.mrb[8].mxu0 %vm8579_vm4, %v2803_v51  ;;  %v1015_v41 = vor.u32 %v1013_v9, %v1011_v53 }
  0x3f   : > { %8698 = vst [vmem:[#allocation17_spill] sm:$0xff] %v6985_v60  ;;  %v6993_v37 = vsel %vm6798_vm13, %v6764_v36, %v8699_v45  ;;  %v7007_v31 = vcombine.low %v8702_v2, %v8701_v39  ;;  %v1019_v17 = vrot.slane %v1017_v15, 1  ;;  %5929 = vmatprep.mubr.msk.bf16.mxu0 %vm8579_vm4, %v2811_v14  ;;  %v1012_v25 = vsel %vm8575_vm3, %v1007_v55, %v1011_v53  ;;  %v7047_v39 = vld [vmem:[%s6711_s11 + $0x64] sm:$0xf] }
  0x40   : > { %8700 = vst [vmem:[#allocation18_spill] sm:$0xff] %v6993_v37  ;;  %vm8563_vm5 = vcmp.ne.s16.totalorder %v6993_v37, 0  ;;  %v2819_v24 = vsel %vm8575_vm3, %v2814_v4, %v6985_v60  ;;  %vm667_vm6 = vcmp.ne.s32.totalorder %v261_v33, 15  ;;  %v3129_v9 = vsel %vm8571_vm1, %v3128_v62, 0  ;;  %v7044_v33 = vld [vmem:[%s6711_s11 + $0x60] sm:$0xf] }
  0x41   : > { %v1020_v51 = vsel %vm8575_vm3, %v1015_v41, %v1019_v17  ;;  %vm1653_vm8 = vmpackc.low %vm667_vm6, %vm667_vm6  ;;  %v3132_v30 = vsel %vm8563_vm5, %v6779_v44, 0  ;;  %v5172_v15 = vcombine.low %v6983_v29, %v6997_v59  ;;  %v1021_v14 = vshrl.u32 %v5171_v3, 16 }
  0x42   : > { %v8703_v45 = vmov 0   ;;  %v8704_v55 = vsel %vm6836_vm14, %v6803_v57, 0  ;;  %v7039_v62 = vsel %vm8573_vm0, %v6888_v1, 0  ;;  %v5173_v44 = vcombine.low %v7012_v38, %v7015_v54 }
  0x43   : > { %v1685_v53 = vsel %vm1653_vm8, 65537, %v8703_v45  ;;  %v7035_v4 = vcombine.low %v8704_v55, %v6862_v42  ;;  %vm8577_vm9 = vcmask 1046528   ;;  %v1023_v2 = vor.u32 %v1021_v14, %v1019_v17  ;;  %5794 = vmatmul.mubr.msk.bf16.gmra.mrb[12].mxu1 %vm8579_vm4, %v1012_v25 }
  0x44   : > { %v1721_v3 = vrot.slane %v1685_v53, 7  ;;  %v1025_v41 = vshll.u32 %v5172_v15, 16  ;;  %v1029_v60 = vshrl.u32 %v5172_v15, 16  ;;  %v1033_v42 = vshll.u32 %v5173_v44, 16  ;;  %5797 = vmatprep.mubr.msk.bf16.mxu1 %vm8579_vm4, %v1020_v51 }
  0x45   : > { %v225_v1 = vadd.s32 56, %v6685_v5  ;;  %v8705_v55 = vrot.slane %v6783_v46, 7  ;;  %v5174_v25 = vcombine.low %v7044_v33, %v7047_v39  ;;  %v227_v37 = vadd.s32 72, %v6685_v5 }
  0x46   : > { %v7058_v53 = vsel %vm6798_vm13, %v6764_v36, %v1721_v3  ;;  %v1723_v17 = vrot.slane %v1721_v3, 4  ;;  %v1027_v15 = vrot.slane %v1025_v41, 1  ;;  %v1035_v14 = vrot.slane %v1033_v42, 1  ;;  %5930 = vmatmul.mubr.msk.bf16.gmra.mrb[12].mxu0 %vm8579_vm4, %v2819_v24 }
  0x47   : > { %v1735_v48 = vrot.slane %v8705_v55, 4  ;;  %vm8568_vm10 = vcmp.ne.s16.totalorder %v7058_v53, 0  ;;  %v303_v57 = vand.u32 15, %v225_v1  ;;  %v8708_v24 = vmov 0  ;;  %v7086_v1 = vld [vmem:[%s6711_s11 + $0x6c] sm:$0xf] }
  0x48   : > { %v1725_v51 = vsel %vm6798_vm13, %v1723_v17, %v6717_v20  ;;  %v3130_v3 = vsel %vm8568_vm10, %v6770_v40, 0  ;;  %v1028_v41 = vsel %vm8575_vm3, %v1023_v2, %v1027_v15  ;;  %v1031_v55 = vor.u32 %v1029_v60, %v1027_v15 }
  0x49   : > { %v1737_v46 = vsel %vm6798_vm13, %v1735_v48, %v6717_v20  ;;  %vm7077_vm11 = vcmp.ne.s16.totalorder %v1725_v51, 0  ;;  %v5327_v48 = vcombine.low %v3129_v9, %v3130_v3  ;;  %vm673_vm12 = vcmp.ne.s32.totalorder %v303_v57, 15 }
  0x4a   : > { %vm7081_vm6 = vcmp.ne.s16.totalorder %v1737_v46, 0  ;;  %v3131_v40 = vsel %vm7077_vm11, %v6776_v43, 0  ;;  %v1036_v60 = vsel %vm8575_vm3, %v1031_v55, %v1035_v14  ;;  %vm1659_vm8 = vmpackc.low %vm673_vm12, %vm673_vm12  ;;  %v1037_v17 = vshrl.u32 %v5173_v44, 16 }
  0x4b   : > { %v8709_v24 = vsel %vm7081_vm6, 4294967295, %v8708_v24  ;;  %v3135_v2 = vsel %vm7081_vm6, %v6824_v12, 0  ;;  %v5328_v9 = vcombine.low %v3131_v40, %v3132_v30  ;;  %v3246_v57 = vrot.slane %v5327_v48, 1  ;;  %5798 = vmatmul.mubr.msk.bf16.gmra.mrb[16].mxu1 %vm8579_vm4, %v1028_v41 }
  0x4c   : > { %8710 = vst [vmem:[#allocation19_spill] sm:$0xff] %v8709_v24  ;;  %v1691_v15 = vsel %vm1659_vm8, 65537, %v8703_v45  ;;  %v1041_v46 = vshll.u32 %v5174_v25, 16  ;;  %v1039_v3 = vor.u32 %v1037_v17, %v1035_v14  ;;  %v5175_v43 = vcombine.low %v7075_v19, %v7086_v1  ;;  %5801 = vmatprep.mubr.msk.bf16.mxu1 %vm8579_vm4, %v1036_v60  ;;  %v7114_v60 = vld [vmem:[%s6711_s11 + $0x70] sm:$0xf] }
  0x4d   : > { %v1739_v51 = vrot.slane %v1691_v15, 7  ;;  %v3247_v55 = vrot.slane %v5328_v9, 1  ;;  %v1045_v12 = vshrl.u32 %v5174_v25, 16  ;;  %v229_v30 = vadd.s32 88, %v6685_v5  ;;  %v7117_v15 = vld [vmem:[%s6711_s11 + $0x74] sm:$0xf] }
  0x4e   : > { %v1043_v24 = vrot.slane %v1041_v46, 1  ;;  %v317_v14 = vand.u32 15, %v227_v37  ;;  %v1049_v40 = vshll.u32 %v5175_v43, 16  ;;  %v8712_v9 = vrot.slane %v7035_v4, 1 }
  0x4f   : > { %v7105_v44 = vsel %vm6798_vm13, %v6764_v36, %v1739_v51  ;;  %v1741_v48 = vrot.slane %v1739_v51, 4  ;;  %v3248_v17 = vsel %vm8577_vm9, %v3246_v57, %v3247_v55  ;;  %v7127_v51 = vld [vmem:[%s6711_s11 + $0x78] sm:$0xf]  ;;  %vm8796_vm14 = vcmask 31744  }
  0x50   : > { %8711 = vst [vmem:[#allocation20_spill] sm:$0xff] %v7105_v44  ;;  %v3250_v41 = vsel %vm8577_vm9, %v3247_v55, %v8712_v9  ;;  %vm8566_vm12 = vcmp.ne.s16.totalorder %v7105_v44, 0  ;;  %v1044_v25 = vsel %vm8575_vm3, %v1039_v3, %v1043_v24  ;;  %5951 = vmatprep.mubr.msk.bf16.mxu0 %vm8579_vm4, %v3248_v17  ;;  %vm675_vm8 = vcmp.ne.s32.totalorder %v317_v14, 15  ;;  %v7135_v44 = vld [vmem:[%s6711_s11 + $0x7c] sm:$0xf] }
  0x51   : > { %v3136_v37 = vsel %vm8566_vm12, %v6827_v13, 0  ;;  %v1743_v57 = vsel %vm6798_vm13, %v1741_v48, %v6717_v20  ;;  %v1047_v46 = vor.u32 %v1045_v12, %v1043_v24  ;;  %5952 = vmatmul.mubr.msk.bf16.vlgmr.msra.gmra.mrb[0].mxu0 %vm8579_vm4, %v3250_v41  ;;  %vm1661_vm15 = vmpackc.low %vm675_vm8, %vm675_vm8  ;;  %v8713_v55 = vmov 0 }
  0x52   : > { %v5330_v3 = vcombine.low %v3135_v2, %v3136_v37  ;;  %vm7130_vm5 = vcmp.ne.s16.totalorder %v1743_v57, 0  ;;  %v1051_v17 = vrot.slane %v1049_v40, 1  ;;  %v331_v9 = vand.u32 15, %v229_v30  ;;  %5984 = vmatpush3.bf16.msra.mxu0 %v7039_v62 }
  0x53   : > { %v8714_v55 = vsel %vm7130_vm5, 4294967295, %v8713_v55  ;;  %v1693_v13 = vsel %vm1661_vm15, 65537, %v8703_v45  ;;  %v3137_v24 = vsel %vm7130_vm5, %v6856_v35, 0  ;;  %v5176_v2 = vcombine.low %v7114_v60, %v7117_v15  ;;  %5802 = vmatmul.mubr.msk.bf16.gmra.mrb[20].mxu1 %vm8579_vm4, %v1044_v25 }
  0x54   : > { %v1053_v12 = vshrl.u32 %v5175_v43, 16  ;;  %v3251_v14 = vrot.slane %v5330_v3, 1  ;;  %v1745_v48 = vrot.slane %v1693_v13, 7  ;;  %v1052_v41 = vsel %vm8575_vm3, %v1047_v46, %v1051_v17 }
  0x55   : > { %vm677_vm8 = vcmp.ne.s32.totalorder %v331_v9, 15  ;;  %v1057_v40 = vshll.u32 %v5176_v2, 16  ;;  %v231_v62 = vadd.s32 104, %v6685_v5  ;;  %v5177_v37 = vcombine.low %v7127_v51, %v7135_v44  ;;  %5805 = vmatprep.mubr.msk.bf16.mxu1 %vm8579_vm4, %v1052_v41 }
  0x56   : > { %vm1663_vm12 = vmpackc.low %vm677_vm8, %vm677_vm8  ;;  %v1055_v30 = vor.u32 %v1053_v12, %v1051_v17  ;;  %v8715_v57 = vrot.slane %v7035_v4, 1  ;;  %v7155_v43 = vsel %vm6798_vm13, %v6764_v36, %v1745_v48  ;;  %v1747_v3 = vrot.slane %v1745_v48, 4 }
  0x57   : > { %8716 = vst [vmem:[#allocation21_spill] sm:$0xff] %v7155_v43  ;;  %v1695_v46 = vsel %vm1663_vm12, 65537, %v8703_v45  ;;  %vm8567_vm15 = vcmp.ne.s16.totalorder %v7155_v43, 0  ;;  %v1059_v4 = vrot.slane %v1057_v40, 1  ;;  %v345_v9 = vand.u32 15, %v231_v62 }
  0x58   : > { %v3252_v35 = vsel %vm8577_vm9, %v8715_v57, %v3251_v14  ;;  %v1751_v17 = vrot.slane %v1695_v46, 7  ;;  %v3138_v25 = vsel %vm8567_vm15, %v6865_v47, 0  ;;  %v1749_v13 = vsel %vm6798_vm13, %v1747_v3, %v6717_v20 }
  0x59   : > { %5955 = vmatprep.mubr.msk.bf16.mxu0 %vm8579_vm4, %v3252_v35  ;;  %v1061_v12 = vshrl.u32 %v5176_v2, 16  ;;  %v1065_v48 = vshll.u32 %v5177_v37, 16  ;;  %v5331_v57 = vcombine.low %v3137_v24, %v3138_v25  ;;  %vm7172_vm12 = vcmp.ne.s16.totalorder %v1749_v13, 0  ;;  %v859_v25 = vld [vmem:[%s6711_s11 + $0x80] sm:$0x1] }
  0x5a   : > { %v7170_v35 = vsel %vm6798_vm13, %v6764_v36, %v1751_v17  ;;  %v8717_v41 = vmov 0  ;;  %v1060_v40 = vsel %vm8575_vm3, %v1055_v30, %v1059_v4  ;;  %v3139_v47 = vsel %vm7172_vm12, %v6883_v0, 0 }
  0x5b   : > { %v8718_v41 = vsel %vm7172_vm12, 4294967295, %v8717_v41  ;;  %vm8572_vm8 = vcmp.ne.s16.totalorder %v7170_v35, 0  ;;  %vm679_vm15 = vcmp.ne.s32.totalorder %v345_v9, 15  ;;  %v1753_v2 = vrot.slane %v1751_v17, 4  ;;  %5806 = vmatmul.mubr.msk.bf16.gmra.mrb[24].mxu1 %vm8579_vm4, %v1060_v40 }
  0x5c   : > { %v3253_v24 = vrot.slane %v5331_v57, 1  ;;  %v3140_v62 = vsel %vm8572_vm8, %v6892_v10, 0  ;;  %vm1665_vm10 = vmpackc.low %vm679_vm15, %vm679_vm15  ;;  %v1063_v46 = vor.u32 %v1061_v12, %v1059_v4  ;;  %v1067_v3 = vrot.slane %v1065_v48, 1 }
  0x5d   : > { %v5332_v13 = vcombine.low %v3139_v47, %v3140_v62  ;;  %v1697_v30 = vsel %vm1665_vm10, 65537, %v8703_v45  ;;  %v1755_v43 = vsel %vm6798_vm13, %v1753_v2, %v6717_v20  ;;  %v233_v0 = vadd.s32 120, %v6685_v5 }
  0x5e   : > { %v3254_v17 = vsel %vm8577_vm9, %v3251_v14, %v3253_v24  ;;  %v1757_v9 = vrot.slane %v1697_v30, 7  ;;  %vm7191_vm1 = vcmp.ne.s16.totalorder %v1755_v43, 0  ;;  %v8719_v57 = vmov 0 }
  0x5f   : > { %v8720_v57 = vsel %vm7191_vm1, 4294967295, %v8719_v57  ;;  %v1068_v10 = vsel %vm8575_vm3, %v1063_v46, %v1067_v3  ;;  %5956 = vmatmul.mubr.msk.bf16.gmra.mrb[4].mxu0 %vm8579_vm4, %v3254_v17  ;;  %v3255_v4 = vrot.slane %v5332_v13, 1  ;;  %v3141_v12 = vsel %vm7191_vm1, %v6916_v61, 0 }
  0x60   : > { %v359_v48 = vand.u32 15, %v233_v0  ;;  %v5178_v47 = vcombine.low %v859_v25, %v859_v25  ;;  %v7204_v14 = vsel %vm6798_vm13, %v6764_v36, %v1757_v9  ;;  %5809 = vmatprep.mubr.msk.bf16.mxu1 %vm8579_vm4, %v1068_v10  ;;  %v1759_v43 = vrot.slane %v1757_v9, 4 }
  0x61   : > { %v1069_v2 = vshrl.u32 %v5177_v37, 16  ;;  %v235_v62 = vadd.s32 136, %v6685_v5  ;;  %v3256_v46 = vsel %vm8577_vm9, %v3253_v24, %v3255_v4  ;;  %vm8574_vm10 = vcmp.ne.s16.totalorder %v7204_v14, 0 }
  0x62   : > { %vm681_vm15 = vcmp.ne.s32.totalorder %v359_v48, 15  ;;  %v1073_v40 = vshll.u32 %v5178_v47, 16  ;;  %5959 = vmatprep.mubr.msk.bf16.mxu0 %vm8579_vm4, %v3256_v46  ;;  %v3142_v61 = vsel %vm8574_vm10, %v6919_v8, 0  ;;  %v1761_v25 = vsel %vm6798_vm13, %v1759_v43, %v6717_v20 }
  0x63   : > { %vm1667_vm8 = vmpackc.low %vm681_vm15, %vm681_vm15  ;;  %v1071_v37 = vor.u32 %v1069_v2, %v1067_v3  ;;  %v373_v13 = vand.u32 15, %v235_v62  ;;  %v5333_v30 = vcombine.low %v3141_v12, %v3142_v61  ;;  %vm7218_vm0 = vcmp.ne.s16.totalorder %v1761_v25, 0 }
  0x64   : > { %v1699_v24 = vsel %vm1667_vm8, 65537, %v8703_v45  ;;  %v8721_v0 = vmov 0  ;;  %v1075_v17 = vrot.slane %v1073_v40, 1  ;;  %v3143_v8 = vsel %vm7218_vm0, %v6932_v32, 0 }
  0x65   : > { %v8722_v0 = vsel %vm7218_vm0, 4294967295, %v8721_v0  ;;  %v1763_v9 = vrot.slane %v1699_v24, 7  ;;  %vm683_vm15 = vcmp.ne.s32.totalorder %v373_v13, 15  ;;  %v254_v10 = vand.u32 15, %v6685_v5 }
  0x66   : > { %v3257_v48 = vrot.slane %v5333_v30, 1  ;;  %v1076_v3 = vsel %vm8575_vm3, %v1071_v37, %v1075_v17  ;;  %vm1669_vm10 = vmpackc.low %vm683_vm15, %vm683_vm15  ;;  %v827_v12 = vsel %vm6692_vm2, %v6723_v22, 0  ;;  %v237_v47 = vadd.s32 152, %v6685_v5  ;;  %v7266_v17 = vld [vmem:[%s6711_s11 + $0x58] sm:$0xf] }
  0x67   : > { %v7234_v43 = vsel %vm6798_vm13, %v6764_v36, %v1763_v9  ;;  %v1701_v32 = vsel %vm1669_vm10, 65537, %v8703_v45  ;;  %v1765_v2 = vrot.slane %v1763_v9, 4  ;;  %vm634_vm8 = vcmp.ne.s32.totalorder %v254_v10, 0  ;;  %5810 = vmatmul.mubr.msk.bf16.gmra.mrb[28].mxu1 %vm8579_vm4, %v1076_v3  ;;  %v2656_v9 = vld [vmem:[%s6711_s11 + $0x5c] sm:$0xf] }
  0x68   : > { %v3258_v62 = vsel %vm8577_vm9, %v3255_v4, %v3257_v48  ;;  %vm8576_vm15 = vcmp.ne.s16.totalorder %v7234_v43, 0  ;;  %v1769_v46 = vrot.slane %v1701_v32, 7  ;;  %vm7240_vm3 = vmpackc.low %vm634_vm8, %vm634_vm8  ;;  %v8723_v22 = vmov 0  ;;  %v2653_v3 = vld [vmem:[%s6711_s11 + $0x50] sm:$0xf] }
  0x69   : > { %v8724_v22 = vsel %vm7240_vm3, 4294967295, %v8723_v22  ;;  %v387_v40 = vand.u32 15, %v237_v47  ;;  %5960 = vmatmul.mubr.msk.bf16.gmra.mrb[8].mxu0 %vm8579_vm4, %v3258_v62  ;;  %v3144_v61 = vsel %vm8576_vm15, %v6935_v52, 0  ;;  %v1767_v4 = vsel %vm6798_vm13, %v1765_v2, %v6717_v20 }
  0x6a   : > { %8725 = vst [vmem:[#allocation22_spill] sm:$0xff] %v8724_v22  ;;  %v826_v25 = vsel %vm7240_vm3, %v6720_v21, 0  ;;  %vm8726_vm10 = vcmask 1041408   ;;  %v5334_v13 = vcombine.low %v3143_v8, %v3144_v61  ;;  %v7259_v30 = vsel %vm6798_vm13, %v6764_v36, %v1769_v46 }
  0x6b   : > { %v2047_v37 = vsel %vm8726_vm10, %v6849_v28, 0  ;;  %8727 = vst [vmem:[#allocation23_spill] sm:$0xff] %v7259_v30  ;;  %vm7261_vm8 = vcmp.ne.s16.totalorder %v1767_v4, 0  ;;  %v8728_v52 = vmov 0  ;;  %v5196_v24 = vcombine.low %v826_v25, %v827_v12  ;;  %v2654_v25 = vld [vmem:[%s6711_s11 + $0x54] sm:$0xf] }
  0x6c   : > { %v8729_v52 = vsel %vm7261_vm8, 4294967295, %v8728_v52  ;;  %vm8578_vm15 = vcmp.ne.s16.totalorder %v7259_v30, 0  ;;  %v3145_v21 = vsel %vm7261_vm8, %v6950_v11, 0  ;;  %vm685_vm10 = vcmp.ne.s32.totalorder %v387_v40, 15 }
  0x6d   : > { %8730 = vst [vmem:[#allocation24_spill] sm:$0xff] %v8729_v52  ;;  %v1771_v28 = vrot.slane %v1769_v46, 4  ;;  %v3259_v8 = vrot.slane %v5334_v13, 1  ;;  %v3146_v10 = vsel %vm8578_vm15, %v6953_v18, 0  ;;  %5815 = vmatprep.mubr.msk.bf16.mxu1 %vm8579_vm4, %v5196_v24  ;;  %vm1671_vm9 = vmpackc.low %vm685_vm10, %vm685_vm10  ;;  %v239_v12 = vadd.s32 168, %v6685_v5 }
  0x6e   : > { %v7280_v47 = vcombine.low %v7266_v17, %v2656_v9  ;;  %v5335_v32 = vcombine.low %v3145_v21, %v3146_v10  ;;  %v1703_v11 = vsel %vm1671_vm9, 65537, %v8703_v45  ;;  %v222_v62 = vadd.s32 32, %v6685_v5 }
  0x6f   : > { %v1773_v2 = vsel %vm6798_vm13, %v1771_v28, %v6717_v20  ;;  %vm8732_vm15 = vcmask 1046528   ;;  %v1775_v46 = vrot.slane %v1703_v11, 7  ;;  %v8733_v40 = vmov 0 }
  0x70   : > { %8731 = vst [vmem:[#allocation25_spill] sm:$0xff] %v7280_v47  ;;  %v3260_v18 = vsel %vm8732_vm15, %v3257_v48, %v3259_v8  ;;  %vm7288_vm4 = vcmp.ne.s16.totalorder %v1773_v2, 0  ;;  %v401_v61 = vand.u32 15, %v239_v12  ;;  %vm8736_vm10 = vcmask 31744  }
  0x71   : > { %v8734_v40 = vsel %vm7288_vm4, 4294967295, %v8733_v40  ;;  %5963 = vmatprep.mubr.msk.bf16.mxu0 %vm8736_vm10, %v3260_v18  ;;  %v3261_v4 = vrot.slane %v5335_v32, 1  ;;  %v3147_v13 = vsel %vm7288_vm4, %v2653_v3, 0  ;;  %v282_v24 = vand.u32 15, %v222_v62  ;;  %vm8738_vm9 = vmmov %vm8736_vm10 }
  0x72   : > { %8735 = vst [vmem:[#allocation26_spill] sm:$0xff] %v8734_v40  ;;  %v831_v21 = vsel %vm6692_vm2, %v6791_v50, 0  ;;  %v7302_v48 = vsel %vm6798_vm13, %v6764_v36, %v1775_v46  ;;  %5816 = vmatmul.mubr.msk.bf16.vlgmr.msra.gmra.mrb[0].mxu1 %vm8738_vm9, %v7007_v31  ;;  %vm687_vm15 = vcmp.ne.s32.totalorder %v401_v61, 15  ;;  %v1777_v28 = vrot.slane %v1775_v46, 4  ;;  %vm8740_vm1 = vmmov %vm8738_vm9 }
  0x73   : > { %8737 = vst [vmem:[#allocation27_spill] sm:$0xff] %v7302_v48  ;;  %v241_v10 = vadd.s32 184, %v6685_v5  ;;  %vm8739_vm10 = vcmask 1046528   ;;  %vm8588_vm4 = vcmp.ne.s16.totalorder %v7302_v48, 0  ;;  %5848 = vmatpush3.bf16.msra.mxu1 %v2047_v37  ;;  %vm1673_vm8 = vmpackc.low %vm687_vm15, %vm687_vm15  ;;  %vm638_vm0 = vcmp.ne.s32.totalorder %v282_v24, 0 }
  0x74   : > { %v3262_v12 = vsel %vm8739_vm10, %v3259_v8, %v3261_v4  ;;  %v224_v50 = vadd.s32 48, %v6685_v5  ;;  %v3148_v3 = vsel %vm8588_vm4, %v2654_v25, 0  ;;  %v1705_v31 = vsel %vm1673_vm8, 65537, %v8703_v45  ;;  %vm7317_vm9 = vmpackc.low %vm638_vm0, %vm638_vm0 }
  0x75   : > { %5964 = vmatmul.mubr.msk.bf16.gmra.mrb[12].mxu0 %vm8740_vm1, %v3262_v12  ;;  %v1779_v32 = vsel %vm6798_vm13, %v1777_v28, %v6717_v20  ;;  %v8741_v8 = vmov 0  ;;  %v415_v37 = vand.u32 15, %v241_v10  ;;  %v5336_v11 = vcombine.low %v3147_v13, %v3148_v3 }
  0x76   : > { %v8742_v8 = vsel %vm7317_vm9, 4294967295, %v8741_v8  ;;  %v1781_v2 = vrot.slane %v1705_v31, 7  ;;  %vm7321_vm15 = vcmp.ne.s16.totalorder %v1779_v32, 0  ;;  %v8744_v62 = vmov 0 }
  0x77   : > { %8743 = vst [vmem:[#allocation28_spill] sm:$0xff] %v8742_v8  ;;  %v8745_v62 = vsel %vm7321_vm15, 4294967295, %v8744_v62  ;;  %v830_v18 = vsel %vm7317_vm9, %v6788_v49, 0  ;;  %v3149_v46 = vsel %vm7321_vm15, %v7266_v17, 0  ;;  %vm689_vm0 = vcmp.ne.s32.totalorder %v415_v37, 15 }
  0x78   : > { %8746 = vst [vmem:[#allocation29_spill] sm:$0xff] %v8745_v62  ;;  %v5198_v61 = vcombine.low %v830_v18, %v831_v21  ;;  %v296_v25 = vand.u32 15, %v224_v50  ;;  %v3263_v24 = vrot.slane %v5336_v11, 1  ;;  %v7334_v13 = vsel %vm6798_vm13, %v6764_v36, %v1781_v2  ;;  %vm1675_vm1 = vmpackc.low %vm689_vm0, %vm689_vm0  ;;  %v2657_v21 = vld [vmem:[%s6711_s11 + $0x60] sm:$0xf] }
  0x79   : > { %8747 = vst [vmem:[#allocation30_spill] sm:$0xff] %v7334_v13  ;;  %v1783_v28 = vrot.slane %v1781_v2, 4  ;;  %v833_v49 = vsel %vm6692_vm2, %v6814_v6, 0  ;;  %vm8591_vm8 = vcmp.ne.s16.totalorder %v7334_v13, 0  ;;  %vm8748_vm10 = vcmask 31744  }
  0x7a   : > { %5819 = vmatprep.mubr.msk.bf16.mxu1 %vm8748_vm10, %v5198_v61  ;;  %v1707_v17 = vsel %vm1675_vm1, 65537, %v8703_v45  ;;  %vm640_vm4 = vcmp.ne.s32.totalorder %v296_v25, 0  ;;  %v243_v10 = vadd.s32 200, %v6685_v5  ;;  %vm8749_vm15 = vcmask 1046528   ;;  %vm8753_vm1 = vmmov %vm8748_vm10  ;;  %v7913_v8 = vld [vmem:[%s6711_s11 + $0x3c] sm:$0xf] }
  0x7b   : > { %v3264_v12 = vsel %vm8749_vm15, %v3261_v4, %v3263_v24  ;;  %v3150_v50 = vsel %vm8591_vm8, %v2656_v9, 0  ;;  %v1785_v3 = vsel %vm6798_vm13, %v1783_v28, %v6717_v20  ;;  %v1787_v6 = vrot.slane %v1707_v17, 7  ;;  %vm7350_vm0 = vmpackc.low %vm640_vm4, %vm640_vm4  ;;  %v2658_v4 = vld [vmem:[%s6711_s11 + $0x64] sm:$0xf]  ;;  %v2659_v28 = vld [vmem:[%s6711_s11 + $0x68] sm:$0xf] }
  0x7c   : > { %v8750_v31 = vmov 0  ;;  %5967 = vmatprep.mubr.msk.bf16.mxu0 %vm8753_vm1, %v3264_v12  ;;  %v5337_v32 = vcombine.low %v3149_v46, %v3150_v50  ;;  %vm7355_vm10 = vcmp.ne.s16.totalorder %v1785_v3, 0  ;;  %v8754_v37 = vmov 0 }
  0x7d   : > { %v8751_v31 = vsel %vm7350_vm0, 4294967295, %v8750_v31  ;;  %v8755_v37 = vsel %vm7355_vm10, 4294967295, %v8754_v37  ;;  %v832_v9 = vsel %vm7350_vm0, %v6809_v63, 0  ;;  %v429_v11 = vand.u32 15, %v243_v10 }
  0x7e   : > { %8752 = vst [vmem:[#allocation31_spill] sm:$0xff] %v8751_v31  ;;  %8756 = vst [vmem:[#allocation32_spill] sm:$0xff] %v8755_v37  ;;  %v7366_v2 = vsel %vm6798_vm13, %v6764_v36, %v1787_v6  ;;  %v3151_v18 = vsel %vm7355_vm10, %v2657_v21, 0  ;;  %v5199_v61 = vcombine.low %v832_v9, %v833_v49  ;;  %v1789_v46 = vrot.slane %v1787_v6, 4  ;;  %v7908_v31 = vld [vmem:[%s6711_s11 + $0x38] sm:$0xf] }
  0x7f   : > { %8757 = vst [vmem:[#allocation33_spill] sm:$0xff] %v7366_v2  ;;  %v3265_v25 = vrot.slane %v5337_v32, 1  ;;  %vm8594_vm4 = vcmp.ne.s16.totalorder %v7366_v2, 0  ;;  %vm691_vm15 = vcmp.ne.s32.totalorder %v429_v11, 15  ;;  %v226_v17 = vadd.s32 64, %v6685_v5 }
  0x80   : > { %v3152_v63 = vsel %vm8594_vm4, %v2658_v4, 0  ;;  %5820 = vmatmul.mubr.msk.bf16.gmra.mrb[4].mxu1 %vm8753_vm1, %v5199_v61  ;;  %vm1677_vm8 = vmpackc.low %vm691_vm15, %vm691_vm15  ;;  %v1791_v21 = vsel %vm6798_vm13, %v1789_v46, %v6717_v20  ;;  %v835_v49 = vsel %vm6692_vm2, %v6844_v27, 0  ;;  %v245_v10 = vadd.s32 216, %v6685_v5  ;;  %v2660_v61 = vld [vmem:[%s6711_s11 + $0x6c] sm:$0xf] }
  0x81   : > { %vm8758_vm10 = vcmask 1046528   ;;  %v5338_v50 = vcombine.low %v3151_v18, %v3152_v63  ;;  %v1709_v3 = vsel %vm1677_vm8, 65537, %v8703_v45  ;;  %vm7385_vm4 = vcmp.ne.s16.totalorder %v1791_v21, 0  ;;  %vm8762_vm15 = vmmov %vm8753_vm1 }
  0x82   : > { %v3266_v12 = vsel %vm8758_vm10, %v3263_v24, %v3265_v25  ;;  %v8759_v6 = vmov 0  ;;  %v1793_v32 = vrot.slane %v1709_v3, 7  ;;  %v3153_v4 = vsel %vm7385_vm4, %v2659_v28, 0 }
  0x83   : > { %v8760_v6 = vsel %vm7385_vm4, 4294967295, %v8759_v6  ;;  %5968 = vmatmul.mubr.msk.bf16.gmra.mrb[16].mxu0 %vm8762_vm15, %v3266_v12  ;;  %v310_v9 = vand.u32 15, %v226_v17  ;;  %v443_v27 = vand.u32 15, %v245_v10  ;;  %v3267_v11 = vrot.slane %v5338_v50, 1 }
  0x84   : > { %8761 = vst [vmem:[#allocation34_spill] sm:$0xff] %v8760_v6  ;;  %v228_v24 = vadd.s32 80, %v6685_v5  ;;  %v837_v18 = vsel %vm6692_vm2, %v6875_v58, 0  ;;  %v247_v46 = vadd.s32 232, %v6685_v5  ;;  %v7401_v63 = vsel %vm6798_vm13, %v6764_v36, %v1793_v32  ;;  %v2661_v58 = vld [vmem:[%s6711_s11 + $0x70] sm:$0xf] }
  0x85   : > { %8763 = vst [vmem:[#allocation35_spill] sm:$0xff] %v7401_v63  ;;  %vm642_vm8 = vcmp.ne.s32.totalorder %v310_v9, 0  ;;  %vm7403_vm10 = vcmp.ne.s32.totalorder %v443_v27, 15  ;;  %v1795_v17 = vrot.slane %v1793_v32, 4  ;;  %vm8766_vm1 = vcmask 1046528  }
  0x86   : > { %v3268_v21 = vsel %vm8766_vm1, %v3265_v25, %v3267_v11  ;;  %vm8599_vm15 = vcmp.ne.s16.totalorder %v7401_v63, 0  ;;  %vm7409_vm4 = vmpackc.low %vm642_vm8, %vm642_vm8  ;;  %v8767_v10 = vmov 0  ;;  %v324_v12 = vand.u32 15, %v228_v24 }
  0x87   : > { %v8768_v10 = vsel %vm7409_vm4, 4294967295, %v8767_v10  ;;  %v457_v50 = vand.u32 15, %v247_v46  ;;  %vm8770_vm12 = vcmask 31744   ;;  %v3154_v3 = vsel %vm8599_vm15, %v2660_v61, 0  ;;  %vm1679_vm8 = vmpackc.low %vm7403_vm10, %vm7403_vm10 }
  0x88   : > { %8769 = vst [vmem:[#allocation36_spill] sm:$0xff] %v8768_v10  ;;  %5971 = vmatprep.mubr.msk.bf16.mxu0 %vm8770_vm12, %v3268_v21  ;;  %v834_v32 = vsel %vm7409_vm4, %v6841_v23, 0  ;;  %v1797_v25 = vsel %vm6798_vm13, %v1795_v17, %v6717_v20  ;;  %v230_v9 = vadd.s32 96, %v6685_v5  ;;  %v5339_v27 = vcombine.low %v3153_v4, %v3154_v3 }
  0x89   : > { %v5200_v24 = vcombine.low %v834_v32, %v835_v49  ;;  %v1711_v46 = vsel %vm1679_vm8, 65537, %v8703_v45  ;;  %vm7428_vm12 = vcmp.ne.s16.totalorder %v1797_v25, 0  ;;  %v8771_v61 = vmov 0  ;;  %v2662_v49 = vld [vmem:[%s6711_s11 + $0x74] sm:$0xf] }
  0x8a   : > { %v8772_v61 = vsel %vm7428_vm12, 4294967295, %v8771_v61  ;;  %v1799_v21 = vrot.slane %v1711_v46, 7  ;;  %v3155_v23 = vsel %vm7428_vm12, %v2661_v58, 0  ;;  %vm644_vm1 = vcmp.ne.s32.totalorder %v324_v12, 0  ;;  %v8780_v32 = vld [vmem:[#allocation11_spill] sm:$0xff] }
  0x8b   : > { %8773 = vst [vmem:[#allocation37_spill] sm:$0xff] %v8772_v61  ;;  %vm7434_vm10 = vcmp.ne.s32.totalorder %v457_v50, 15  ;;  %v3269_v17 = vrot.slane %v5339_v27, 1  ;;  %vm8776_vm15 = vcmask 31744   ;;  %vm7440_vm5 = vmpackc.low %vm644_vm1, %vm644_vm1  ;;  %v8777_v4 = vmov 0  ;;  %v8782_v50 = vld [vmem:[#allocation9_spill] sm:$0xff] }
  0x8c   : > { %5823 = vmatprep.mubr.msk.bf16.mxu1 %vm8776_vm15, %v5200_v24  ;;  %v8778_v4 = vsel %vm7440_vm5, 4294967295, %v8777_v4  ;;  %v338_v3 = vand.u32 15, %v230_v9  ;;  %v839_v25 = vsel %vm6692_vm2, %v8780_v32, 0  ;;  %v249_v58 = vadd.s32 248, %v6685_v5  ;;  %vm1681_vm15 = vmpackc.low %vm7434_vm10, %vm7434_vm10  ;;  %v2663_v61 = vld [vmem:[%s6711_s11 + $0x78] sm:$0xf] }
  0x8d   : > { %8779 = vst [vmem:[#allocation38_spill] sm:$0xff] %v8778_v4  ;;  %v7451_v12 = vsel %vm6798_vm13, %v6764_v36, %v1799_v21  ;;  %v836_v27 = vsel %vm7440_vm5, %v8782_v50, 0  ;;  %v1801_v9 = vrot.slane %v1799_v21, 4  ;;  %v232_v24 = vadd.s32 112, %v6685_v5  ;;  %v3544_v4 = vld [vmem:[%s6711_s11 + $0x54] sm:$0xf] }
  0x8e   : > { %8781 = vst [vmem:[#allocation11_spill] sm:$0xff] %v7451_v12  ;;  %vm8783_vm8 = vcmask 1046528   ;;  %vm8611_vm1 = vcmp.ne.s16.totalorder %v7451_v12, 0  ;;  %v5201_v32 = vcombine.low %v836_v27, %v837_v18  ;;  %v1713_v47 = vsel %vm1681_vm15, 65537, %v8703_v45  ;;  %v2664_v18 = vld [vmem:[%s6711_s11 + $0x7c] sm:$0xf] }
  0x8f   : > { %v3270_v46 = vsel %vm8783_vm8, %v3267_v11, %v3269_v17  ;;  %vm8784_vm12 = vcmask 31744   ;;  %v3156_v50 = vsel %vm8611_vm1, %v2662_v49, 0  ;;  %v1803_v28 = vsel %vm6798_vm13, %v1801_v9, %v6717_v20  ;;  %v3527_v12 = vld [vmem:[%s6711_s11 + $0x10] sm:$0xf] }
  0x90   : > { %5972 = vmatmul.mubr.msk.bf16.gmra.mrb[20].mxu0 %vm8784_vm12, %v3270_v46  ;;  %v1805_v21 = vrot.slane %v1713_v47, 7  ;;  %vm646_vm10 = vcmp.ne.s32.totalorder %v338_v3, 0  ;;  %v5340_v63 = vcombine.low %v3155_v23, %v3156_v50  ;;  %vm8785_vm6 = vmmov %vm8784_vm12  ;;  %vm7471_vm8 = vcmp.ne.s16.totalorder %v1803_v28, 0  ;;  %v8793_v3 = vld [vmem:[#allocation10_spill] sm:$0xff] }
  0x91   : > { %5824 = vmatmul.mubr.msk.bf16.gmra.mrb[8].mxu1 %vm8785_vm6, %v5201_v32  ;;  %v8786_v11 = vmov 0  ;;  %vm7476_vm15 = vmpackc.low %vm646_vm10, %vm646_vm10  ;;  %v8789_v27 = vmov 0  ;;  %v471_v49 = vand.u32 15, %v249_v58  ;;  %v352_v46 = vand.u32 15, %v232_v24 }
  0x92   : > { %v8787_v11 = vsel %vm7471_vm8, 4294967295, %v8786_v11  ;;  %v8790_v27 = vsel %vm7476_vm15, 4294967295, %v8789_v27  ;;  %v7483_v47 = vsel %vm6798_vm13, %v6764_v36, %v1805_v21  ;;  %v3157_v23 = vsel %vm7471_vm8, %v2663_v61, 0  ;;  %v2665_v61 = vld [vmem:[%s6711_s11 + $0x80] sm:$0xf] }
  0x93   : > { %8788 = vst [vmem:[#allocation9_spill] sm:$0xff] %v8787_v11  ;;  %8791 = vst [vmem:[#allocation39_spill] sm:$0xff] %v8790_v27  ;;  %v838_v9 = vsel %vm7476_vm15, %v8793_v3, 0  ;;  %v1807_v32 = vrot.slane %v1805_v21, 4  ;;  %v3271_v50 = vrot.slane %v5340_v63, 1  ;;  %vm8618_vm6 = vcmp.ne.s16.totalorder %v7483_v47, 0 }
  0x94   : > { %8792 = vst [vmem:[#allocation40_spill] sm:$0xff] %v7483_v47  ;;  %v5202_v28 = vcombine.low %v838_v9, %v839_v25  ;;  %vm697_vm12 = vcmp.ne.s32.totalorder %v471_v49, 15  ;;  %v3158_v58 = vsel %vm8618_vm6, %v2664_v18, 0  ;;  %vm648_vm1 = vcmp.ne.s32.totalorder %v352_v46, 0  ;;  %v8794_v11 = vld [vmem:[#allocation13_spill] sm:$0xff]  ;;  %v8803_v46 = vld [vmem:[#allocation12_spill] sm:$0xff] }
  0x95   : > { %vm1683_vm10 = vmpackc.low %vm697_vm12, %vm697_vm12  ;;  %v1809_v24 = vsel %vm6798_vm13, %v1807_v32, %v6717_v20  ;;  %v841_v63 = vsel %vm6692_vm2, %v8794_v11, 0  ;;  %vm8795_vm8 = vcmask 1046528   ;;  %v5341_v25 = vcombine.low %v3157_v23, %v3158_v58  ;;  %v7514_v11 = vld [vmem:[%s8537_s1 + $0xc] ss:$0 sps:$4 sm:$0xcc]  }
  0x96   : > { %v3272_v21 = vsel %vm8795_vm8, %v3269_v17, %v3271_v50  ;;  %5827 = vmatprep.mubr.msk.bf16.mxu1 %vm8796_vm14, %v5202_v28  ;;  %v1715_v18 = vsel %vm1683_vm10, 65537, %v8703_v45  ;;  %vm7503_vm12 = vcmp.ne.s16.totalorder %v1809_v24, 0  ;;  %v8797_v49 = vmov 0  ;;  %vm7507_vm6 = vmpackc.low %vm648_vm1, %vm648_vm1  ;;  %v2666_v32 = vld [vmem:[%s6711_s11 + $0x84] sm:$0xf] }
  0x97   : > { %v8798_v49 = vsel %vm7503_vm12, 4294967295, %v8797_v49  ;;  %v8799_v3 = vmov 0  ;;  %vm8802_vm8 = vmmov %vm8796_vm14  ;;  %v1811_v17 = vrot.slane %v1715_v18, 7  ;;  %v840_v45 = vsel %vm7507_vm6, %v8803_v46, 0  ;;  %v2667_v58 = vld [vmem:[%s6711_s11 + $0x88] sm:$0x1] }
  0x98   : > { %v8800_v3 = vsel %vm7507_vm6, 4294967295, %v8799_v3  ;;  %5975 = vmatprep.mubr.msk.bf16.mxu0 %vm8802_vm8, %v3272_v21  ;;  %v234_v23 = vadd.s32 128, %v6685_v5  ;;  %v3273_v9 = vrot.slane %v5341_v25, 1  ;;  %v5203_v28 = vcombine.low %v840_v45, %v841_v63  ;;  %vm8805_vm10 = vmmov %vm8802_vm8  ;;  %v3543_v27 = vld [vmem:[%s6711_s11 + $0x50] sm:$0xf] }
  0x99   : > { %8801 = vst [vmem:[#allocation10_spill] sm:$0xff] %v8800_v3  ;;  %v7526_v24 = vsel %vm6798_vm13, %v6764_v36, %v1811_v17  ;;  %v3159_v21 = vsel %vm7503_vm12, %v2665_v61, 0  ;;  %v7530_v18 = vrot.slane %v1811_v17, 4  ;;  %vm8804_vm14 = vcmask 1046528   ;;  %vm8806_vm13 = vmmov %vm8802_vm8  ;;  %v7900_v3 = vld [vmem:[%s6711_s11 + $0x30] sm:$0xf] }
  0x9a   : > { %v366_v47 = vand.u32 15, %v234_v23  ;;  %v3274_v46 = vsel %vm8804_vm14, %v3271_v50, %v3273_v9  ;;  %vm8626_vm1 = vcmp.ne.s16.totalorder %v7526_v24, 0  ;;  %5828 = vmatmul.mubr.msk.bf16.gmra.mrb[12].mxu1 %vm8805_vm10, %v5203_v28  ;;  %v843_v63 = vsel %vm6692_vm2, %v6944_v34, 0  ;;  %v8811_v23 = vld [vmem:[#allocation14_spill] sm:$0xff] }
  0x9b   : > { %v4168_v36 = vrot.slane %v7514_v11, 2  ;;  %5976 = vmatmul.mubr.msk.bf16.gmra.mrb[24].mxu0 %vm8806_vm13, %v3274_v46  ;;  %v3160_v61 = vsel %vm8626_vm1, %v2666_v32, 0  ;;  %vm8625_vm8 = vcmp.ne.s16.totalorder %v7530_v18, 0  ;;  %v236_v50 = vadd.s32 144, %v6685_v5 }
  0x9c   : > { %vm650_vm12 = vcmp.ne.s32.totalorder %v366_v47, 0  ;;  %v5342_v25 = vcombine.low %v3159_v21, %v3160_v61  ;;  %v3161_v17 = vsel %vm8625_vm8, %v2667_v58, 0  ;;  %v8807_v34 = vmov 0 }
  0x9d   : > { %vm7548_vm14 = vmpackc.low %vm650_vm12, %vm650_vm12  ;;  %v3559_v11 = vsel %vm7240_vm3, %v3527_v12, 0  ;;  %vm8810_vm10 = vcmask 1041408   ;;  %v5343_v45 = vcombine.low %v3161_v17, %v3161_v17  ;;  %v3560_v32 = vsel %vm6692_vm2, %v3528_v56, 0  ;;  %v3529_v17 = vld [vmem:[%s6711_s11 + $0x18] sm:$0xf] }
  0x9e   : > { %v8808_v34 = vsel %vm7548_vm14, 4294967295, %v8807_v34  ;;  %6351 = vmatprep.subr.msk.bf16.mxu0 %vm8810_vm10, %v4168_v36  ;;  %v842_v47 = vsel %vm7548_vm14, %v8811_v23, 0  ;;  %v380_v28 = vand.u32 15, %v236_v50  ;;  %v3275_v21 = vrot.slane %v5342_v25, 1 }
  0x9f   : > { %8809 = vst [vmem:[#allocation13_spill] sm:$0xff] %v8808_v34  ;;  %v5204_v58 = vcombine.low %v842_v47, %v843_v63  ;;  %v238_v46 = vadd.s32 160, %v6685_v5  ;;  %v3277_v61 = vrot.slane %v5343_v45, 1  ;;  %v845_v12 = vsel %vm6692_vm2, %v6963_v16, 0  ;;  %v8819_v47 = vld [vmem:[#allocation15_spill] sm:$0xff] }
  0xa0   : > { %vm652_vm12 = vcmp.ne.s32.totalorder %v380_v28, 0  ;;  %vm8812_vm13 = vcmask 1046528   ;;  %vm8813_vm10 = vcmask 31744   ;;  %v5361_v56 = vcombine.low %v3559_v11, %v3560_v32  ;;  %v3530_v28 = vld [vmem:[%s6711_s11 + $0x1c] sm:$0xf] }
  0xa1   : > { %v3276_v23 = vsel %vm8812_vm13, %v3273_v9, %v3275_v21  ;;  %5831 = vmatprep.mubr.msk.bf16.mxu1 %vm8813_vm10, %v5204_v58  ;;  %vm7567_vm8 = vmpackc.low %vm652_vm12, %vm652_vm12  ;;  %v8814_v50 = vmov 0  ;;  %v394_v63 = vand.u32 15, %v238_v46  ;;  %v240_v25 = vadd.s32 176, %v6685_v5  ;;  %v3531_v9 = vld [vmem:[%s6711_s11 + $0x20] sm:$0xf] }
  0xa2   : > { %v8815_v50 = vsel %vm7567_vm8, 4294967295, %v8814_v50  ;;  %vm8817_vm1 = vmmov %vm8813_vm10  ;;  %v844_v16 = vsel %vm7567_vm8, %v8819_v47, 0  ;;  %v847_v11 = vsel %vm6692_vm2, %v6997_v59, 0  ;;  %v3532_v32 = vld [vmem:[%s6711_s11 + $0x24] sm:$0xf]  ;;  %v3561_v46 = vsel %vm6735_vm7, %v3529_v17, 0 }
  0xa3   : > { %8816 = vst [vmem:[#allocation12_spill] sm:$0xff] %v8815_v50  ;;  %5979 = vmatprep.mubr.msk.bf16.mxu0 %vm8817_vm1, %v3276_v23  ;;  %vm8818_vm3 = vmmov %vm8812_vm13  ;;  %v5205_v22 = vcombine.low %v844_v16, %v845_v12  ;;  %vm654_vm13 = vcmp.ne.s32.totalorder %v394_v63, 0  ;;  %v408_v58 = vand.u32 15, %v240_v25  ;;  %v3562_v59 = vsel %vm6692_vm2, %v3530_v28, 0  ;;  %v3533_v16 = vld [vmem:[%s6711_s11 + $0x28] sm:$0xf] }
  0xa4   : > { %v3278_v45 = vsel %vm8818_vm3, %v3275_v21, %v3277_v61  ;;  %vm7586_vm3 = vmpackc.low %vm654_vm13, %vm654_vm13  ;;  %v8820_v21 = vmov 0  ;;  %v242_v61 = vadd.s32 192, %v6685_v5  ;;  %v3563_v17 = vsel %vm7317_vm9, %v3531_v9, 0  ;;  %v7845_v50 = vld [vmem:[%s6711_s11 + $0x18] sm:$0xf] }
  0xa5   : > { %5980 = vmatmul.mubr.msk.bf16.gmra.mrb[28].mxu0 %vm8817_vm1, %v3278_v45  ;;  %v8821_v21 = vsel %vm7586_vm3, 4294967295, %v8820_v21  ;;  %vm8823_vm12 = vmmov %vm8817_vm1  ;;  %v846_v12 = vsel %vm7586_vm3, %v6983_v29, 0  ;;  %vm656_vm13 = vcmp.ne.s32.totalorder %v408_v58, 0  ;;  %v3564_v63 = vsel %vm6692_vm2, %v3532_v32, 0  ;;  %v3534_v58 = vld [vmem:[%s6711_s11 + $0x2c] sm:$0xf] }
  0xa6   : > { %8822 = vst [vmem:[#allocation14_spill] sm:$0xff] %v8821_v21  ;;  %5985 = vmatprep.mubr.msk.bf16.mxu0 %vm8823_vm12, %v5361_v56  ;;  %vm8824_vm10 = vmmov %vm8817_vm1  ;;  %v5206_v23 = vcombine.low %v846_v12, %v847_v11  ;;  %v8825_v56 = vmov 0  ;;  %v244_v25 = vadd.s32 208, %v6685_v5  ;;  %v849_v45 = vsel %vm6692_vm2, %v7015_v54, 0  ;;  %v3536_v12 = vld [vmem:[%s6711_s11 + $0x34] sm:$0xf] }
  0xa7   : > { %5832 = vmatmul.mubr.msk.bf16.gmra.mrb[16].mxu1 %vm8824_vm10, %v5205_v22  ;;  %vm7602_vm1 = vmpackc.low %vm656_vm13, %vm656_vm13  ;;  %v422_v22 = vand.u32 15, %v242_v61  ;;  %v5362_v47 = vcombine.low %v3561_v46, %v3562_v59  ;;  %v851_v28 = vsel %vm6692_vm2, %v7047_v39, 0  ;;  %vm8829_vm13 = vcmask 1041408   ;;  %v3535_v61 = vld [vmem:[%s6711_s11 + $0x30] sm:$0xf] }
  0xa8   : > { %v8826_v56 = vsel %vm7602_vm1, 4294967295, %v8825_v56  ;;  %v848_v29 = vsel %vm7602_vm1, %v7012_v38, 0  ;;  %vm8828_vm12 = vmmov %vm8824_vm10  ;;  %v436_v9 = vand.u32 15, %v244_v25  ;;  %v4218_v11 = vsel %vm8829_vm13, %v4168_v36, 0  ;;  %v6490_v34 = vld [vmem:[%s6711_s11 + $0x58] sm:$0xf] }
  0xa9   : > { %8827 = vst [vmem:[#allocation15_spill] sm:$0xff] %v8826_v56  ;;  %5835 = vmatprep.mubr.msk.bf16.mxu1 %vm8828_vm12, %v5206_v23  ;;  %vm658_vm10 = vcmp.ne.s32.totalorder %v422_v22, 0  ;;  %v5363_v32 = vcombine.low %v3563_v17, %v3564_v63  ;;  %v8830_v38 = vmov 0  ;;  %v246_v54 = vadd.s32 224, %v6685_v5  ;;  %v7639_v63 = vld [vmem:[%s8537_s1 + $0x10] sm:$0x3] }
  0xaa   : > { %vm7620_vm9 = vmpackc.low %vm658_vm10, %vm658_vm10  ;;  %v5207_v46 = vcombine.low %v848_v29, %v849_v45  ;;  %vm660_vm12 = vcmp.ne.s32.totalorder %v436_v9, 0  ;;  %v248_v39 = vadd.s32 240, %v6685_v5  ;;  %v7634_v23 = vld [vmem:[%s8537_s1 + $0x4] ss:$0 sps:$4 sm:$0xcc]   ;;  %vm8833_vm10 = vcmask 31744  }
  0xab   : > { %v8831_v38 = vsel %vm7620_vm9, 4294967295, %v8830_v38  ;;  %v850_v59 = vsel %vm7620_vm9, %v7044_v33, 0  ;;  %v450_v17 = vand.u32 15, %v246_v54  ;;  %v3565_v33 = vsel %vm7350_vm0, %v3533_v16, 0  ;;  %vm7646_vm13 = vmpackc.low %vm660_vm12, %vm660_vm12  ;;  %v3556_v56 = vld [vmem:[%s6711_s11 + $0x84] sm:$0xf] }
  0xac   : > { %8832 = vst [vmem:[#allocation41_spill] sm:$0xff] %v8831_v38  ;;  %v5208_v36 = vcombine.low %v850_v59, %v851_v28  ;;  %v3566_v5 = vsel %vm6692_vm2, %v3534_v58, 0  ;;  %v8834_v22 = vmov 0  ;;  %vm8837_vm7 = vmmov %vm8833_vm10  ;;  %v3567_v25 = vsel %vm7409_vm4, %v3535_v61, 0  ;;  %v3537_v61 = vld [vmem:[%s6711_s11 + $0x38] sm:$0xf] }
  0xad   : > { %5986 = vmatmul.mubr.msk.bf16.vlgmr.msra.gmra.mrb[0].mxu0 %vm8833_vm10, %v5362_v47  ;;  %v8835_v22 = vsel %vm7646_vm13, 4294967295, %v8834_v22  ;;  %v3568_v29 = vsel %vm6692_vm2, %v3536_v12, 0  ;;  %vm662_vm10 = vcmp.ne.s32.totalorder %v450_v17, 0  ;;  %v464_v45 = vand.u32 15, %v248_v39  ;;  %v1587_v47 = vld [vmem:[%s6711_s11] sm:$0xe]  ;;  %vm8838_vm0 = vmmov %vm8837_vm7 }
  0xae   : > { %8836 = vst [vmem:[#allocation42_spill] sm:$0xff] %v8835_v22  ;;  %6018 = vmatpush3.bf16.msra.mxu0 %v4218_v11  ;;  %5989 = vmatprep.mubr.msk.bf16.mxu0 %vm8837_vm7, %v5363_v32  ;;  %vm7657_vm12 = vmpackc.low %vm662_vm10, %vm662_vm10  ;;  %v8839_v16 = vmov 0  ;;  %vm8842_vm9 = vcmask 1041408   ;;  %v5364_v28 = vcombine.low %v3565_v33, %v3566_v5  ;;  %v852_v9 = vsel %vm7646_vm13, %v7075_v19, 0  ;;  %v3538_v59 = vld [vmem:[%s6711_s11 + $0x3c] sm:$0xf] }
  0xaf   : > { %5836 = vmatmul.mubr.msk.bf16.gmra.mrb[20].mxu1 %vm8838_vm0, %v5207_v46  ;;  %v8840_v16 = vsel %vm7657_vm12, 4294967295, %v8839_v16  ;;  %6352 = vmatprep.subr.msk.bf16.mxu0 %vm8842_vm9, %v7639_v63  ;;  %vm8843_vm7 = vmmov %vm8838_vm0  ;;  %v853_v11 = vsel %vm6692_vm2, %v7086_v1, 0  ;;  %v8636_v32 = vrot.slane %v7634_v23, 2  ;;  %v5365_v58 = vcombine.low %v3567_v25, %v3568_v29  ;;  %v6468_v1 = vld [vmem:[%s6711_s11 + $0x4] sm:$0xf]  ;;  %v8846_v33 = vld [vmem:[#allocation18_spill] sm:$0xff] }
  0xb0   : > { %8841 = vst [vmem:[#allocation43_spill] sm:$0xff] %v8840_v16  ;;  %5839 = vmatprep.mubr.msk.bf16.mxu1 %vm8843_vm7, %v5208_v36  ;;  %v854_v54 = vsel %vm7657_vm12, %v7114_v60, 0  ;;  %v855_v46 = vsel %vm6692_vm2, %v7117_v15, 0  ;;  %vm8844_vm9 = vcmp.ne.s16.totalorder %v6717_v20, 0  ;;  %vm664_vm0 = vcmp.ne.s32.totalorder %v464_v45, 0 }
  0xb1   : > { %v1847_v19 = vsel %vm8844_vm9, %v1587_v47, 0  ;;  %vm8845_vm10 = vcmp.ne.s16.totalorder %v7058_v53, 0  ;;  %v6469_v39 = vld [vmem:[%s6711_s11 + $0x8] sm:$0xf]  ;;  %v6470_v17 = vld [vmem:[%s6711_s11 + $0xc] sm:$0xf]  ;;  %v5209_v15 = vcombine.low %v852_v9, %v853_v11  ;;  %v5210_v5 = vcombine.low %v854_v54, %v855_v46 }
  0xb2   : > { %v1848_v12 = vsel %vm8845_vm10, %v6468_v1, 0  ;;  %v1849_v36 = vsel %vm7077_vm11, %v6469_v39, 0  ;;  %vm8847_vm7 = vcmp.ne.s16.totalorder %v8846_v33, 0  ;;  %vm8848_vm4 = vcmask 1041408   ;;  %v3539_v25 = vld [vmem:[%s6711_s11 + $0x40] sm:$0xf]  ;;  %vm7700_vm10 = vmpackc.low %vm664_vm0, %vm664_vm0 }
  0xb3   : > { %v1850_v60 = vsel %vm8847_vm7, %v6470_v17, 0  ;;  %6346 = vmatprep.subr.msk.bf16.mxu1 %vm8848_vm4, %v8636_v32  ;;  %v3540_v29 = vld [vmem:[%s6711_s11 + $0x44] sm:$0xf]  ;;  %vm8849_vm9 = vcmask 31744   ;;  %v3569_v45 = vsel %vm7440_vm5, %v3537_v61, 0  ;;  %v3570_v47 = vsel %vm6692_vm2, %v3538_v59, 0 }
  0xb4   : > { %v8850_v1 = vmov 0  ;;  %v5228_v39 = vcombine.low %v1847_v19, %v1848_v12  ;;  %v5229_v17 = vcombine.low %v1849_v36, %v1850_v60  ;;  %vm8853_vm4 = vmmov %vm8849_vm9  ;;  %v3572_v9 = vsel %vm6692_vm2, %v3540_v29, 0  ;;  %v6471_v19 = vld [vmem:[%s6711_s11 + $0x10] sm:$0xf]  ;;  %v8856_v59 = vld [vmem:[#allocation8_spill] sm:$0xff] }
  0xb5   : > { %5990 = vmatmul.mubr.msk.bf16.gmra.mrb[4].mxu0 %vm8849_vm9, %v5364_v28  ;;  %v8851_v1 = vsel %vm7700_vm10, 4294967295, %v8850_v1  ;;  %vm8854_vm7 = vmmov %vm8853_vm4  ;;  %v3571_v28 = vsel %vm7476_vm15, %v3539_v25, 0  ;;  %v5366_v11 = vcombine.low %v3569_v45, %v3570_v47  ;;  %v856_v61 = vsel %vm7700_vm10, %v7127_v51, 0  ;;  %v6472_v36 = vld [vmem:[%s6711_s11 + $0x14] sm:$0xf]  ;;  %v8862_v47 = vld [vmem:[#allocation20_spill] sm:$0xff] }
  0xb6   : > { %8852 = vst [vmem:[#allocation18_spill] sm:$0xff] %v8851_v1  ;;  %5993 = vmatprep.mubr.msk.bf16.mxu0 %vm8853_vm4, %v5365_v58  ;;  %vm8855_vm9 = vmmov %vm8853_vm4  ;;  %v857_v58 = vsel %vm6692_vm2, %v7135_v44, 0  ;;  %v1965_v54 = vrot.slane %v5228_v39, 1  ;;  %v1966_v46 = vrot.slane %v5229_v17, 1  ;;  %vm8857_vm0 = vnez %v8856_v59  ;;  %v8858_v60 = vld [vmem:[#allocation7_spill] sm:$0xff] }
  0xb7   : > { %5840 = vmatmul.mubr.msk.bf16.gmra.mrb[24].mxu1 %vm8854_vm7, %v5209_v15  ;;  %v1851_v12 = vsel %vm8857_vm0, %v6471_v19, 0  ;;  %vm8859_vm4 = vcmp.ne.s16.totalorder %v8858_v60, 0  ;;  %v6473_v25 = vld [vmem:[%s6711_s11 + $0x18] sm:$0xf]  ;;  %v8860_v29 = vld [vmem:[#allocation19_spill] sm:$0xff]  ;;  %v5211_v32 = vcombine.low %v856_v61, %v857_v58  ;;  %vm8864_vm15 = vcmask 31744  }
  0xb8   : > { %5843 = vmatprep.mubr.msk.bf16.mxu1 %vm8855_vm9, %v5210_v5  ;;  %v1852_v15 = vsel %vm8859_vm4, %v6472_v36, 0  ;;  %v5367_v5 = vcombine.low %v3571_v28, %v3572_v9  ;;  %vm8861_vm7 = vnez %v8860_v29  ;;  %v6474_v45 = vld [vmem:[%s6711_s11 + $0x1c] sm:$0xf]  ;;  %vm8863_vm9 = vcmp.ne.s16.totalorder %v8862_v47, 0  ;;  %v3541_v39 = vld [vmem:[%s6711_s11 + $0x48] sm:$0xf]  ;;  %vm8866_vm5 = vmmov %vm8864_vm15 }
  0xb9   : > { %v1853_v51 = vsel %vm8861_vm7, %v6473_v25, 0  ;;  %v1854_v44 = vsel %vm8863_vm9, %v6474_v45, 0  ;;  %v3542_v17 = vld [vmem:[%s6711_s11 + $0x4c] sm:$0xf]  ;;  %v5230_v19 = vcombine.low %v1851_v12, %v1852_v15  ;;  %vm8865_vm4 = vcmask 1046528   ;;  %vm8867_vm9 = vmmov %vm8866_vm5 }
  0xba   : > { %v1967_v28 = vsel %vm8865_vm4, %v1965_v54, %v1966_v46  ;;  %v5231_v9 = vcombine.low %v1853_v51, %v1854_v44  ;;  %v3573_v36 = vsel %vm7507_vm6, %v3541_v39, 0  ;;  %v3574_v61 = vsel %vm6692_vm2, %v3542_v17, 0  ;;  %v8870_v51 = vld [vmem:[#allocation21_spill] sm:$0xff]  ;;  %v6477_v44 = vld [vmem:[%s6711_s11 + $0x28] sm:$0xf] }
  0xbb   : > { %v3575_v58 = vsel %vm7548_vm14, %v3543_v27, 0  ;;  %v1968_v54 = vrot.slane %v5230_v19, 1  ;;  %v5368_v12 = vcombine.low %v3573_v36, %v3574_v61  ;;  %vm8871_vm4 = vcmp.ne.s16.totalorder %v8870_v51, 0  ;;  %v6478_v39 = vld [vmem:[%s6711_s11 + $0x2c] sm:$0xf] }
  0xbc   : > { %v1970_v15 = vrot.slane %v5231_v9, 1  ;;  %v3545_v19 = vld [vmem:[%s6711_s11 + $0x58] sm:$0xf]  ;;  %vm8874_vm14 = vcmask 1046528   ;;  %v3547_v36 = vld [vmem:[%s6711_s11 + $0x60] sm:$0xf] }
  0xbd   : > { %5994 = vmatmul.mubr.msk.bf16.gmra.mrb[8].mxu0 %vm8864_vm15, %v5366_v11  ;;  %v3576_v11 = vsel %vm6692_vm2, %v3544_v4, 0  ;;  %vm8868_vm15 = vmmov %vm8866_vm5  ;;  %v1969_v9 = vsel %vm8874_vm14, %v1966_v46, %v1968_v54  ;;  %v3548_v61 = vld [vmem:[%s6711_s11 + $0x64] sm:$0xf]  ;;  %vm8875_vm6 = vcmask 31744   ;;  %v3577_v46 = vsel %vm7567_vm8, %v3545_v19, 0 }
  0xbe   : > { %5997 = vmatprep.mubr.msk.bf16.mxu0 %vm8866_vm5, %v5367_v5  ;;  %v6475_v5 = vld [vmem:[%s6711_s11 + $0x20] sm:$0xf]  ;;  %vm8869_vm5 = vnez %v8714_v55  ;;  %v5369_v27 = vcombine.low %v3575_v58, %v3576_v11  ;;  %v8876_v58 = vrot.slane %v7634_v23, 2  ;;  %v3579_v23 = vsel %vm7586_vm3, %v3547_v36, 0  ;;  %v6482_v36 = vld [vmem:[%s6711_s11 + $0x38] sm:$0xf] }
  0xbf   : > { %5844 = vmatmul.mubr.msk.bf16.gmra.mrb[28].mxu1 %vm8867_vm9, %v5211_v32  ;;  %v1855_v25 = vsel %vm8869_vm5, %v6475_v5, 0  ;;  %v6476_v32 = vld [vmem:[%s6711_s11 + $0x24] sm:$0xf]  ;;  %vm8872_vm9 = vnez %v8718_v41 }
  0xc0   : > { %5849 = vmatprep.mubr.msk.bf16.mxu1 %vm8868_vm15, %v1967_v28  ;;  %v1856_v45 = vsel %vm8871_vm4, %v6476_v32, 0  ;;  %v1857_v4 = vsel %vm8872_vm9, %v6477_v44, 0  ;;  %vm8873_vm15 = vcmp.ne.s16.totalorder %v7170_v35, 0  ;;  %v3546_v28 = vld [vmem:[%s6711_s11 + $0x5c] sm:$0xf]  ;;  %vm8877_vm4 = vcmask 1041408   ;;  %vm8878_vm9 = vmmov %vm8874_vm14 }
  0xc1   : > { %v1858_v17 = vsel %vm8873_vm15, %v6478_v39, 0  ;;  %v5232_v5 = vcombine.low %v1855_v25, %v1856_v45  ;;  %v2440_v11 = vsel %vm8877_vm4, %v8876_v58, 0  ;;  %v1971_v32 = vsel %vm8878_vm9, %v1968_v54, %v1970_v15  ;;  %vm8879_vm15 = vmmov %vm8875_vm6  ;;  %v6479_v25 = vld [vmem:[%s6711_s11 + $0x30] sm:$0xf] }
  0xc2   : > { %v7768_v44 = vcombine.low %v1857_v4, %v1858_v17  ;;  %v3578_v39 = vsel %vm6692_vm2, %v3546_v28, 0  ;;  %vm8880_vm14 = vmmov %vm8875_vm6  ;;  %v3580_v54 = vsel %vm6692_vm2, %v3548_v61, 0  ;;  %vm8881_vm9 = vnez %v8720_v57  ;;  %v6481_v28 = vld [vmem:[%s8537_s1 + $0x8] sm:$0x3] }
  0xc3   : > { %v1859_v45 = vsel %vm8881_vm9, %v6479_v25, 0  ;;  %vm8882_vm4 = vcmp.ne.s16.totalorder %v7204_v14, 0  ;;  %v5370_v17 = vcombine.low %v3577_v46, %v3578_v39  ;;  %v3551_v39 = vld [vmem:[%s6711_s11 + $0x70] sm:$0xf]  ;;  %v3552_v25 = vld [vmem:[%s6711_s11 + $0x74] sm:$0xf] }
  0xc4   : > { %v1974_v19 = vrot.slane %v7768_v44, 1  ;;  %v8965_v57 = vld [vmem:[#allocation22_spill] sm:$0xff] }
  0xc5   : > { %5998 = vmatmul.mubr.msk.bf16.gmra.mrb[12].mxu0 %vm8875_vm6, %v5368_v12  ;;  %v1972_v12 = vrot.slane %v5232_v5, 1  ;;  %v6483_v5 = vld [vmem:[%s6711_s11 + $0x3c] sm:$0xf] }
  0xc6   : > { %6001 = vmatprep.mubr.msk.bf16.mxu0 %vm8879_vm15, %v5369_v27  ;;  %v6480_v27 = vld [vmem:[%s6711_s11 + $0x34] sm:$0xf]  ;;  %vm8883_vm15 = vcmask 1041408  }
  0xc7   : > { %5850 = vmatmul.mubr.msk.bf16.vlgmr.msra.gmra.mrb[0].mxu1 %vm8880_vm14, %v1969_v9  ;;  %v1860_v4 = vsel %vm8882_vm4, %v6480_v27, 0  ;;  %v5371_v9 = vcombine.low %v3579_v23, %v3580_v54  ;;  %vm8884_vm14 = vnez %v8722_v0  ;;  %vm8886_vm4 = vcmask 1046528  }
  0xc8   : > { %5882 = vmatpush3.bf16.msra.mxu1 %v2440_v11  ;;  %5853 = vmatprep.mubr.msk.bf16.mxu1 %vm8875_vm6, %v1971_v32  ;;  %v1861_v61 = vsel %vm8884_vm14, %v6482_v36, 0  ;;  %vm8885_vm6 = vcmp.ne.s16.totalorder %v7234_v43, 0  ;;  %v3549_v11 = vld [vmem:[%s6711_s11 + $0x68] sm:$0xf]  ;;  %v3550_v32 = vld [vmem:[%s6711_s11 + $0x6c] sm:$0xf]  ;;  %v5234_v44 = vcombine.low %v1859_v45, %v1860_v4  ;;  %v1973_v46 = vsel %vm8886_vm4, %v1970_v15, %v1972_v12  ;;  %vm8888_vm3 = vmmov %vm8886_vm4 }
  0xc9   : > { %6348 = vmatprep.subr.msk.bf16.mxu1 %vm8883_vm15, %v6481_v28  ;;  %v1862_v58 = vsel %vm8885_vm6, %v6483_v5, 0  ;;  %vm8887_vm15 = vcmask 31744   ;;  %v1975_v23 = vsel %vm8888_vm3, %v1972_v12, %v1974_v19  ;;  %v3581_v27 = vsel %vm7602_vm1, %v3549_v11, 0  ;;  %v3916_v45 = vld [vmem:[%s6711_s11 + $0x10] sm:$0xf] }
  0xca   : > { %v7805_v54 = vcombine.low %v1861_v61, %v1862_v58  ;;  %vm8889_vm8 = vmmov %vm8887_vm15  ;;  %v3582_v15 = vsel %vm6692_vm2, %v3550_v32, 0  ;;  %vm8891_vm4 = vnez %v8831_v38  ;;  %v3584_v12 = vsel %vm6692_vm2, %v3552_v25, 0  ;;  %v7819_v28 = vld [vmem:[%s6711_s11 + $0x14] sm:$0xf]  ;;  %v6485_v61 = vld [vmem:[%s6711_s11 + $0x44] sm:$0xf] }
  0xcb   : > { %vm8890_vm6 = vmmov %vm8889_vm8  ;;  %v3583_v4 = vsel %vm8891_vm4, %v3551_v39, 0  ;;  %vm8893_vm3 = vnez %v8729_v52  ;;  %v6486_v58 = vld [vmem:[%s6711_s11 + $0x48] sm:$0xf]  ;;  %v6487_v32 = vld [vmem:[%s6711_s11 + $0x4c] sm:$0xf]  ;;  %vm8896_vm4 = vcmp.ne.s16.totalorder %v7302_v48, 0  ;;  %v7839_v38 = vcombine.low %v3916_v45, %v7819_v28 }
  0xcc   : > { %v1978_v39 = vrot.slane %v7805_v54, 1  ;;  %v5373_v25 = vcombine.low %v3583_v4, %v3584_v12  ;;  %v8915_v52 = vld [vmem:[#allocation11_spill] sm:$0xff] }
  0xcd   : > { %6002 = vmatmul.mubr.msk.bf16.gmra.mrb[16].mxu0 %vm8887_vm15, %v5370_v17  ;;  %v1976_v17 = vrot.slane %v5234_v44, 1  ;;  %vm8894_vm15 = vcmp.ne.s16.totalorder %v7259_v30, 0  ;;  %v1866_v44 = vsel %vm8896_vm4, %v6487_v32, 0  ;;  %v7848_v32 = vld [vmem:[%s6711_s11 + $0x1c] sm:$0xf]  ;;  %vm8897_vm4 = vcmask 1046528  }
  0xce   : > { %6005 = vmatprep.mubr.msk.bf16.mxu0 %vm8889_vm8, %v5371_v9  ;;  %vm8892_vm8 = vmmov %vm8890_vm6  ;;  %v6484_v9 = vld [vmem:[%s6711_s11 + $0x40] sm:$0xf]  ;;  %v1864_v5 = vsel %vm8894_vm15, %v6485_v61, 0  ;;  %v6495_v30 = vld [vmem:[%s6711_s11 + $0x6c] sm:$0xf] }
  0xcf   : > { %5854 = vmatmul.mubr.msk.bf16.gmra.mrb[4].mxu1 %vm8890_vm6, %v1973_v46  ;;  %v1863_v36 = vsel %vm8893_vm3, %v6484_v9, 0  ;;  %vm8895_vm6 = vnez %v8734_v40  ;;  %v5372_v46 = vcombine.low %v3581_v27, %v3582_v15  ;;  %v3554_v9 = vld [vmem:[%s6711_s11 + $0x7c] sm:$0xf]  ;;  %v3555_v61 = vld [vmem:[%s6711_s11 + $0x80] sm:$0xf]  ;;  %v1977_v54 = vsel %vm8897_vm4, %v1974_v19, %v1976_v17  ;;  %vm8898_vm15 = vmmov %vm8897_vm4 }
  0xd0   : > { %5857 = vmatprep.mubr.msk.bf16.mxu1 %vm8892_vm8, %v1975_v23  ;;  %v1865_v11 = vsel %vm8895_vm6, %v6486_v58, 0  ;;  %v3553_v23 = vld [vmem:[%s6711_s11 + $0x78] sm:$0xf]  ;;  %v5236_v58 = vcombine.low %v1863_v36, %v1864_v5  ;;  %v7852_v27 = vld [vmem:[%s6711_s11 + $0x20] sm:$0xf]  ;;  %v3586_v4 = vsel %vm6692_vm2, %v3554_v9, 0  ;;  %v1979_v12 = vsel %vm8898_vm15, %v1976_v17, %v1978_v39  ;;  %vm8899_vm4 = vmmov %vm8892_vm8 }
  0xd1   : > { %v7842_v21 = vcombine.low %v1865_v11, %v1866_v44  ;;  %v7855_v15 = vld [vmem:[%s6711_s11 + $0x24] sm:$0xf]  ;;  %v3585_v45 = vsel %vm7646_vm13, %v3553_v23, 0  ;;  %v7864_v36 = vld [vmem:[%s6711_s11 + $0x28] sm:$0xf]  ;;  %v3587_v19 = vsel %vm7657_vm12, %v3555_v61, 0  ;;  %vm8901_vm15 = vnez %v8745_v62 }
  0xd2   : > { %v7867_v5 = vld [vmem:[%s6711_s11 + $0x2c] sm:$0xf]  ;;  %v3588_v11 = vsel %vm6692_vm2, %v3556_v56, 0  ;;  %v3557_v44 = vld [vmem:[%s6711_s11 + $0x88] sm:$0xf]  ;;  %v4036_v17 = vshll.u32 %v7839_v38, 16  ;;  %v5395_v22 = vcombine.low %v7852_v27, %v7855_v15 }
  0xd3   : > { %v1980_v23 = vrot.slane %v5236_v58, 1  ;;  %v6488_v9 = vld [vmem:[%s6711_s11 + $0x50] sm:$0xf]  ;;  %v6489_v56 = vld [vmem:[%s6711_s11 + $0x54] sm:$0xf]  ;;  %vm8905_vm13 = vcmp.ne.s16.totalorder %v7366_v2, 0 }
  0xd4   : > { %v1867_v61 = vsel %vm8901_vm15, %v6488_v9, 0  ;;  %v5396_v9 = vcombine.low %v7864_v36, %v7867_v5  ;;  %v3589_v10 = vsel %vm7700_vm10, %v3557_v44, 0  ;;  %v4038_v2 = vrot.slane %v4036_v17, 1  ;;  %v6492_v62 = vld [vmem:[%s6711_s11 + $0x60] sm:$0xf]  ;;  %v8911_v40 = vld [vmem:[#allocation35_spill] sm:$0xff] }
  0xd5   : > { %6006 = vmatmul.mubr.msk.bf16.gmra.mrb[20].mxu0 %vm8892_vm8, %v5372_v46  ;;  %v7877_v46 = vcombine.low %v7845_v50, %v7848_v32  ;;  %vm8900_vm8 = vmmov %vm8899_vm4  ;;  %vm8910_vm10 = vcmask 31744   ;;  %vm8934_vm15 = vnez %v8798_v49  ;;  %v4418_v42 = vsel %vm8857_vm0, %v7852_v27, 0 }
  0xd6   : > { %6009 = vmatprep.mubr.msk.bf16.mxu0 %vm8899_vm4, %v5373_v25  ;;  %vm8902_vm4 = vcmp.ne.s16.totalorder %v7334_v13, 0  ;;  %vm8903_vm12 = vmmov %vm8900_vm8  ;;  %v4057_v17 = vshll.u32 %v5396_v9, 16  ;;  %v4061_v7 = vshrl.u32 %v5396_v9, 16  ;;  %v4420_v59 = vsel %vm8861_vm7, %v7864_v36, 0 }
  0xd7   : > { %5858 = vmatmul.mubr.msk.bf16.gmra.mrb[8].mxu1 %vm8900_vm8, %v1977_v54  ;;  %v1868_v16 = vsel %vm8902_vm4, %v6489_v56, 0  ;;  %vm8904_vm8 = vnez %v8755_v37  ;;  %v6491_v54 = vld [vmem:[%s6711_s11 + $0x5c] sm:$0xf]  ;;  %v7903_v56 = vld [vmem:[%s6711_s11 + $0x34] sm:$0xf]  ;;  %v5375_v37 = vcombine.low %v3587_v19, %v3588_v11  ;;  %v8907_v19 = vrot.slane %v7842_v21, 1 }
  0xd8   : > { %5861 = vmatprep.mubr.msk.bf16.mxu1 %vm8903_vm12, %v1979_v12  ;;  %v1869_v58 = vsel %vm8904_vm8, %v6490_v34, 0  ;;  %v1870_v25 = vsel %vm8905_vm13, %v6491_v54, 0  ;;  %v5374_v12 = vcombine.low %v3585_v45, %v3586_v4  ;;  %v4034_v34 = vshrl.u32 %v7839_v38, 16  ;;  %v3558_v45 = vld [vmem:[%s6711_s11 + $0x8c] sm:$0xf] }
  0xd9   : > { %v4041_v54 = vshll.u32 %v7877_v46, 16  ;;  %vm8906_vm13 = vcmask 1046528   ;;  %v5238_v4 = vcombine.low %v1867_v61, %v1868_v16  ;;  %v7917_v1 = vcombine.low %v1869_v58, %v1870_v25  ;;  %v6494_v25 = vld [vmem:[%s6711_s11 + $0x68] sm:$0xf]  ;;  %v8913_v61 = vld [vmem:[#allocation37_spill] sm:$0xff] }
  0xda   : > { %v1981_v13 = vsel %vm8906_vm13, %v1978_v39, %v1980_v23  ;;  %v5397_v44 = vcombine.low %v7900_v3, %v7903_v56  ;;  %vm8908_vm12 = vmmov %vm8906_vm13  ;;  %v4049_v11 = vshll.u32 %v5395_v22, 16  ;;  %vm8909_vm4 = vnez %v8760_v6  ;;  %v6493_v39 = vld [vmem:[%s6711_s11 + $0x64] sm:$0xf] }
  0xdb   : > { %v1983_v38 = vsel %vm8908_vm12, %v1980_v23, %v8907_v19  ;;  %v1871_v48 = vsel %vm8909_vm4, %v6492_v62, 0  ;;  %vm8912_vm13 = vcmp.ne.s16.totalorder %v8911_v40, 0  ;;  %vm8914_vm1 = vnez %v8913_v61  ;;  %vm8917_vm12 = vmmov %vm8910_vm10 }
  0xdc   : > { %v1872_v16 = vsel %vm8912_vm13, %v6493_v39, 0  ;;  %v1873_v58 = vsel %vm8914_vm1, %v6494_v25, 0  ;;  %vm8916_vm8 = vcmp.ne.s16.totalorder %v8915_v52, 0  ;;  %v7939_v19 = vcombine.low %v7908_v31, %v7913_v8 }
  0xdd   : > { %6010 = vmatmul.mubr.msk.bf16.gmra.mrb[24].mxu0 %vm8910_vm10, %v5374_v12  ;;  %v1874_v23 = vsel %vm8916_vm8, %v6495_v30, 0  ;;  %v3590_v62 = vsel %vm6692_vm2, %v3558_v45, 0  ;;  %v4039_v12 = vor.u32 %v4038_v2, %v4034_v34  ;;  %v4043_v40 = vrot.slane %v4041_v54, 1  ;;  %vm8918_vm8 = vmmov %vm8910_vm10 }
  0xde   : > { %6013 = vmatprep.mubr.msk.bf16.mxu0 %vm8917_vm12, %v5375_v37  ;;  %v4045_v39 = vshrl.u32 %v7877_v46, 16  ;;  %v1984_v25 = vrot.slane %v5238_v4, 1  ;;  %v1986_v30 = vrot.slane %v7917_v1, 1  ;;  %v4053_v52 = vshrl.u32 %v5395_v22, 16  ;;  %v7953_v1 = vld [vmem:[%s6711_s11 + $0x40] sm:$0xf] }
  0xdf   : > { %5862 = vmatmul.mubr.msk.bf16.gmra.mrb[12].mxu1 %vm8910_vm10, %v1981_v13  ;;  %v4065_v61 = vshll.u32 %v5397_v44, 16  ;;  %v4059_v37 = vrot.slane %v4057_v17, 1  ;;  %v5240_v6 = vcombine.low %v1871_v48, %v1872_v16  ;;  %v7948_v45 = vcombine.low %v1873_v58, %v1874_v23  ;;  %v7956_v22 = vld [vmem:[%s6711_s11 + $0x44] sm:$0xf]  ;;  %v6496_v58 = vld [vmem:[%s6711_s11 + $0x70] sm:$0xf] }
  0xe0   : > { %5865 = vmatprep.mubr.msk.bf16.mxu1 %vm8918_vm8, %v1983_v38  ;;  %v5376_v2 = vcombine.low %v3589_v10, %v3590_v62  ;;  %v4051_v46 = vrot.slane %v4049_v11, 1  ;;  %v4069_v34 = vshrl.u32 %v5397_v44, 16  ;;  %v4073_v13 = vshll.u32 %v7939_v19, 16  ;;  %v7959_v38 = vld [vmem:[%s6711_s11 + $0x10] sm:$0xf]  ;;  %v8923_v23 = vld [vmem:[#allocation9_spill] sm:$0xff] }
  0xe1   : > { %vm8919_vm13 = vsmask.f32 7424  ;;  %v4047_v4 = vor.u32 %v4045_v39, %v4043_v40  ;;  %v8920_v48 = vrot.slane %v7842_v21, 1  ;;  %vm8921_vm12 = vcmask 1046528   ;;  %v6497_v39 = vld [vmem:[%s6711_s11 + $0x74] sm:$0xf] }
  0xe2   : > { %v4044_v54 = vsel %vm8919_vm13, %v4039_v12, %v4043_v40  ;;  %vm8922_vm10 = vmmov %vm8921_vm12  ;;  %v4055_v44 = vor.u32 %v4053_v52, %v4051_v46  ;;  %v4067_v11 = vrot.slane %v4065_v61, 1  ;;  %v1988_v17 = vrot.slane %v5240_v6, 1  ;;  %v7978_v6 = vld [vmem:[%s6711_s11 + $0x48] sm:$0xf]  ;;  %v6498_v40 = vld [vmem:[%s6711_s11 + $0x78] sm:$0xf] }
  0xe3   : > { %v1985_v10 = vsel %vm8921_vm12, %v8920_v48, %v1984_v25  ;;  %v1987_v9 = vsel %vm8922_vm10, %v1984_v25, %v1986_v30  ;;  %v4063_v16 = vor.u32 %v4061_v7, %v4059_v37  ;;  %vm8924_vm8 = vnez %v8923_v23  ;;  %v8926_v25 = vld [vmem:[#allocation40_spill] sm:$0xff]  ;;  %v4413_v48 = vld [vmem:[%s6711_s11 + $0x10] sm:$0xe] }
  0xe4   : > { %v1875_v62 = vsel %vm8924_vm8, %v6496_v58, 0  ;;  %vm8925_vm13 = vcmask 31744   ;;  %v4071_v21 = vor.u32 %v4069_v34, %v4067_v11  ;;  %v4075_v12 = vrot.slane %v4073_v13, 1  ;;  %v7988_v13 = vld [vmem:[%s6711_s11 + $0x4c] sm:$0xf] }
  0xe5   : > { %6014 = vmatmul.mubr.msk.bf16.gmra.mrb[28].mxu0 %vm8925_vm13, %v5376_v2  ;;  %vm8927_vm12 = vcmp.ne.s16.totalorder %v8926_v25, 0  ;;  %v7975_v7 = vcombine.low %v7953_v1, %v7956_v22  ;;  %vm8929_vm8 = vmmov %vm8925_vm13  ;;  %vm8930_vm13 = vsmask.f32 7424  ;;  %vm8931_vm1 = vcmask 1041408   ;;  %v6499_v25 = vld [vmem:[%s6711_s11 + $0x7c] sm:$0xf] }
  0xe6   : > { %v1876_v52 = vsel %vm8927_vm12, %v6497_v39, 0  ;;  %6019 = vmatprep.mubr.msk.bf16.mxu0 %vm8929_vm8, %v4044_v54  ;;  %v4052_v2 = vsel %vm8930_vm13, %v4047_v4, %v4051_v46  ;;  %v4613_v34 = vsel %vm8931_vm1, %v7639_v63, 0  ;;  %vm8932_vm12 = vmmov %vm8929_vm8  ;;  %v4077_v39 = vshrl.u32 %v7939_v19, 16 }
  0xe7   : > { %5866 = vmatmul.mubr.msk.bf16.gmra.mrb[16].mxu1 %vm8932_vm12, %v1985_v10  ;;  %vm8933_vm4 = vmmov %vm8930_vm13  ;;  %v1877_v61 = vsel %vm8934_vm15, %v6498_v40, 0  ;;  %vm8935_vm8 = vcmp.ne.s16.totalorder %v7526_v24, 0  ;;  %vm8937_vm1 = vcmask 1046528   ;;  %v8939_v4 = vrot.slane %v7948_v45, 1  ;;  %v3935_v45 = vld [vmem:[%s6711_s11 + $0x5c] sm:$0xf] }
  0xe8   : > { %v4060_v58 = vsel %vm8933_vm4, %v4055_v44, %v4059_v37  ;;  %v1878_v46 = vsel %vm8935_vm8, %v6499_v25, 0  ;;  %vm8936_vm13 = vmmov %vm8932_vm12  ;;  %v1989_v63 = vsel %vm8937_vm1, %v1986_v30, %v1988_v17  ;;  %v5242_v19 = vcombine.low %v1875_v62, %v1876_v52  ;;  %v8029_v25 = vld [vmem:[%s6711_s11 + $0x50] sm:$0xf] }
  0xe9   : > { %5869 = vmatprep.mubr.msk.bf16.mxu1 %vm8936_vm13, %v1987_v9  ;;  %vm8938_vm10 = vmmov %vm8933_vm4  ;;  %v4081_v44 = vshll.u32 %v7975_v7, 16  ;;  %v8012_v40 = vcombine.low %v7978_v6, %v7988_v13  ;;  %vm8942_vm8 = vcmp.ne.s16.totalorder %v6717_v20, 0  ;;  %v8016_v9 = vcombine.low %v1877_v61, %v1878_v46 }
  0xea   : > { %v4068_v54 = vsel %vm8938_vm10, %v4063_v16, %v4067_v11  ;;  %vm8940_vm4 = vmmov %vm8937_vm1  ;;  %v4414_v30 = vsel %vm8942_vm8, %v4413_v48, 0  ;;  %vm8944_vm13 = vcmp.ne.s16.totalorder %v8846_v33, 0  ;;  %v4079_v62 = vor.u32 %v4077_v39, %v4075_v12  ;;  %v6500_v48 = vld [vmem:[%s6711_s11 + $0x80] sm:$0x1] }
  0xeb   : > { %v1991_v37 = vsel %vm8940_vm4, %v1988_v17, %v8939_v4  ;;  %vm8941_vm12 = vmmov %vm8938_vm10  ;;  %vm8943_vm10 = vcmp.ne.s16.totalorder %v7058_v53, 0  ;;  %v4416_v17 = vsel %vm7077_vm11, %v7845_v50, 0  ;;  %v4417_v16 = vsel %vm8944_vm13, %v7848_v32, 0 }
  0xec   : > { %v8007_v10 = vsel %vm8941_vm12, %v4071_v21, %v4075_v12  ;;  %v4415_v11 = vsel %vm8943_vm10, %v7819_v28, 0  ;;  %v4085_v21 = vshrl.u32 %v7975_v7, 16  ;;  %v5428_v52 = vcombine.low %v4416_v17, %v4417_v16  ;;  %v8035_v28 = vld [vmem:[%s6711_s11 + $0x54] sm:$0xf] }
  0xed   : > { %v5427_v20 = vcombine.low %v4414_v30, %v4415_v11  ;;  %v1992_v61 = vrot.slane %v5242_v19, 1  ;;  %vm8945_vm1 = vcmp.ne.s16.totalorder %v7530_v18, 0  ;;  %vm8946_vm11 = vcmp.ne.s16.totalorder %v8858_v60, 0  ;;  %v3934_v30 = vld [vmem:[%s6711_s11 + $0x58] sm:$0xf] }
  0xee   : > { %v1879_v53 = vsel %vm8945_vm1, %v6500_v48, 0  ;;  %v4419_v50 = vsel %vm8946_vm11, %v7855_v15, 0  ;;  %vm8947_vm4 = vcmask 31744   ;;  %v4083_v33 = vrot.slane %v4081_v44, 1 }
  0xef   : > { %6020 = vmatmul.mubr.msk.bf16.vlgmr.msra.gmra.mrb[0].mxu0 %vm8947_vm4, %v4052_v2  ;;  %v4089_v32 = vshll.u32 %v8012_v40, 16  ;;  %v4531_v12 = vrot.slane %v5427_v20, 1  ;;  %v4532_v7 = vrot.slane %v5428_v52, 1  ;;  %vm8948_vm12 = vmmov %vm8947_vm4  ;;  %v1994_v39 = vrot.slane %v8016_v9, 1 }
  0xf0   : > { %6052 = vmatpush3.bf16.msra.mxu0 %v4613_v34  ;;  %6023 = vmatprep.mubr.msk.bf16.mxu0 %vm8948_vm12, %v4060_v58  ;;  %v5429_v46 = vcombine.low %v4418_v42, %v4419_v50  ;;  %vm8949_vm0 = vcmp.ne.s16.totalorder %v8862_v47, 0  ;;  %vm8950_vm8 = vmmov %vm8947_vm4  ;;  %v5244_v27 = vcombine.low %v1879_v53, %v1879_v53  ;;  %v8056_v15 = vcombine.low %v8029_v25, %v8035_v28 }
  0xf1   : > { %v4421_v60 = vsel %vm8949_vm0, %v7867_v5, 0  ;;  %5870 = vmatmul.mubr.msk.bf16.gmra.mrb[20].mxu1 %vm8950_vm8, %v1989_v63  ;;  %vm8951_vm10 = vcmask 1046528   ;;  %vm8952_vm13 = vmmov %vm8947_vm4  ;;  %v4093_v29 = vshrl.u32 %v8012_v40, 16  ;;  %v4422_v36 = vsel %vm8869_vm5, %v7900_v3, 0 }
  0xf2   : > { %v8059_v2 = vsel %vm8951_vm10, %v4531_v12, %v4532_v7  ;;  %v5430_v34 = vcombine.low %v4420_v59, %v4421_v60  ;;  %5873 = vmatprep.mubr.msk.bf16.mxu1 %vm8952_vm13, %v1991_v37  ;;  %v4534_v47 = vrot.slane %v5429_v46, 1  ;;  %vm8953_vm7 = vcmp.ne.s16.totalorder %v8870_v51, 0  ;;  %vm8955_vm1 = vmmov %vm8951_vm10  ;;  %v3937_v46 = vld [vmem:[%s6711_s11 + $0x64] sm:$0xf] }
  0xf3   : > { %v4423_v5 = vsel %vm8953_vm7, %v7903_v56, 0  ;;  %v8954_v58 = vmov %v8939_v4  ;;  %vm8956_vm11 = vsmask.f32 7424  ;;  %v4087_v44 = vor.u32 %v4085_v21, %v4083_v33  ;;  %vm8957_vm4 = vmmov %vm8955_vm1  ;;  %v2242_v56 = vld [vmem:[%s6711_s11 + $0x8] sm:$0xf] }
  0xf4   : > { %v1993_v63 = vsel %vm8955_vm1, %v8954_v58, %v1992_v61  ;;  %v4084_v4 = vsel %vm8956_vm11, %v4079_v62, %v4083_v33  ;;  %v4536_v19 = vrot.slane %v5430_v34, 1  ;;  %v5431_v37 = vcombine.low %v4422_v36, %v4423_v5  ;;  %vm8960_vm0 = vmmov %vm8955_vm1  ;;  %v8974_v33 = vld [vmem:[#allocation23_spill] sm:$0xff]  ;;  %v2246_v5 = vld [vmem:[%s6711_s11 + $0x18] sm:$0xf] }
  0xf5   : > { %v8075_v40 = vsel %vm8957_vm4, %v4532_v7, %v4534_v47  ;;  %vm8958_vm5 = vnez %v8718_v41  ;;  %vm8959_vm12 = vcmp.ne.s16.totalorder %v7170_v35, 0  ;;  %v4091_v51 = vrot.slane %v4089_v32, 1  ;;  %vm8961_vm8 = vmmov %vm8960_vm0  ;;  %v3936_v7 = vld [vmem:[%s6711_s11 + $0x60] sm:$0xf]  ;;  %v8979_v36 = vld [vmem:[#allocation27_spill] sm:$0xff] }
  0xf6   : > { %v4424_v55 = vsel %vm8958_vm5, %v7908_v31, 0  ;;  %v4425_v3 = vsel %vm8959_vm12, %v7913_v8, 0  ;;  %v8086_v9 = vsel %vm8960_vm0, %v4534_v47, %v4536_v19  ;;  %v4538_v11 = vrot.slane %v5431_v37, 1  ;;  %v2243_v31 = vld [vmem:[%s6711_s11 + $0xc] sm:$0xf]  ;;  %vm8963_vm7 = vmmov %vm8960_vm0 }
  0xf7   : > { %v5432_v17 = vcombine.low %v4424_v55, %v4425_v3  ;;  %v1995_v16 = vsel %vm8961_vm8, %v1992_v61, %v1994_v39  ;;  %v1996_v62 = vrot.slane %v5244_v27, 1  ;;  %v4426_v41 = vsel %vm8881_vm9, %v7953_v1, 0  ;;  %6024 = vmatmul.mubr.msk.bf16.gmra.mrb[4].mxu0 %vm8952_vm13, %v4068_v54  ;;  %vm8964_vm1 = vmmov %vm8952_vm13  ;;  %v2247_v58 = vld [vmem:[%s6711_s11 + $0x1c] sm:$0xf]  ;;  %v3938_v3 = vld [vmem:[%s6711_s11 + $0x68] sm:$0xf] }
  0xf8   : > { %vm8962_vm10 = vcmp.ne.s16.totalorder %v7204_v14, 0  ;;  %v4097_v8 = vshll.u32 %v8056_v15, 16  ;;  %v8099_v21 = vsel %vm8963_vm7, %v4536_v19, %v4538_v11  ;;  %6027 = vmatprep.mubr.msk.bf16.mxu0 %vm8964_vm1, %v8007_v10  ;;  %vm8966_vm9 = vnez %v8965_v57  ;;  %vm8968_vm4 = vmmov %vm8964_vm1  ;;  %v8993_v57 = vld [vmem:[#allocation32_spill] sm:$0xff] }
  0xf9   : > { %v4427_v35 = vsel %vm8962_vm10, %v7956_v22, 0  ;;  %v4540_v20 = vrot.slane %v5432_v17, 1  ;;  %v2274_v1 = vsel %vm8966_vm9, %v2242_v56, 0  ;;  %v8105_v14 = vcombine.low %v3934_v30, %v3935_v45  ;;  %5874 = vmatmul.mubr.msk.bf16.gmra.mrb[24].mxu1 %vm8968_vm4, %v1993_v63  ;;  %vm8970_vm12 = vmmov %vm8960_vm0  ;;  %v8982_v56 = vld [vmem:[#allocation29_spill] sm:$0xff] }
  0xfa   : > { %v5433_v52 = vcombine.low %v4426_v41, %v4427_v35  ;;  %v4428_v22 = vsel %vm8884_vm14, %v7978_v6, 0  ;;  %vm8967_vm11 = vcmp.ne.s16.totalorder %v7234_v43, 0  ;;  %vm8969_vm5 = vsmask.f32 7424  ;;  %vm8971_vm0 = vmmov %vm8964_vm1  ;;  %v2245_v6 = vld [vmem:[%s6711_s11 + $0x14] sm:$0xf] }
  0xfb   : > { %v4429_v54 = vsel %vm8967_vm11, %v7988_v13, 0  ;;  %v4092_v61 = vsel %vm8969_vm5, %v4087_v44, %v4091_v51  ;;  %v8116_v10 = vsel %vm8970_vm12, %v4538_v11, %v4540_v20  ;;  %5877 = vmatprep.mubr.msk.bf16.mxu1 %vm8971_vm0, %v1995_v16  ;;  %v4095_v42 = vor.u32 %v4093_v29, %v4091_v51  ;;  %vm8976_vm8 = vmmov %vm8963_vm7  ;;  %v3939_v51 = vld [vmem:[%s6711_s11 + $0x6c] sm:$0xf]  ;;  %v8989_v35 = vld [vmem:[#allocation28_spill] sm:$0xff] }
  0xfc   : > { %v4542_v48 = vrot.slane %v5433_v52, 1  ;;  %v5434_v53 = vcombine.low %v4428_v22, %v4429_v54  ;;  %v2275_v0 = vsel %vm6692_vm2, %v2243_v31, 0  ;;  %v4430_v13 = vsel %vm8893_vm3, %v8029_v25, 0  ;;  %vm8977_vm10 = vmmov %vm8963_vm7  ;;  %v8986_v16 = vld [vmem:[#allocation30_spill] sm:$0xff]  ;;  %v8995_v22 = vld [vmem:[#allocation33_spill] sm:$0xff] }
  0xfd   : > { %vm8975_vm14 = vcmp.ne.s16.totalorder %v8974_v33, 0  ;;  %v4101_v12 = vshrl.u32 %v8056_v15, 16  ;;  %v1997_v34 = vsel %vm8977_vm10, %v1994_v39, %v1996_v62  ;;  %v4105_v29 = vshll.u32 %v8105_v14, 16  ;;  %vm8981_vm13 = vmmov %vm8963_vm7  ;;  %v2248_v33 = vld [vmem:[%s6711_s11 + $0x20] sm:$0xf] }
  0xfe   : > { %v4431_v32 = vsel %vm8975_vm14, %v8035_v28, 0  ;;  %v8132_v59 = vsel %vm8976_vm8, %v4540_v20, %v4542_v48  ;;  %v4544_v60 = vrot.slane %v5434_v53, 1  ;;  %v4432_v47 = vsel %vm8895_vm6, %v3934_v30, 0  ;;  %vm8984_vm7 = vmmov %vm8971_vm0  ;;  %v3942_v25 = vld [vmem:[%s6711_s11 + $0x78] sm:$0xf] }
  0xff   : > { %v5435_v27 = vcombine.low %v4430_v13, %v4431_v32  ;;  %vm8980_vm3 = vcmp.ne.s16.totalorder %v8979_v36, 0  ;;  %v4099_v15 = vrot.slane %v4097_v8, 1  ;;  %v5261_v44 = vcombine.low %v2274_v1, %v2275_v0  ;;  %6028 = vmatmul.mubr.msk.bf16.gmra.mrb[8].mxu0 %vm8984_vm7, %v4084_v4  ;;  %vm8985_vm1 = vmmov %vm8976_vm8  ;;  %v3940_v32 = vld [vmem:[%s6711_s11 + $0x70] sm:$0xf] }
 0x100   : > { %v4433_v28 = vsel %vm8980_vm3, %v3935_v45, 0  ;;  %v8143_v63 = vsel %vm8981_vm13, %v4542_v48, %v4544_v60  ;;  %v2277_v39 = vsel %vm6692_vm2, %v2245_v6, 0  ;;  %v5403_v55 = vcombine.low %v3936_v7, %v3937_v46  ;;  %vm8988_vm11 = vmmov %vm8971_vm0 }
 0x101   : > { %v4546_v19 = vrot.slane %v5435_v27, 1  ;;  %v5436_v37 = vcombine.low %v4432_v47, %v4433_v28  ;;  %vm8983_vm6 = vnez %v8982_v56  ;;  %v4103_v45 = vor.u32 %v4101_v12, %v4099_v15  ;;  %6031 = vmatprep.mubr.msk.bf16.mxu0 %vm8988_vm11, %v4092_v61  ;;  %vm8991_vm5 = vmmov %vm8971_vm0  ;;  %v3941_v12 = vld [vmem:[%s6711_s11 + $0x74] sm:$0xf]  ;;  %v9002_v27 = vld [vmem:[#allocation34_spill] sm:$0xff] }
 0x102   : > { %v4434_v30 = vsel %vm8983_vm6, %v3936_v7, 0  ;;  %vm8987_vm9 = vcmp.ne.s16.totalorder %v8986_v16, 0  ;;  %v4107_v41 = vrot.slane %v4105_v29, 1  ;;  %vm8990_vm4 = vnez %v8989_v35  ;;  %5878 = vmatmul.mubr.msk.bf16.gmra.mrb[28].mxu1 %vm8991_vm5, %v1997_v34  ;;  %vm8992_vm12 = vmmov %vm8985_vm1  ;;  %v3943_v47 = vld [vmem:[%s6711_s11 + $0x7c] sm:$0xf] }
 0x103   : > { %v8153_v11 = vsel %vm8985_vm1, %v4544_v60, %v4546_v19  ;;  %v4548_v17 = vrot.slane %v5436_v37, 1  ;;  %v4435_v62 = vsel %vm8987_vm9, %v3937_v46, 0  ;;  %v2278_v8 = vsel %vm8990_vm4, %v2246_v5, 0  ;;  %vm8997_vm8 = vmmov %vm8991_vm5  ;;  %v2249_v60 = vld [vmem:[%s6711_s11 + $0x24] sm:$0xf]  ;;  %v9007_v5 = vld [vmem:[#allocation31_spill] sm:$0xff] }
 0x104   : > { %v2279_v31 = vsel %vm6692_vm2, %v2247_v58, 0  ;;  %v5437_v4 = vcombine.low %v4434_v30, %v4435_v62  ;;  %v8163_v20 = vcombine.low %v3938_v3, %v3939_v51  ;;  %vm8994_vm0 = vnez %v8993_v57  ;;  %5883 = vmatprep.mubr.msk.bf16.mxu1 %vm8997_vm8, %v5261_v44  ;;  %vm9001_vm13 = vmmov %vm8985_vm1  ;;  %v9011_v44 = vld [vmem:[#allocation11_spill] sm:$0xff]  ;;  %v2251_v16 = vld [vmem:[%s6711_s11 + $0x2c] sm:$0xf] }
 0x105   : > { %v8166_v52 = vsel %vm8992_vm12, %v4546_v19, %v4548_v17  ;;  %v4436_v1 = vsel %vm8994_vm0, %v3938_v3, 0  ;;  %vm8996_vm14 = vcmp.ne.s16.totalorder %v8995_v22, 0  ;;  %v4109_v61 = vshrl.u32 %v8105_v14, 16  ;;  %v9009_v19 = vld [vmem:[#allocation37_spill] sm:$0xff]  ;;  %vm9013_vm0 = vmmov %vm8991_vm5 }
 0x106   : > { %v4437_v54 = vsel %vm8996_vm14, %v3939_v51, 0  ;;  %v4113_v48 = vshll.u32 %v5403_v55, 16  ;;  %v4550_v53 = vrot.slane %v5437_v4, 1  ;;  %vm8998_vm10 = vsmask.f32 7424  ;;  %vm9014_vm14 = vmmov %vm9013_vm0  ;;  %v9017_v22 = vld [vmem:[#allocation5_spill] sm:$0xff] }
 0x107   : > { %v4100_v0 = vsel %vm8998_vm10, %v4095_v42, %v4099_v15  ;;  %vm8999_vm3 = vnez %v8681_v26  ;;  %v5263_v13 = vcombine.low %v2278_v8, %v2279_v31  ;;  %v5438_v7 = vcombine.low %v4436_v1, %v4437_v54  ;;  %v9004_v42 = vld [vmem:[#allocation35_spill] sm:$0xff]  ;;  %vm9006_vm1 = vmmov %vm8998_vm10  ;;  %v2250_v51 = vld [vmem:[%s6711_s11 + $0x28] sm:$0xf] }
 0x108   : > { %v9000_v6 = vsel %vm8999_vm3, %v7959_v38, 0  ;;  %v4117_v46 = vshrl.u32 %v5403_v55, 16  ;;  %v8184_v14 = vsel %vm9001_vm13, %v4548_v17, %v4550_v53  ;;  %vm9003_vm6 = vnez %v9002_v27  ;;  %6032 = vmatmul.mubr.msk.bf16.gmra.mrb[12].mxu0 %vm8991_vm5, %v4100_v0  ;;  %v3944_v62 = vld [vmem:[%s6711_s11 + $0x80] sm:$0xf]  ;;  %v3945_v4 = vld [vmem:[%s6711_s11 + $0x84] sm:$0xf]  ;;  %vm9015_vm8 = vmmov %vm8992_vm12 }
 0x109   : > { %v5262_v43 = vcombine.low %v9000_v6, %v2277_v39  ;;  %v4438_v34 = vsel %vm9003_vm6, %v3940_v32, 0  ;;  %vm9005_vm7 = vcmp.ne.s16.totalorder %v9004_v42, 0  ;;  %v4108_v38 = vsel %vm9006_vm1, %v4103_v45, %v4107_v41  ;;  %vm9018_vm3 = vmmov %vm9013_vm0  ;;  %v9019_v54 = vld [vmem:[#allocation36_spill] sm:$0xff] }
 0x10a   : > { %v4439_v26 = vsel %vm9005_vm7, %v3941_v12, 0  ;;  %v4121_v29 = vshll.u32 %v8163_v20, 16  ;;  %v4552_v36 = vrot.slane %v5438_v7, 1  ;;  %v4115_v15 = vrot.slane %v4113_v48, 1  ;;  %6035 = vmatprep.mubr.msk.bf16.mxu0 %vm9013_vm0, %v4108_v38  ;;  %v3946_v48 = vld [vmem:[%s6711_s11 + $0x88] sm:$0xf]  ;;  %vm9023_vm7 = vmmov %vm9006_vm1 }
 0x10b   : > { %v5439_v28 = vcombine.low %v4438_v34, %v4439_v26  ;;  %vm9008_vm9 = vnez %v9007_v5  ;;  %vm9010_vm11 = vnez %v9009_v19  ;;  %vm9012_vm4 = vcmp.ne.s16.totalorder %v9011_v44, 0  ;;  %5884 = vmatmul.mubr.msk.bf16.vlgmr.msra.gmra.mrb[0].mxu1 %vm9014_vm14, %v5262_v43  ;;  %v9021_v0 = vld [vmem:[#allocation40_spill] sm:$0xff]  ;;  %vm9024_vm1 = vmmov %vm9015_vm8  ;;  %v3948_v38 = vld [vmem:[%s6711_s11 + $0x90] sm:$0x1] }
 0x10c   : > { %v2280_v58 = vsel %vm9008_vm9, %v2248_v33, 0  ;;  %v4440_v37 = vsel %vm9010_vm11, %v3942_v25, 0  ;;  %v4441_v39 = vsel %vm9012_vm4, %v3943_v47, 0  ;;  %v2281_v55 = vsel %vm6692_vm2, %v2249_v60, 0  ;;  %6086 = vmatpush3.bf16.msra.mxu1 %v9017_v22  ;;  %5887 = vmatprep.mubr.msk.bf16.mxu1 %vm9018_vm3, %v5263_v13  ;;  %vm9025_vm9 = vmmov %vm9023_vm7 }
 0x10d   : > { %v5405_v3 = vcombine.low %v3940_v32, %v3941_v12  ;;  %v8205_v56 = vsel %vm8992_vm12, %v4550_v53, %v4552_v36  ;;  %v4554_v30 = vrot.slane %v5439_v28, 1  ;;  %v4111_v45 = vor.u32 %v4109_v61, %v4107_v41  ;;  %vm9028_vm4 = vmmov %vm9024_vm1 }
 0x10e   : > { %v4119_v17 = vor.u32 %v4117_v46, %v4115_v15  ;;  %v5440_v35 = vcombine.low %v4440_v37, %v4441_v39  ;;  %v4123_v8 = vrot.slane %v4121_v29, 1  ;;  %v8211_v31 = vcombine.low %v3942_v25, %v3943_v47  ;;  %v3947_v46 = vld [vmem:[%s6711_s11 + $0x8c] sm:$0xf]  ;;  %v2252_v25 = vld [vmem:[%s6711_s11 + $0x30] sm:$0xf]  ;;  %vm9030_vm12 = vmmov %vm9013_vm0 }
 0x10f   : > { %v8215_v57 = vsel %vm9015_vm8, %v4552_v36, %v4554_v30  ;;  %vm9016_vm10 = vnez %v8923_v23  ;;  %v5264_v41 = vcombine.low %v2280_v58, %v2281_v55  ;;  %vm9020_vm13 = vnez %v9019_v54  ;;  %v2253_v47 = vld [vmem:[%s6711_s11 + $0x34] sm:$0xf]  ;;  %v2255_v58 = vld [vmem:[%s6711_s11 + $0x3c] sm:$0xf]  ;;  %vm9031_vm14 = vmmov %vm9013_vm0 }
 0x110   : > { %v4442_v1 = vsel %vm9016_vm10, %v3944_v62, 0  ;;  %v2282_v61 = vsel %vm9020_vm13, %v2250_v51, 0  ;;  %v4556_v53 = vrot.slane %v5440_v35, 1  ;;  %vm9022_vm6 = vcmp.ne.s16.totalorder %v9021_v0, 0  ;;  %vm9034_vm10 = vmmov %vm9024_vm1  ;;  %v2256_v0 = vld [vmem:[%s6711_s11 + $0x40] sm:$0xf] }
 0x111   : > { %v4443_v6 = vsel %vm9022_vm6, %v3945_v4, 0  ;;  %v4129_v43 = vshll.u32 %v5405_v3, 16  ;;  %v2283_v23 = vsel %vm6692_vm2, %v2251_v16, 0  ;;  %v4444_v32 = vsel %vm8934_vm15, %v3946_v48, 0  ;;  %vm9027_vm15 = vmmov %vm9013_vm0  ;;  %v9035_v16 = vld [vmem:[#allocation39_spill] sm:$0xff] }
 0x112   : > { %v5441_v33 = vcombine.low %v4442_v1, %v4443_v6  ;;  %v4116_v13 = vsel %vm9023_vm7, %v4111_v45, %v4115_v15  ;;  %v4125_v12 = vshrl.u32 %v8163_v20, 16  ;;  %v4133_v7 = vshrl.u32 %v5405_v3, 16  ;;  %v9032_v3 = vld [vmem:[#allocation38_spill] sm:$0xff]  ;;  %vm9037_vm13 = vmmov %vm9023_vm7  ;;  %v2257_v6 = vld [vmem:[%s6711_s11 + $0x44] sm:$0xf] }
 0x113   : > { %v8234_v60 = vsel %vm9024_vm1, %v4554_v30, %v4556_v53  ;;  %v4124_v27 = vsel %vm9025_vm9, %v4119_v17, %v4123_v8  ;;  %v4137_v34 = vshll.u32 %v8211_v31, 16  ;;  %vm9026_vm11 = vcmp.ne.s16.totalorder %v7526_v24, 0  ;;  %6036 = vmatmul.mubr.msk.bf16.gmra.mrb[16].mxu0 %vm9027_vm15, %v4116_v13  ;;  %v2254_v24 = vld [vmem:[%s6711_s11 + $0x38] sm:$0xf]  ;;  %5888 = vmatmul.mubr.msk.bf16.gmra.mrb[4].mxu1 %vm9013_vm0, %v5264_v41  ;;  %vm9038_vm6 = vmmov %vm9024_vm1 }
 0x114   : > { %v4558_v42 = vrot.slane %v5441_v33, 1  ;;  %v4445_v49 = vsel %vm9026_vm11, %v3947_v46, 0  ;;  %v5265_v26 = vcombine.low %v2282_v61, %v2283_v23  ;;  %v4131_v20 = vrot.slane %v4129_v43, 1  ;;  %6039 = vmatprep.mubr.msk.bf16.mxu0 %vm9030_vm12, %v4124_v27  ;;  %vm9039_vm1 = vmmov %vm9013_vm0  ;;  %v2258_v33 = vld [vmem:[%s6711_s11 + $0x48] sm:$0xf]  ;;  %v9045_v27 = vld [vmem:[#allocation13_spill] sm:$0xff] }
 0x115   : > { %v5442_v29 = vcombine.low %v4444_v32, %v4445_v49  ;;  %v5407_v36 = vcombine.low %v3944_v62, %v3945_v4  ;;  %vm9029_vm5 = vcmp.ne.s16.totalorder %v7530_v18, 0  ;;  %v4127_v5 = vor.u32 %v4125_v12, %v4123_v8  ;;  %vm9040_vm9 = vmmov %vm9013_vm0  ;;  %v9043_v12 = vld [vmem:[#allocation10_spill] sm:$0xff] }
 0x116   : > { %v8245_v28 = vsel %vm9028_vm4, %v4556_v53, %v4558_v42  ;;  %v4446_v15 = vsel %vm9029_vm5, %v3948_v38, 0  ;;  %v4135_v44 = vor.u32 %v4133_v7, %v4131_v20  ;;  %v4139_v39 = vrot.slane %v4137_v34, 1  ;;  %5891 = vmatprep.mubr.msk.bf16.mxu1 %vm9031_vm14, %v5265_v26  ;;  %vm9041_vm11 = vmmov %vm9013_vm0 }
 0x117   : > { %v4560_v19 = vrot.slane %v5442_v29, 1  ;;  %v5443_v37 = vcombine.low %v4446_v15, %v4446_v15  ;;  %v5408_v55 = vcombine.low %v3946_v48, %v3947_v46  ;;  %vm9033_vm8 = vnez %v9032_v3  ;;  %vm9042_vm15 = vmmov %vm9013_vm0 }
 0x118   : > { %v2284_v51 = vsel %vm9033_vm8, %v2252_v25, 0  ;;  %v2285_v18 = vsel %vm6692_vm2, %v2253_v47, 0  ;;  %v4145_v17 = vshll.u32 %v5407_v36, 16  ;;  %vm9036_vm3 = vnez %v9035_v16  ;;  %vm9047_vm12 = vmmov %vm9023_vm7  ;;  %v2260_v47 = vld [vmem:[%s6711_s11 + $0x50] sm:$0xf] }
 0x119   : > { %v8259_v30 = vsel %vm9034_vm10, %v4558_v42, %v4560_v19  ;;  %v4562_v45 = vrot.slane %v5443_v37, 1  ;;  %v2286_v62 = vsel %vm9036_vm3, %v2254_v24, 0  ;;  %v2287_v35 = vsel %vm6692_vm2, %v2255_v58, 0  ;;  %vm9048_vm0 = vmmov %vm9023_vm7  ;;  %v2262_v24 = vld [vmem:[%s6711_s11 + $0x58] sm:$0xf] }
 0x11a   : > { %v4132_v8 = vsel %vm9037_vm13, %v4127_v5, %v4131_v20  ;;  %v4141_v4 = vshrl.u32 %v8211_v31, 16  ;;  %v4140_v22 = vsel %vm9023_vm7, %v4135_v44, %v4139_v39  ;;  %v5266_v41 = vcombine.low %v2284_v51, %v2285_v18  ;;  %v2259_v31 = vld [vmem:[%s6711_s11 + $0x4c] sm:$0xf]  ;;  %vm9049_vm14 = vmmov %vm9039_vm1  ;;  %v2263_v58 = vld [vmem:[%s6711_s11 + $0x5c] sm:$0xf] }
 0x11b   : > { %v8268_v1 = vsel %vm9038_vm6, %v4560_v19, %v4562_v45  ;;  %v4149_v54 = vshrl.u32 %v5407_v36, 16  ;;  %v4153_v61 = vshll.u32 %v5408_v55, 16  ;;  %v5267_v48 = vcombine.low %v2286_v62, %v2287_v35  ;;  %6040 = vmatmul.mubr.msk.bf16.gmra.mrb[20].mxu0 %vm9039_vm1, %v4132_v8  ;;  %v2261_v36 = vld [vmem:[%s6711_s11 + $0x54] sm:$0xf]  ;;  %vm9050_vm8 = vmmov %vm9039_vm1  ;;  %v9053_v19 = vld [vmem:[#allocation12_spill] sm:$0xff] }
 0x11c   : > { %v4147_v53 = vrot.slane %v4145_v17, 1  ;;  %6043 = vmatprep.mubr.msk.bf16.mxu0 %vm9040_vm9, %v4140_v22  ;;  %v4143_v43 = vor.u32 %v4141_v4, %v4139_v39  ;;  %v5409_v23 = vcombine.low %v3948_v38, %v3948_v38  ;;  %5892 = vmatmul.mubr.msk.bf16.gmra.mrb[8].mxu1 %vm9041_vm11, %v5266_v41  ;;  %vm9044_vm4 = vnez %v9043_v12  ;;  %vm9051_vm10 = vmmov %vm9039_vm1  ;;  %v9055_v39 = vld [vmem:[#allocation14_spill] sm:$0xff]  ;;  %v2264_v17 = vld [vmem:[%s6711_s11 + $0x60] sm:$0xf] }
 0x11d   : > { %v4155_v13 = vrot.slane %v4153_v61, 1  ;;  %5895 = vmatprep.mubr.msk.bf16.mxu1 %vm9042_vm15, %v5267_v48  ;;  %v2288_v7 = vsel %vm9044_vm4, %v2256_v0, 0  ;;  %v2289_v46 = vsel %vm6692_vm2, %v2257_v6, 0  ;;  %vm9046_vm5 = vnez %v9045_v27  ;;  %vm9052_vm3 = vmmov %vm9039_vm1  ;;  %v2265_v16 = vld [vmem:[%s6711_s11 + $0x64] sm:$0xf]  ;;  %v9061_v8 = vld [vmem:[#allocation15_spill] sm:$0xff] }
 0x11e   : > { %v4151_v32 = vor.u32 %v4149_v54, %v4147_v53  ;;  %v2290_v34 = vsel %vm9046_vm5, %v2258_v33, 0  ;;  %v2291_v42 = vsel %vm6692_vm2, %v2259_v31, 0  ;;  %v4148_v49 = vsel %vm9047_vm12, %v4143_v43, %v4147_v53  ;;  %vm9057_vm7 = vmmov %vm9048_vm0  ;;  %v2266_v62 = vld [vmem:[%s6711_s11 + $0x68] sm:$0xf]  ;;  %v2267_v35 = vld [vmem:[%s6711_s11 + $0x6c] sm:$0xf] }
 0x11f   : > { %v4157_v26 = vshrl.u32 %v5408_v55, 16  ;;  %v4161_v38 = vshll.u32 %v5409_v23, 16  ;;  %v5268_v20 = vcombine.low %v2288_v7, %v2289_v46  ;;  %v5269_v25 = vcombine.low %v2290_v34, %v2291_v42  ;;  %vm9058_vm9 = vmmov %vm9039_vm1  ;;  %v9063_v41 = vld [vmem:[#allocation41_spill] sm:$0xff]  ;;  %v2268_v53 = vld [vmem:[%s6711_s11 + $0x70] sm:$0xf] }
 0x120   : > { %v4156_v29 = vsel %vm9048_vm0, %v4151_v32, %v4155_v13  ;;  %vm9054_vm13 = vnez %v9053_v19  ;;  %v2293_v44 = vsel %vm6692_vm2, %v2261_v36, 0  ;;  %vm9056_vm6 = vnez %v9055_v39  ;;  %vm9059_vm11 = vmmov %vm9039_vm1  ;;  %v2269_v0 = vld [vmem:[%s6711_s11 + $0x74] sm:$0xf]  ;;  %v2270_v6 = vld [vmem:[%s6711_s11 + $0x78] sm:$0xf] }
 0x121   : > { %v4159_v15 = vor.u32 %v4157_v26, %v4155_v13  ;;  %v4163_v5 = vrot.slane %v4161_v38, 1  ;;  %v2292_v37 = vsel %vm9054_vm13, %v2260_v47, 0  ;;  %v2294_v55 = vsel %vm9056_vm6, %v2262_v24, 0  ;;  %vm9060_vm15 = vmmov %vm9039_vm1  ;;  %v2271_v43 = vld [vmem:[%s6711_s11 + $0x7c] sm:$0xf]  ;;  %v9069_v23 = vld [vmem:[#allocation42_spill] sm:$0xff] }
 0x122   : > { %v2295_v3 = vsel %vm6692_vm2, %v2263_v58, 0  ;;  %v5270_v18 = vcombine.low %v2292_v37, %v2293_v44  ;;  %vm9062_vm4 = vnez %v9061_v8  ;;  %v2297_v22 = vsel %vm6692_vm2, %v2265_v16, 0  ;;  %vm9065_vm12 = vmmov %vm9039_vm1  ;;  %v6502_v12 = vld [vmem:[%s6711_s11 + $0x54] sm:$0xf]  ;;  %v2272_v34 = vld [vmem:[%s6711_s11 + $0x80] sm:$0xf] }
 0x123   : > { %6044 = vmatmul.mubr.msk.bf16.gmra.mrb[24].mxu0 %vm9049_vm14, %v4148_v49  ;;  %v4164_v51 = vsel %vm9057_vm7, %v4159_v15, %v4163_v5  ;;  %v5271_v45 = vcombine.low %v2294_v55, %v2295_v3  ;;  %v2296_v4 = vsel %vm9062_vm4, %v2264_v17, 0  ;;  %vm9064_vm5 = vnez %v9063_v41  ;;  %vm9066_vm0 = vmmov %vm9039_vm1  ;;  %v2273_v42 = vld [vmem:[%s6711_s11 + $0x84] sm:$0xf]  ;;  %v9074_v49 = vld [vmem:[#allocation16_spill] sm:$0xff] }
 0x124   : > { %6047 = vmatprep.mubr.msk.bf16.mxu0 %vm9050_vm8, %v4156_v29  ;;  %5896 = vmatmul.mubr.msk.bf16.gmra.mrb[12].mxu1 %vm9051_vm10, %v5268_v20  ;;  %v2298_v54 = vsel %vm9064_vm5, %v2266_v62, 0  ;;  %v5272_v61 = vcombine.low %v2296_v4, %v2297_v22  ;;  %vm9067_vm14 = vmmov %vm9066_vm0  ;;  %vm9070_vm10 = vnez %v9069_v23  ;;  %v2301_v31 = vsel %vm6692_vm2, %v2269_v0, 0  ;;  %v9078_v29 = vld [vmem:[#allocation18_spill] sm:$0xff]  ;;  %v9080_v47 = vld [vmem:[#allocation17_spill] sm:$0xff] }
 0x125   : > { %5899 = vmatprep.mubr.msk.bf16.mxu1 %vm9052_vm3, %v5269_v25  ;;  %vm9068_vm8 = vmmov %vm9066_vm0  ;;  %v2300_v33 = vsel %vm9070_vm10, %v2268_v53, 0  ;;  %v2303_v13 = vsel %vm6692_vm2, %v2271_v43, 0  ;;  %v2820_v26 = vshrl.u32 %v9074_v49, 16  ;;  %v2305_v25 = vsel %vm6692_vm2, %v2273_v42, 0  ;;  %v6503_v15 = vld [vmem:[%s6711_s11 + $0x60] sm:$0xf] }
 0x126   : > { %v5274_v46 = vcombine.low %v2300_v33, %v2301_v31  ;;  %vm9073_vm13 = vmmov %vm9066_vm0  ;;  %v6504_v5 = vld [vmem:[%s6711_s11 + $0x64] sm:$0xf]  ;;  %v6505_v3 = vld [vmem:[%s6711_s11 + $0x68] sm:$0xf] }
 0x127   : > { %vm9075_vm6 = vmmov %vm9066_vm0  ;;  %v5305_v24 = vcombine.low %v6503_v15, %v6504_v5  ;;  %v6507_v16 = vld [vmem:[%s6711_s11 + $0x70] sm:$0xf]  ;;  %v6508_v62 = vld [vmem:[%s6711_s11 + $0x74] sm:$0xf] }
 0x128   : > { %vm9076_vm7 = vmmov %vm9066_vm0  ;;  %v6512_v23 = vld [vmem:[%s6711_s11 + $0x84] sm:$0xf] }
 0x129   : > { %v2840_v39 = vshll.u32 %v5305_v24, 16  ;;  %vm9085_vm4 = vmmov %vm9066_vm0 }
 0x12a   : > { %vm9086_vm5 = vmmov %vm9066_vm0 }
 0x12b   : > { %6048 = vmatmul.mubr.msk.bf16.gmra.mrb[28].mxu0 %vm9039_vm1, %v4164_v51  ;;  %vm9077_vm1 = vmmov %vm9066_vm0  ;;  %v6506_v51 = vld [vmem:[%s6711_s11 + $0x6c] sm:$0xf] }
 0x12c   : > { %6053 = vmatprep.mubr.msk.bf16.mxu0 %vm9058_vm9, %v8059_v2  ;;  %5900 = vmatmul.mubr.msk.bf16.gmra.mrb[16].mxu1 %vm9059_vm11, %v5270_v18  ;;  %v2299_v2 = vsel %vm6692_vm2, %v2267_v35, 0  ;;  %vm9079_vm9 = vnez %v9078_v29  ;;  %vm9082_vm11 = vmmov %vm9066_vm0  ;;  %v5306_v18 = vcombine.low %v6505_v3, %v6506_v51  ;;  %v5307_v35 = vcombine.low %v6507_v16, %v6508_v62 }
 0x12d   : > { %5903 = vmatprep.mubr.msk.bf16.mxu1 %vm9060_vm15, %v5271_v45  ;;  %v5273_v48 = vcombine.low %v2298_v54, %v2299_v2  ;;  %v2304_v20 = vsel %vm9079_vm9, %v2272_v34, 0  ;;  %vm9083_vm15 = vsmask.f32 7424  ;;  %vm9084_vm2 = vmmov %vm9066_vm0 }
 0x12e   : > { %v5276_v58 = vcombine.low %v2304_v20, %v2305_v25  ;;  %v2848_v8 = vshll.u32 %v5306_v18, 16  ;;  %v2852_v41 = vshrl.u32 %v5306_v18, 16  ;;  %v2856_v54 = vshll.u32 %v5307_v35, 16  ;;  %vm9090_vm10 = vmmov %vm9066_vm0 }
 0x12f   : > { %vm9096_vm9 = vmmov %vm9066_vm0 }
 0x130   : > { %v2850_v2 = vrot.slane %v2848_v8, 1  ;;  %v2858_v43 = vrot.slane %v2856_v54, 1 }
 0x133   : > { %6054 = vmatmul.mubr.msk.bf16.vlgmr.msra.gmra.mrb[0].mxu0 %vm9065_vm12, %v8075_v40  ;;  %v9071_v40 = vld [vmem:[#allocation43_spill] sm:$0xff]  ;;  %vm9087_vm12 = vmmov %vm9083_vm15 }
 0x134   : > { %6057 = vmatprep.mubr.msk.bf16.mxu0 %vm9066_vm0, %v8086_v9  ;;  %5904 = vmatmul.mubr.msk.bf16.gmra.mrb[20].mxu1 %vm9067_vm14, %v5272_v61  ;;  %vm9072_vm3 = vnez %v9071_v40  ;;  %v6501_v9 = vld [vmem:[%s6711_s11 + $0x50] sm:$0xf]  ;;  %vm9088_vm14 = vmmov %vm9087_vm12  ;;  %v6509_v61 = vld [vmem:[%s6711_s11 + $0x78] sm:$0xf] }
 0x135   : > { %5907 = vmatprep.mubr.msk.bf16.mxu1 %vm9068_vm8, %v5273_v48  ;;  %v2302_v32 = vsel %vm9072_vm3, %v2270_v6, 0  ;;  %v5303_v7 = vcombine.low %v6501_v9, %v6502_v12  ;;  %vm9089_vm8 = vmmov %vm9066_vm0  ;;  %v6510_v48 = vld [vmem:[%s6711_s11 + $0x7c] sm:$0xf]  ;;  %v2854_v6 = vor.u32 %v2852_v41, %v2850_v2 }
 0x136   : > { %v5275_v27 = vcombine.low %v2302_v32, %v2303_v13  ;;  %v5308_v53 = vcombine.low %v6509_v61, %v6510_v48  ;;  %vm9091_vm3 = vmmov %vm9066_vm0  ;;  %v2860_v32 = vshrl.u32 %v5307_v35, 16 }
 0x137   : > { %v2824_v38 = vshll.u32 %v5303_v7, 16  ;;  %v2828_v37 = vshrl.u32 %v5303_v7, 16 }
 0x138   : > { %v2864_v31 = vshll.u32 %v5308_v53, 16  ;;  %v2868_v13 = vshrl.u32 %v5308_v53, 16  ;;  %v2862_v7 = vor.u32 %v2860_v32, %v2858_v43 }
 0x139   : > { %v2826_v36 = vrot.slane %v2824_v38, 1 }
 0x13a   : > { %v2866_v12 = vrot.slane %v2864_v31, 1 }
 0x13b   : > { %6058 = vmatmul.mubr.msk.bf16.gmra.mrb[4].mxu0 %vm9073_vm13, %v8099_v21  ;;  %v2822_v21 = vor.u32 %v2820_v26, %v9080_v47  ;;  %v2830_v45 = vor.u32 %v2828_v37, %v2826_v36  ;;  %vm9092_vm13 = vmmov %vm9087_vm12 }
 0x13c   : > { %6061 = vmatprep.mubr.msk.bf16.mxu0 %vm9075_vm6, %v8116_v10  ;;  %5908 = vmatmul.mubr.msk.bf16.gmra.mrb[24].mxu1 %vm9076_vm7, %v5274_v46  ;;  %v9081_v10 = vld [vmem:[#allocation25_spill] sm:$0xff]  ;;  %vm9093_vm6 = vmmov %vm9066_vm0  ;;  %v6513_v46 = vld [vmem:[%s6711_s11 + $0x88] sm:$0x1]  ;;  %v2870_v34 = vor.u32 %v2868_v13, %v2866_v12 }
 0x13d   : > { %5911 = vmatprep.mubr.msk.bf16.mxu1 %vm9077_vm1, %v5275_v27  ;;  %v2832_v19 = vshll.u32 %v9081_v10, 16  ;;  %v2827_v50 = vsel %vm9083_vm15, %v2822_v21, %v2826_v36  ;;  %v2836_v44 = vshrl.u32 %v9081_v10, 16  ;;  %vm9094_vm7 = vmmov %vm9087_vm12  ;;  %v5310_v27 = vcombine.low %v6513_v46, %v6513_v46 }
 0x13e   : > { %vm9095_vm1 = vmmov %vm9066_vm0 }
 0x13f   : > { %v2834_v55 = vrot.slane %v2832_v19, 1  ;;  %vm9098_vm15 = vmmov %vm9094_vm7  ;;  %v2880_v26 = vshll.u32 %v5310_v27, 16 }
 0x140   : > { %v2867_v49 = vsel %vm9098_vm15, %v2862_v7, %v2866_v12 }
 0x141   : > { %v2838_v17 = vor.u32 %v2836_v44, %v2834_v55  ;;  %v2835_v4 = vsel %vm9087_vm12, %v2830_v45, %v2834_v55  ;;  %vm9102_vm12 = vmmov %vm9066_vm0  ;;  %v2882_v29 = vrot.slane %v2880_v26, 1  ;;  %v8420_v44 = vld [vmem:[%s8538_s2] ss:$0 sm:$0xff] }
 0x143   : > { %6062 = vmatmul.mubr.msk.bf16.gmra.mrb[8].mxu0 %vm9082_vm11, %v8132_v59  ;;  %v2842_v59 = vrot.slane %v2840_v39, 1  ;;  %vm9097_vm11 = vmmov %vm9066_vm0 }
 0x144   : > { %6065 = vmatprep.mubr.msk.bf16.mxu0 %vm9084_vm2, %v8143_v63  ;;  %5912 = vmatmul.mubr.msk.bf16.gmra.mrb[28].mxu1 %vm9085_vm4, %v5276_v58  ;;  %v2844_v63 = vshrl.u32 %v5305_v24, 16  ;;  %vm9099_vm2 = vmmov %vm9066_vm0 }
 0x145   : > { %5933 = vmatprep.mubr.msk.bf16.mxu1 %vm9086_vm5, %v2827_v50  ;;  %v2843_v22 = vsel %vm9088_vm14, %v2838_v17, %v2842_v59  ;;  %vm9100_vm4 = vmmov %vm9094_vm7 }
 0x146   : > { %v2846_v0 = vor.u32 %v2844_v63, %v2842_v59  ;;  %vm9101_vm5 = vmmov %vm9066_vm0 }
 0x147   : > { %vm9103_vm14 = vmmov %vm9100_vm4 }
 0x148   : > { %v2851_v40 = vsel %vm9092_vm13, %v2846_v0, %v2850_v2  ;;  %vm9107_vm13 = vmmov %vm9066_vm0 }
 0x14b   : > { %6066 = vmatmul.mubr.msk.bf16.gmra.mrb[12].mxu0 %vm9066_vm0, %v8153_v11  ;;  %v6511_v11 = vld [vmem:[%s6711_s11 + $0x80] sm:$0xf]  ;;  %s8429_s11 = scalar_lea.vmem [#allocation2], %s5160_s10 }
 0x14c   : > { %6069 = vmatprep.mubr.msk.bf16.mxu0 %vm9089_vm8, %v8166_v52  ;;  %5934 = vmatmul.mubr.msk.bf16.vlgmr.msra.gmra.mrb[16].mxu1 %vm9090_vm10, %v2835_v4  ;;  %v5309_v33 = vcombine.low %v6511_v11, %v6512_v23  ;;  %v2859_v52 = vsel %vm9094_vm7, %v2854_v6, %v2858_v43  ;;  %vm9104_vm8 = vmmov %vm9066_vm0  ;;  %s5054_s19 = sshll.u32 %s8429_s11, 4  ;;  %s8484_s19 = int_to_ptr.vmem [resolvable:$true] %s5054_s19 }
 0x14d   : > { %5937 = vmatprep.mubr.msk.bf16.mxu1 %vm9091_vm3, %v2843_v22  ;;  %vm9105_vm10 = vmmov %vm9066_vm0  ;;  %s6514_s27 = scalar_lea.vmem %s8484_s19, 2048  ;;  %p6521_p1 = scmp.lt.s32.totalorder %s8484_s19, %s6519_s29 }
 0x14e   : > { %v2872_v9 = vshll.u32 %v5309_v33, 16  ;;  %vm9106_vm3 = vmmov %vm9066_vm0  ;;  %p6515_p12 = scmp.ne.s32.totalorder %s8484_s19, %s6514_s27  ;;  %p6522_p2 = scmp.lt.s32.totalorder %s6520_s30, %s6514_s27 }
 0x150   : > { %v2874_v42 = vrot.slane %v2872_v9, 1  ;;  %p6516_p13 = pnand %p6515_p12, %p6659_p4  ;;  %p6523_p3 = por %p6522_p2, %p6521_p1 }
 0x152   : > { %v2875_v38 = vsel %vm9100_vm4, %v2870_v34, %v2874_v42  ;;  %p6517_p0 = pneg %p6516_p13 }
 0x153   : > { %6070 = vmatmul.mubr.msk.bf16.gmra.mrb[16].mxu0 %vm9093_vm6, %v8184_v14  ;;  %v2876_v14 = vshrl.u32 %v5309_v33, 16 }
 0x154   : > { %6073 = vmatprep.mubr.msk.bf16.mxu0 %vm9095_vm1, %v8205_v56  ;;  %5938 = vmatmul.mubr.msk.bf16.gmra.mrb[20].mxu1 %vm9096_vm9, %v2851_v40  ;;  %p6524_p5 = pnand %p6523_p3, %p6517_p0 }
 0x155   : > { %5941 = vmatprep.mubr.msk.bf16.mxu1 %vm9097_vm11, %v2859_v52  ;;  %v2878_v56 = vor.u32 %v2876_v14, %v2874_v42 }
 0x157   : > { %v2883_v20 = vsel %vm9103_vm14, %v2878_v56, %v2882_v29 }
 0x15b   : > { %6074 = vmatmul.mubr.msk.bf16.gmra.mrb[20].mxu0 %vm9099_vm2, %v8215_v57 }
 0x15c   : > { %6077 = vmatprep.mubr.msk.bf16.mxu0 %vm9101_vm5, %v8234_v60  ;;  %5942 = vmatmul.mubr.msk.bf16.gmra.mrb[24].mxu1 %vm9102_vm12, %v2867_v49 }
 0x15d   : > { %5945 = vmatprep.mubr.msk.bf16.mxu1 %vm9066_vm0, %v2875_v38 }
 0x163   : > { %6078 = vmatmul.mubr.msk.bf16.gmra.mrb[24].mxu0 %vm9104_vm8, %v8245_v28 }
 0x164   : > { %6081 = vmatprep.mubr.msk.bf16.mxu0 %vm9105_vm10, %v8259_v30  ;;  %5946 = vmatmul.mubr.msk.bf16.gmra.mrb[28].mxu1 %vm9106_vm3, %v2883_v20 }
 0x16b   : > { %6082 = vmatmul.mubr.msk.bf16.gmra.mrb[28].mxu0 %vm9107_vm13, %v8268_v1 }
 0x1de   : > { %v5885_v57 = vpop.f32.mrb[0].mxu1 }
 0x1df   : > { %v2476_v60 = vpop.f32.mrb[1].mxu1 }
 0x1e0   : > { %v5886_v25 = vpop.f32.mrb[2].mxu1 }
 0x1e1   : > { %v2479_v47 = vpop.f32.mrb[3].mxu1 }
 0x1e6   : > { %v5889_v21 = vpop.f32.mrb[4].mxu1 }
 0x1e7   : > { %v2492_v36 = vpop.f32.mrb[5].mxu1 }
 0x1e8   : > { %v5890_v15 = vpop.f32.mrb[6].mxu1 }
 0x1e9   : > { %v2495_v5 = vpop.f32.mrb[7].mxu1 }
 0x1ef   : > { %v5893_v24 = vpop.f32.mrb[8].mxu1 }
 0x1f0   : > { %v2508_v58 = vpop.f32.mrb[9].mxu1 }
 0x1f1   : > { %v5894_v28 = vpop.f32.mrb[10].mxu1 }
 0x1f2   : > { %v2511_v10 = vpop.f32.mrb[11].mxu1 }
 0x1f7   : > { %v8409_v19 = vpop.f32.mrb[12].mxu1 }
 0x1f8   : > { %v8411_v30 = vpop.f32.mrb[13].mxu1 }
 0x1f9   : > { %v8413_v37 = vpop.f32.mrb[14].mxu1 }
 0x1fa   : > { %v8415_v1 = vpop.f32.mrb[15].mxu1 }
 0x206   : > { %v6055_v50 = vpop.f32.mrb[0].mxu0 }
 0x207   : > { %v6087_v39 = vadd.f32 %v6055_v50, %v5885_v57  ;;  %v4649_v55 = vpop.f32.mrb[1].mxu0 }
 0x208   : > { %v6088_v3 = vadd.f32 %v4649_v55, %v2476_v60  ;;  %v6056_v51 = vpop.f32.mrb[2].mxu0 }
 0x209   : > { %v4817_v18 = vadd.f32 %v6087_v39, %v8420_v44  ;;  %v6089_v45 = vadd.f32 %v6056_v51, %v5886_v25  ;;  %v4652_v17 = vpop.f32.mrb[3].mxu0 }
 0x20a   : > { %v4815_v59 = vadd.f32 %v6088_v3, %v8420_v44  ;;  %v6090_v16 = vadd.f32 %v4652_v17, %v2479_v47 }
 0x20b   : > { %v4818_v62 = vadd.f32 %v6089_v45, %v8420_v44  ;;  %v4849_v8 = vmax.f32 %v4817_v18, 0.0 }
 0x20c   : > { %v4816_v35 = vadd.f32 %v6090_v16, %v8420_v44  ;;  %v4847_v63 = vmax.f32 %v4815_v59, 0.0 }
 0x20d   : > { %v4850_v4 = vmax.f32 %v4818_v62, 0.0 }
 0x20e   : > { %v4848_v22 = vmax.f32 %v4816_v35, 0.0  ;;  %v6059_v41 = vpop.f32.mrb[4].mxu0 }
 0x20f   : > { %v5539_v54 = vpack.c.bf16 %v4850_v4, %v4849_v8  ;;  %v6091_v2 = vadd.f32 %v6059_v41, %v5889_v21  ;;  %v4665_v61 = vpop.f32.mrb[5].mxu0 }
 0x210   : > { %v5534_v48 = vpack.c.bf16 %v4848_v22, %v4847_v63  ;;  %v6092_v53 = vadd.f32 %v4665_v61, %v2492_v36  ;;  %v6060_v0 = vpop.f32.mrb[6].mxu0 }
 0x211   : > { %5611 = vst [vmem:[%s8429_s11 + $0x8] sm:$0xff] %v5539_v54   ;;  %v4821_v6 = vadd.f32 %v6091_v2, %v8420_v44  ;;  %v6093_v43 = vadd.f32 %v6060_v0, %v5890_v15  ;;  %v4668_v11 = vpop.f32.mrb[7].mxu0 }
 0x212   : > { %5535 = vst [vmem:[%s8429_s11] sm:$0xff] %v5534_v48   ;;  %v4819_v23 = vadd.f32 %v6092_v53, %v8420_v44  ;;  %v6094_v33 = vadd.f32 %v4668_v11, %v2495_v5 }
 0x213   : > { %v4822_v31 = vadd.f32 %v6093_v43, %v8420_v44  ;;  %v4853_v32 = vmax.f32 %v4821_v6, 0.0 }
 0x214   : > { %v4820_v40 = vadd.f32 %v6094_v33, %v8420_v44  ;;  %v4851_v13 = vmax.f32 %v4819_v23, 0.0 }
 0x215   : > { %v4854_v52 = vmax.f32 %v4822_v31, 0.0 }
 0x216   : > { %v4852_v9 = vmax.f32 %v4820_v40, 0.0  ;;  %v6063_v12 = vpop.f32.mrb[8].mxu0 }
 0x217   : > { %v5549_v7 = vpack.c.bf16 %v4854_v52, %v4853_v32  ;;  %v6095_v46 = vadd.f32 %v6063_v12, %v5893_v24  ;;  %v4681_v27 = vpop.f32.mrb[9].mxu0 }
 0x218   : > { %v5544_v34 = vpack.c.bf16 %v4852_v9, %v4851_v13  ;;  %v6096_v42 = vadd.f32 %v4681_v27, %v2508_v58  ;;  %v6064_v49 = vpop.f32.mrb[10].mxu0 }
 0x219   : > { %5613 = vst [vmem:[%s8429_s11 + $0x18] sm:$0xff] %v5549_v7   ;;  %v4825_v14 = vadd.f32 %v6095_v46, %v8420_v44  ;;  %v6097_v26 = vadd.f32 %v6064_v49, %v5894_v28  ;;  %v4684_v38 = vpop.f32.mrb[11].mxu0 }
 0x21a   : > { %5612 = vst [vmem:[%s8429_s11 + $0x10] sm:$0xff] %v5544_v34   ;;  %v4823_v56 = vadd.f32 %v6096_v42, %v8420_v44  ;;  %v6098_v29 = vadd.f32 %v4684_v38, %v2511_v10 }
 0x21b   : > { %v4826_v20 = vadd.f32 %v6097_v26, %v8420_v44  ;;  %v4857_v60 = vmax.f32 %v4825_v14, 0.0 }
 0x21c   : > { %v4824_v57 = vadd.f32 %v6098_v29, %v8420_v44  ;;  %v4855_v47 = vmax.f32 %v4823_v56, 0.0 }
 0x21d   : > { %v4858_v25 = vmax.f32 %v4826_v20, 0.0 }
 0x21e   : > { %v4856_v21 = vmax.f32 %v4824_v57, 0.0  ;;  %v6067_v36 = vpop.f32.mrb[12].mxu0 }
 0x21f   : > { %v5559_v15 = vpack.c.bf16 %v4858_v25, %v4857_v60  ;;  %v6099_v5 = vadd.f32 %v6067_v36, %v8409_v19  ;;  %v4697_v24 = vpop.f32.mrb[13].mxu0  ;;  %v5935_v39 = vpop.f32.mrb[16].mxu1 }
 0x220   : > { %v5554_v58 = vpack.c.bf16 %v4856_v21, %v4855_v47  ;;  %v6100_v28 = vadd.f32 %v4697_v24, %v8411_v30  ;;  %v6068_v50 = vpop.f32.mrb[14].mxu0  ;;  %v3033_v51 = vpop.f32.mrb[17].mxu1 }
 0x221   : > { %5615 = vst [vmem:[%s8429_s11 + $0x28] sm:$0xff] %v5559_v15   ;;  %v4829_v10 = vadd.f32 %v6099_v5, %v8420_v44  ;;  %v6101_v55 = vadd.f32 %v6068_v50, %v8413_v37  ;;  %v4700_v3 = vpop.f32.mrb[15].mxu0  ;;  %v5936_v17 = vpop.f32.mrb[18].mxu1 }
 0x222   : > { %5614 = vst [vmem:[%s8429_s11 + $0x20] sm:$0xff] %v5554_v58   ;;  %v4827_v18 = vadd.f32 %v6100_v28, %v8420_v44  ;;  %v6102_v45 = vadd.f32 %v4700_v3, %v8415_v1  ;;  %v3036_v59 = vpop.f32.mrb[19].mxu1 }
 0x223   : > { %v4830_v19 = vadd.f32 %v6101_v55, %v8420_v44  ;;  %v4861_v16 = vmax.f32 %v4829_v10, 0.0 }
 0x224   : > { %v4828_v30 = vadd.f32 %v6102_v45, %v8420_v44  ;;  %v4859_v35 = vmax.f32 %v4827_v18, 0.0 }
 0x225   : > { %v4862_v62 = vmax.f32 %v4830_v19, 0.0 }
 0x226   : > { %v4860_v8 = vmax.f32 %v4828_v30, 0.0  ;;  %v6071_v37 = vpop.f32.mrb[16].mxu0 }
 0x227   : > { %v5569_v4 = vpack.c.bf16 %v4862_v62, %v4861_v16  ;;  %v6103_v63 = vadd.f32 %v6071_v37, %v5935_v39  ;;  %v4713_v22 = vpop.f32.mrb[17].mxu0  ;;  %v5939_v1 = vpop.f32.mrb[20].mxu1 }
 0x228   : > { %v5564_v41 = vpack.c.bf16 %v4860_v8, %v4859_v35  ;;  %v6104_v54 = vadd.f32 %v4713_v22, %v3033_v51  ;;  %v6072_v2 = vpop.f32.mrb[18].mxu0  ;;  %v3049_v0 = vpop.f32.mrb[21].mxu1 }
 0x229   : > { %5617 = vst [vmem:[%s8429_s11 + $0x38] sm:$0xff] %v5569_v4   ;;  %v4833_v61 = vadd.f32 %v6103_v63, %v8420_v44  ;;  %v6105_v48 = vadd.f32 %v6072_v2, %v5936_v17  ;;  %v4716_v53 = vpop.f32.mrb[19].mxu0  ;;  %v5940_v11 = vpop.f32.mrb[22].mxu1 }
 0x22a   : > { %5616 = vst [vmem:[%s8429_s11 + $0x30] sm:$0xff] %v5564_v41   ;;  %v4831_v6 = vadd.f32 %v6104_v54, %v8420_v44  ;;  %v6106_v43 = vadd.f32 %v4716_v53, %v3036_v59  ;;  %v3052_v33 = vpop.f32.mrb[23].mxu1 }
 0x22b   : > { %v4834_v23 = vadd.f32 %v6105_v48, %v8420_v44  ;;  %v4865_v40 = vmax.f32 %v4833_v61, 0.0 }
 0x22c   : > { %v4832_v31 = vadd.f32 %v6106_v43, %v8420_v44  ;;  %v4863_v52 = vmax.f32 %v4831_v6, 0.0 }
 0x22d   : > { %v4866_v32 = vmax.f32 %v4834_v23, 0.0 }
 0x22e   : > { %v4864_v13 = vmax.f32 %v4832_v31, 0.0  ;;  %v6075_v9 = vpop.f32.mrb[20].mxu0 }
 0x22f   : > { %v5579_v12 = vpack.c.bf16 %v4866_v32, %v4865_v40  ;;  %v6107_v7 = vadd.f32 %v6075_v9, %v5939_v1  ;;  %v4729_v46 = vpop.f32.mrb[21].mxu0  ;;  %v5943_v49 = vpop.f32.mrb[24].mxu1 }
 0x230   : > { %v5574_v27 = vpack.c.bf16 %v4864_v13, %v4863_v52  ;;  %v6108_v34 = vadd.f32 %v4729_v46, %v3049_v0  ;;  %v6076_v42 = vpop.f32.mrb[22].mxu0  ;;  %v3065_v56 = vpop.f32.mrb[25].mxu1 }
 0x231   : > { %5619 = vst [vmem:[%s8429_s11 + $0x48] sm:$0xff] %v5579_v12   ;;  %v4837_v14 = vadd.f32 %v6107_v7, %v8420_v44  ;;  %v6109_v26 = vadd.f32 %v6076_v42, %v5940_v11  ;;  %v4732_v38 = vpop.f32.mrb[23].mxu0  ;;  %v5944_v57 = vpop.f32.mrb[26].mxu1 }
 0x232   : > { %5618 = vst [vmem:[%s8429_s11 + $0x40] sm:$0xff] %v5574_v27   ;;  %v4835_v29 = vadd.f32 %v6108_v34, %v8420_v44  ;;  %v6110_v20 = vadd.f32 %v4732_v38, %v3052_v33  ;;  %v3068_v25 = vpop.f32.mrb[27].mxu1 }
 0x233   : > { %v4838_v60 = vadd.f32 %v6109_v26, %v8420_v44  ;;  %v4869_v21 = vmax.f32 %v4837_v14, 0.0 }
 0x234   : > { %v4836_v47 = vadd.f32 %v6110_v20, %v8420_v44  ;;  %v4867_v15 = vmax.f32 %v4835_v29, 0.0 }
 0x235   : > { %v4870_v36 = vmax.f32 %v4838_v60, 0.0 }
 0x236   : > { %v4868_v5 = vmax.f32 %v4836_v47, 0.0  ;;  %v6079_v24 = vpop.f32.mrb[24].mxu0 }
 0x237   : > { %v5589_v58 = vpack.c.bf16 %v4870_v36, %v4869_v21  ;;  %v6111_v28 = vadd.f32 %v6079_v24, %v5943_v49  ;;  %v4745_v50 = vpop.f32.mrb[25].mxu0  ;;  %v5947_v3 = vpop.f32.mrb[28].mxu1 }
 0x238   : > { %v5584_v39 = vpack.c.bf16 %v4868_v5, %v4867_v15  ;;  %v6112_v10 = vadd.f32 %v4745_v50, %v3065_v56  ;;  %v6080_v55 = vpop.f32.mrb[26].mxu0  ;;  %v3081_v17 = vpop.f32.mrb[29].mxu1 }
 0x239   : > { %5621 = vst [vmem:[%s8429_s11 + $0x58] sm:$0xff] %v5589_v58   ;;  %v4841_v51 = vadd.f32 %v6111_v28, %v8420_v44  ;;  %v6113_v18 = vadd.f32 %v6080_v55, %v5944_v57  ;;  %v4748_v45 = vpop.f32.mrb[27].mxu0  ;;  %v5948_v30 = vpop.f32.mrb[30].mxu1 }
 0x23a   : > { %5620 = vst [vmem:[%s8429_s11 + $0x50] sm:$0xff] %v5584_v39   ;;  %v4839_v19 = vadd.f32 %v6112_v10, %v8420_v44  ;;  %v6114_v59 = vadd.f32 %v4748_v45, %v3068_v25  ;;  %v3084_v62 = vpop.f32.mrb[31].mxu1 }
 0x23b   : > { %v4842_v16 = vadd.f32 %v6113_v18, %v8420_v44  ;;  %v4873_v8 = vmax.f32 %v4841_v51, 0.0 }
 0x23c   : > { %v4840_v35 = vadd.f32 %v6114_v59, %v8420_v44  ;;  %v4871_v4 = vmax.f32 %v4839_v19, 0.0 }
 0x23d   : > { %v4874_v37 = vmax.f32 %v4842_v16, 0.0 }
 0x23e   : > { %v4872_v63 = vmax.f32 %v4840_v35, 0.0  ;;  %v6083_v22 = vpop.f32.mrb[28].mxu0 }
 0x23f   : > { %v5599_v41 = vpack.c.bf16 %v4874_v37, %v4873_v8  ;;  %v6115_v54 = vadd.f32 %v6083_v22, %v5947_v3  ;;  %v4761_v2 = vpop.f32.mrb[29].mxu0 }
 0x240   : > { %v5594_v1 = vpack.c.bf16 %v4872_v63, %v4871_v4  ;;  %v6116_v61 = vadd.f32 %v4761_v2, %v3081_v17  ;;  %v6084_v48 = vpop.f32.mrb[30].mxu0 }
 0x241   : > { %5623 = vst [vmem:[%s8429_s11 + $0x68] sm:$0xff] %v5599_v41   ;;  %v4845_v53 = vadd.f32 %v6115_v54, %v8420_v44  ;;  %v6117_v0 = vadd.f32 %v6084_v48, %v5948_v30  ;;  %v4764_v6 = vpop.f32.mrb[31].mxu0 }
 0x242   : > { %5622 = vst [vmem:[%s8429_s11 + $0x60] sm:$0xff] %v5594_v1   ;;  %v4843_v43 = vadd.f32 %v6116_v61, %v8420_v44  ;;  %v6118_v11 = vadd.f32 %v4764_v6, %v3084_v62 }
 0x243   : > { %v4846_v23 = vadd.f32 %v6117_v0, %v8420_v44  ;;  %v4877_v31 = vmax.f32 %v4845_v53, 0.0 }
 0x244   : > { %v4844_v33 = vadd.f32 %v6118_v11, %v8420_v44  ;;  %v4875_v32 = vmax.f32 %v4843_v43, 0.0 }
 0x245   : > { %v4878_v40 = vmax.f32 %v4846_v23, 0.0 }
 0x246   : > { %v4876_v52 = vmax.f32 %v4844_v33, 0.0 }
 0x247   : > { %v5609_v13 = vpack.c.bf16 %v4878_v40, %v4877_v31 }
 0x248   : > { %v5604_v9 = vpack.c.bf16 %v4876_v52, %v4875_v32 }
 0x249   : > { %5625 = vst [vmem:[%s8429_s11 + $0x78] sm:$0xff] %v5609_v13  }
 0x24a   : > { %5624 = vst [vmem:[%s8429_s11 + $0x70] sm:$0xff] %v5604_v9  }
 0x24b   : > { %6527 = shalt.err (!%p6524_p5)
}
 0x24c   : > { %s6528_s4 = scalar_lea.hbm %s8482_s26, 2048  ;;  %s6532_s7 = scalar_lea.hbm %s8539_s3, 4096 }
 0x24d   : > { %p6529_p6 = scmp.ne.s32.totalorder %s8482_s26, %s6528_s4  ;;  %p6533_p10 = scmp.lt.u32.totalorder %s8482_s26, %s8539_s3 }
 0x24e   : > { %p6534_p11 = scmp.lt.u32.totalorder %s6532_s7, %s6528_s4  ;;  %p6536_p13 = scmp.lt.u32.totalorder %s6528_s4, %s8482_s26 }
 0x24f   : > { %p6530_p7 = pnand %p6529_p6, %p6659_p4 }
 0x250   : > { %p6535_p12 = por %p6534_p11, %p6533_p10 }
 0x251   : > { %p6531_p9 = pneg %p6530_p7 }
 0x252   : > { %p6537_p0 = por %p6536_p13, %p6535_p12 }
 0x254   : > { %p6538_p1 = pnand %p6537_p0, %p6531_p9 }
 0x256   : > { %6541 = shalt.err (!%p6538_p1)
}
 0x257   : > { %s6597_s10 = smov 64   ;;  %s6598_s11 = smov 4  }
 0x258   : > { %6354 = dma.vmem_to_hbm [thread:$0]  (%p6659_p4), %s8484_s19, 2048, %s8482_s26, %s8490_s15, %s6597_s10, %s6597_s10, %s6598_s11  }
 0x259 PF: > { %p6360_p2 = scmp.ge.s32.totalorder %s6592_s17, 2  ;;  %s5069_s18 = sand.u32 1, %s6572_s12  }
 0x25a   : > { %s5070_s21 = scalar_lea.sflag [#allocation3], %s5069_s18 }
 0x25b   : > { %p6357_p3 = pnand %p6360_p2, %p6666_p8 }
 0x25d   : > { %6567 = dma.done.wait (!%p6357_p3), %s5070_s21, 2048  }
 0x25e   : > { %6569 = vsyncadd (!%p6357_p3), %s5070_s21, 4294965248  ;;  %s16_s17 = sadd.s32 1, %s6592_s17   ;;  %s9108_s12 = smov %s6576_s13 }
 0x25f   : > { %p13_p5 = scmp.ge.s32.totalorder %s16_s17, 4   ;;  %s9109_s13 = smov %s6580_s14 }
 0x260   : > { %s9110_s14 = smov %s6672_s25  ;;  %s9111_s15 = smov %s6588_s16 }
 0x261   : > { %s9112_s16 = smov %s9114_s20  ;;  %15 = sbr.rel (!%p13_p5) target bundleno = 4 (0x4), region = 73 }
 0x268   :  { %5075 = vsyncpa [#allocation3], 1 }
 0x269   :  { %5077 = vsyncpa [#allocation3 + $0x1], 1 }

</bundles_post_ra>
